<compile_context>
chip_gen: v7x
topology: tpu7x:2x2x1
jax: 0.10.0
libtpu: 0.0.40
codegen_flags: <defaults>
</compile_context>

<pallas_src>
import functools
import math

import jax
import jax.numpy as jnp
from jax.experimental import pallas as pl
from jax.experimental.pallas import tpu as pltpu

LN_EPS = 1e-5  # torch.nn.LayerNorm default


# ----------------------------- fused Pallas kernel -------------------------- #

def bert_layers_kernel(x_ref, qkvw_ref, qkvb_ref, ow_ref, ob_ref,
                       fw_ref, fb_ref, lng_ref, lnb_ref, o_ref,
                       *, num_layers, num_heads):
    """Runs the whole decoder stack for one batch element (grid axis = batch).

    Packed weight layouts (leading index is a flat static index):
      qkvw_ref: (NL*2*3, H, D, dk)   per-head q/k/v weights (scale folded into q)
      qkvb_ref: (NL*2*3, H, 1, dk)   per-head q/k/v biases
      ow_ref:   (NL*2,   H, dk, D)   per-head rows of the output projection
      ob_ref:   (NL*2,   1, D)       output-projection bias
      fw_ref:   (NL*2,   D, D)       FFN lin1 / lin2 weights
      fb_ref:   (NL*2,   1, D)       FFN biases
      lng_ref:  (NL*3,   1, D)       LayerNorm gammas
      lnb_ref:  (NL*3,   1, D)       LayerNorm betas
    """
    L = x_ref.shape[1]
    D = x_ref.shape[2]
    inv_d = jnp.float32(1.0 / D)

    x = x_ref[0].astype(jnp.float32)                       # (L, D)

    # Additive causal mask built in-kernel (col > row masked out).
    row = jax.lax.broadcasted_iota(jnp.int32, (L, L), 0)
    col = jax.lax.broadcasted_iota(jnp.int32, (L, L), 1)
    mask = jnp.where(col > row, jnp.float32(-1e9), jnp.float32(0.0))  # (L, L)

    def attention(att_idx, x_q, x_kv):
        base = 3 * att_idx
        # Head-batched projections: (H,L,D) @ (H,D,dk) -> (H,L,dk)
        xq_h = jnp.broadcast_to(x_q[None], (num_heads, L, D))
        xkv_h = jnp.broadcast_to(x_kv[None], (num_heads, L, D))
        q = jnp.einsum("hld,hdk->hlk", xq_h, qkvw_ref[base + 0],
                       preferred_element_type=jnp.float32) + qkvb_ref[base + 0]
        k = jnp.einsum("hld,hdk->hlk", xkv_h, qkvw_ref[base + 1],
                       preferred_element_type=jnp.float32) + qkvb_ref[base + 1]
        v = jnp.einsum("hld,hdk->hlk", xkv_h, qkvw_ref[base + 2],
                       preferred_element_type=jnp.float32) + qkvb_ref[base + 2]
        # Scores: head-batched, contraction on last dims (no explicit transpose).
        # 1/sqrt(dk) already folded into Wq/bq.
        s = jnp.einsum("hlk,hmk->hlm", q, k,
                       preferred_element_type=jnp.float32) + mask[None]
        s = s - jnp.max(s, axis=-1, keepdims=True)
        p = jnp.exp(s)
        p = p * pl.reciprocal(jnp.sum(p, axis=-1, keepdims=True), approx=True)
        ctx = jnp.einsum("hlm,hmk->hlk", p, v,
                         preferred_element_type=jnp.float32)          # (H, L, dk)
        # Output projection: per-head (L,dk)@(dk,D) summed over heads == concat@Wo.
        out = jnp.einsum("hlk,hkd->hld", ctx, ow_ref[att_idx],
                         preferred_element_type=jnp.float32)          # (H, L, D)
        return jnp.sum(out, axis=0) + ob_ref[att_idx]                 # (L, D)

    def add_ln(ln_idx, a, b):
        h = a + b
        s1 = jnp.sum(h, axis=-1, keepdims=True)
        s2 = jnp.sum(h * h, axis=-1, keepdims=True)
        mean = s1 * inv_d
        var = jnp.maximum(s2 * inv_d - mean * mean, 0.0)
        hn = (h - mean) * jax.lax.rsqrt(var + LN_EPS)
        return hn * lng_ref[ln_idx] + lnb_ref[ln_idx]

    for l in range(num_layers):                          # static unrolled
        att1 = attention(2 * l + 0, x, x)
        out1 = add_ln(3 * l + 0, x, att1)
        # DecoderLayerShuffle: att2(query=post_skill(=layer input), key=value=out1)
        att2 = attention(2 * l + 1, x, out1)
        out2 = add_ln(3 * l + 1, out1, att2)
        h = jnp.dot(out2, fw_ref[2 * l + 0],
                    preferred_element_type=jnp.float32) + fb_ref[2 * l + 0]
        h = jnp.maximum(h, 0.0)
        ffn_out = jnp.dot(h, fw_ref[2 * l + 1],
                          preferred_element_type=jnp.float32) + fb_ref[2 * l + 1]
        x = add_ln(3 * l + 2, out2, ffn_out)

    o_ref[0] = x.astype(o_ref.dtype)


# ----------------------------- parameter handling --------------------------- #

def _dense(key, in_dim, out_dim):
    # weight stored already transposed: (in, out); bias as (1, out)
    w = 0.02 * jax.random.normal(key, (in_dim, out_dim), jnp.float32)
    b = jnp.zeros((1, out_dim), jnp.float32)
    return (w, b)


def init_params(key, num_layers, num_heads, n_skill, d_model):
    keys = jax.random.split(key, 3 + num_layers)
    params = {
        "emb_prior_rsps": 0.02 * jax.random.normal(keys[0], (2, d_model), jnp.float32),
        "emb_prior_skill": 0.02 * jax.random.normal(keys[1], (n_skill + 2, d_model), jnp.float32),
        "emb_post_skill": 0.02 * jax.random.normal(keys[2], (n_skill + 2, d_model), jnp.float32),
        "layers": [],
    }
    for i in range(num_layers):
        lk = jax.random.split(keys[3 + i], 10)
        layer = {
            "att1": {"q": _dense(lk[0], d_model, d_model),
                     "k": _dense(lk[1], d_model, d_model),
                     "v": _dense(lk[2], d_model, d_model),
                     "o": _dense(lk[3], d_model, d_model)},
            "att2": {"q": _dense(lk[4], d_model, d_model),
                     "k": _dense(lk[5], d_model, d_model),
                     "v": _dense(lk[6], d_model, d_model),
                     "o": _dense(lk[7], d_model, d_model)},
            "ffn": {"lin1": _dense(lk[8], d_model, d_model),
                    "lin2": _dense(lk[9], d_model, d_model)},
            "ln1": (jnp.ones((1, d_model), jnp.float32), jnp.zeros((1, d_model), jnp.float32)),
            "ln2": (jnp.ones((1, d_model), jnp.float32), jnp.zeros((1, d_model), jnp.float32)),
            "ln3": (jnp.ones((1, d_model), jnp.float32), jnp.zeros((1, d_model), jnp.float32)),
        }
        params["layers"].append(layer)
    return params


def pack_params(params, num_heads):
    """Host-side (free) prep: fold 1/sqrt(dk) into Wq/bq, split heads, stack layers."""
    d_model = params["layers"][0]["att1"]["q"][0].shape[0]
    dk = d_model // num_heads
    scale = 1.0 / math.sqrt(dk)

    qkv_w, qkv_b, o_w, o_b = [], [], [], []
    ffn_w, ffn_b, ln_g, ln_b = [], [], [], []
    for layer in params["layers"]:
        for att_name in ("att1", "att2"):
            att = layer[att_name]
            for name in ("q", "k", "v"):
                w, b = att[name]                              # (D,D) in->out, (1,D)
                if name == "q":
                    w = w * scale
                    b = b * scale
                qkv_w.append(w.reshape(d_model, num_heads, dk).transpose(1, 0, 2))
                qkv_b.append(b.reshape(num_heads, 1, dk))
            wo, bo = att["o"]
            o_w.append(wo.reshape(num_heads, dk, d_model))    # head rows of Wo
            o_b.append(bo)
        for name in ("lin1", "lin2"):
            w, b = layer["ffn"][name]
            ffn_w.append(w)
            ffn_b.append(b)
        for name in ("ln1", "ln2", "ln3"):
            g, bb = layer[name]
            ln_g.append(g)
            ln_b.append(bb)

    return {
        "qkv_w": jnp.stack(qkv_w),   # (NL*2*3, H, D, dk)
        "qkv_b": jnp.stack(qkv_b),   # (NL*2*3, H, 1, dk)
        "o_w": jnp.stack(o_w),       # (NL*2,   H, dk, D)
        "o_b": jnp.stack(o_b),       # (NL*2,   1, D)
        "ffn_w": jnp.stack(ffn_w),   # (NL*2,   D, D)
        "ffn_b": jnp.stack(ffn_b),   # (NL*2,   1, D)
        "ln_g": jnp.stack(ln_g),     # (NL*3,   1, D)
        "ln_b": jnp.stack(ln_b),     # (NL*3,   1, D)
    }


# ----------------------------- full forward --------------------------------- #

def bert_kt_shuffle_forward(params, skill_ids, rsps_ids, num_heads):
    """pt=0, ft=1 path of BertKTShuffle.forward (item[1]=skill_ids, item[2]=rsps_ids)."""
    num_layers = len(params["layers"])

    prior_skill = skill_ids[:, :-1]
    prior_rsps = rsps_ids[:, :-1]
    post_skill = skill_ids[:, 1:]

    combo = (params["emb_prior_skill"][prior_skill]
             + params["emb_prior_rsps"][prior_rsps]
             + params["emb_post_skill"][post_skill])          # (B, L, D)
    B, L, D = combo.shape

    packed = pack_params(params, num_heads)

    def full_spec(shape):
        n = len(shape)
        return pl.BlockSpec(shape, lambda b, _n=n: (0,) * _n)

    kernel = functools.partial(bert_layers_kernel,
                               num_layers=num_layers, num_heads=num_heads)

    return pl.pallas_call(
        kernel,
        out_shape=jax.ShapeDtypeStruct((B, L, D), combo.dtype),
        grid=(B,),
        in_specs=[pl.BlockSpec((1, L, D), lambda b: (b, 0, 0)),
                  full_spec(packed["qkv_w"].shape),
                  full_spec(packed["qkv_b"].shape),
                  full_spec(packed["o_w"].shape),
                  full_spec(packed["o_b"].shape),
                  full_spec(packed["ffn_w"].shape),
                  full_spec(packed["ffn_b"].shape),
                  full_spec(packed["ln_g"].shape),
                  full_spec(packed["ln_b"].shape)],
        out_specs=pl.BlockSpec((1, L, D), lambda b: (b, 0, 0)),
        compiler_params=pltpu.CompilerParams(
            dimension_semantics=("parallel",)),   # v7x: one batch element per TC
    )(combo, packed["qkv_w"], packed["qkv_b"], packed["o_w"], packed["o_b"],
      packed["ffn_w"], packed["ffn_b"], packed["ln_g"], packed["ln_b"])


# ----------------------------------- main ------------------------------------ #

if __name__ == "__main__":
    NUM_LAYERS = 2
    NUM_HEADS = 4
    N_SKILL = 10
    D_MODEL = 32
    B = 2
    SEQ = 9        # raw sequence length; model uses SEQ-1 = 8 positions

    key = jax.random.PRNGKey(0)
    k_param, k_skill, k_rsps = jax.random.split(key, 3)

    params = init_params(k_param, NUM_LAYERS, NUM_HEADS, N_SKILL, D_MODEL)

    skill_ids = jax.random.randint(k_skill, (B, SEQ), 0, N_SKILL + 2, dtype=jnp.int32)
    rsps_ids = jax.random.randint(k_rsps, (B, SEQ), 0, 2, dtype=jnp.int32)

    fwd = jax.jit(functools.partial(bert_kt_shuffle_forward, num_heads=NUM_HEADS))
    last_hs = fwd(params, skill_ids, rsps_ids)
    jax.block_until_ready(last_hs)

    assert last_hs.shape == (B, SEQ - 1, D_MODEL)
    assert bool(jnp.all(jnp.isfinite(last_hs)))
    print("KERNEL_OK")
</pallas_src>

<mosaic_0001>
module attributes {stable_mosaic.version = 11 : i64} {
  func.func @bert_layers_kernel(%arg0: i32, %arg1: memref<1x8x32xf32, #tpu.memory_space<vmem>>, %arg2: memref<12x4x32x8xf32, #tpu.memory_space<vmem>>, %arg3: memref<12x4x1x8xf32, #tpu.memory_space<vmem>>, %arg4: memref<4x4x8x32xf32, #tpu.memory_space<vmem>>, %arg5: memref<4x1x32xf32, #tpu.memory_space<vmem>>, %arg6: memref<4x32x32xf32, #tpu.memory_space<vmem>>, %arg7: memref<4x1x32xf32, #tpu.memory_space<vmem>>, %arg8: memref<6x1x32xf32, #tpu.memory_space<vmem>>, %arg9: memref<6x1x32xf32, #tpu.memory_space<vmem>>, %arg10: memref<1x8x32xf32, #tpu.memory_space<vmem>>) attributes {dimension_semantics = [#tpu.dimension_semantics<parallel>], iteration_bounds = array<i64: 2>, scalar_prefetch = 0 : i64, scratch_operands = 0 : i64, tpu.core_type = #tpu.core_type<tc>, window_params = [{transform_indices = @transform_0, window_bounds = array<i64: 1, 8, 32>}, {pipeline_mode = #tpu.pipeline_mode<synchronous>, transform_indices = @transform_1, window_bounds = array<i64: 12, 4, 32, 8>}, {pipeline_mode = #tpu.pipeline_mode<synchronous>, transform_indices = @transform_2, window_bounds = array<i64: 12, 4, 1, 8>}, {pipeline_mode = #tpu.pipeline_mode<synchronous>, transform_indices = @transform_3, window_bounds = array<i64: 4, 4, 8, 32>}, {pipeline_mode = #tpu.pipeline_mode<synchronous>, transform_indices = @transform_4, window_bounds = array<i64: 4, 1, 32>}, {pipeline_mode = #tpu.pipeline_mode<synchronous>, transform_indices = @transform_5, window_bounds = array<i64: 4, 32, 32>}, {pipeline_mode = #tpu.pipeline_mode<synchronous>, transform_indices = @transform_6, window_bounds = array<i64: 4, 1, 32>}, {pipeline_mode = #tpu.pipeline_mode<synchronous>, transform_indices = @transform_7, window_bounds = array<i64: 6, 1, 32>}, {pipeline_mode = #tpu.pipeline_mode<synchronous>, transform_indices = @transform_8, window_bounds = array<i64: 6, 1, 32>}, {transform_indices = @transform_9, window_bounds = array<i64: 1, 8, 32>}]} {
    %c0 = arith.constant 0 : index
    %c0_0 = arith.constant 0 : index
    %c0_1 = arith.constant 0 : index
    %0 = vector.load %arg1[%c0, %c0_0, %c0_1] : memref<1x8x32xf32, #tpu.memory_space<vmem>>, vector<1x8x32xf32>
    %1 = vector.shape_cast %0 : vector<1x8x32xf32> to vector<8x32xf32>
    %2 = tpu.iota {dimensions = array<i32: 0>} : vector<8x8xi32>
    %3 = tpu.iota {dimensions = array<i32: 1>} : vector<8x8xi32>
    %4 = arith.cmpi sgt, %3, %2 : vector<8x8xi32>
    %cst = arith.constant -1.000000e+09 : f32
    %cst_2 = arith.constant 0.000000e+00 : f32
    %5 = vector.broadcast %cst : f32 to vector<8x8xf32>
    %6 = vector.broadcast %cst_2 : f32 to vector<8x8xf32>
    %7 = arith.select %4, %5, %6 : vector<8x8xi1>, vector<8x8xf32>
    %8 = vector.shape_cast %1 : vector<8x32xf32> to vector<1x8x32xf32>
    %9 = vector.shape_cast %8 : vector<1x8x32xf32> to vector<1x8x32xf32>
    %10 = vector.broadcast %9 : vector<1x8x32xf32> to vector<4x8x32xf32>
    %11 = vector.shape_cast %1 : vector<8x32xf32> to vector<1x8x32xf32>
    %12 = vector.shape_cast %11 : vector<1x8x32xf32> to vector<1x8x32xf32>
    %13 = vector.broadcast %12 : vector<1x8x32xf32> to vector<4x8x32xf32>
    %c0_3 = arith.constant 0 : index
    %c0_4 = arith.constant 0 : index
    %c0_5 = arith.constant 0 : index
    %c0_6 = arith.constant 0 : index
    %14 = vector.load %arg2[%c0_3, %c0_4, %c0_5, %c0_6] : memref<12x4x32x8xf32, #tpu.memory_space<vmem>>, vector<1x4x32x8xf32>
    %15 = vector.shape_cast %14 : vector<1x4x32x8xf32> to vector<4x32x8xf32>
    "tpu.trace_start"() <{level = 10 : i32, message = "hld,hdk->hlk"}> : () -> ()
    %cst_7 = arith.constant dense<0.000000e+00> : vector<4x8x8xf32>
    %16 = tpu.matmul %10, %15, %cst_7 {dimension_numbers = #tpu.dot_dimension_numbers<[2], [1], [1], [2], [0, 0, 0, 1, 1, 2], [0], [0]>} : vector<4x8x32xf32>, vector<4x32x8xf32>, vector<4x8x8xf32> -> vector<4x8x8xf32>
    "tpu.trace_stop"() : () -> ()
    %c0_8 = arith.constant 0 : index
    %c0_9 = arith.constant 0 : index
    %c0_10 = arith.constant 0 : index
    %c0_11 = arith.constant 0 : index
    %17 = vector.load %arg3[%c0_8, %c0_9, %c0_10, %c0_11] : memref<12x4x1x8xf32, #tpu.memory_space<vmem>>, vector<1x4x1x8xf32>
    %18 = vector.shape_cast %17 : vector<1x4x1x8xf32> to vector<4x1x8xf32>
    %19 = vector.broadcast %18 : vector<4x1x8xf32> to vector<4x8x8xf32>
    %20 = arith.addf %16, %19 : vector<4x8x8xf32>
    %c1 = arith.constant 1 : index
    %c0_12 = arith.constant 0 : index
    %c0_13 = arith.constant 0 : index
    %c0_14 = arith.constant 0 : index
    %21 = vector.load %arg2[%c1, %c0_12, %c0_13, %c0_14] : memref<12x4x32x8xf32, #tpu.memory_space<vmem>>, vector<1x4x32x8xf32>
    %22 = vector.shape_cast %21 : vector<1x4x32x8xf32> to vector<4x32x8xf32>
    "tpu.trace_start"() <{level = 10 : i32, message = "hld,hdk->hlk"}> : () -> ()
    %cst_15 = arith.constant dense<0.000000e+00> : vector<4x8x8xf32>
    %23 = tpu.matmul %13, %22, %cst_15 {dimension_numbers = #tpu.dot_dimension_numbers<[2], [1], [1], [2], [0, 0, 0, 1, 1, 2], [0], [0]>} : vector<4x8x32xf32>, vector<4x32x8xf32>, vector<4x8x8xf32> -> vector<4x8x8xf32>
    "tpu.trace_stop"() : () -> ()
    %c1_16 = arith.constant 1 : index
    %c0_17 = arith.constant 0 : index
    %c0_18 = arith.constant 0 : index
    %c0_19 = arith.constant 0 : index
    %24 = vector.load %arg3[%c1_16, %c0_17, %c0_18, %c0_19] : memref<12x4x1x8xf32, #tpu.memory_space<vmem>>, vector<1x4x1x8xf32>
    %25 = vector.shape_cast %24 : vector<1x4x1x8xf32> to vector<4x1x8xf32>
    %26 = vector.broadcast %25 : vector<4x1x8xf32> to vector<4x8x8xf32>
    %27 = arith.addf %23, %26 : vector<4x8x8xf32>
    %c2 = arith.constant 2 : index
    %c0_20 = arith.constant 0 : index
    %c0_21 = arith.constant 0 : index
    %c0_22 = arith.constant 0 : index
    %28 = vector.load %arg2[%c2, %c0_20, %c0_21, %c0_22] : memref<12x4x32x8xf32, #tpu.memory_space<vmem>>, vector<1x4x32x8xf32>
    %29 = vector.shape_cast %28 : vector<1x4x32x8xf32> to vector<4x32x8xf32>
    "tpu.trace_start"() <{level = 10 : i32, message = "hld,hdk->hlk"}> : () -> ()
    %cst_23 = arith.constant dense<0.000000e+00> : vector<4x8x8xf32>
    %30 = tpu.matmul %13, %29, %cst_23 {dimension_numbers = #tpu.dot_dimension_numbers<[2], [1], [1], [2], [0, 0, 0, 1, 1, 2], [0], [0]>} : vector<4x8x32xf32>, vector<4x32x8xf32>, vector<4x8x8xf32> -> vector<4x8x8xf32>
    "tpu.trace_stop"() : () -> ()
    %c2_24 = arith.constant 2 : index
    %c0_25 = arith.constant 0 : index
    %c0_26 = arith.constant 0 : index
    %c0_27 = arith.constant 0 : index
    %31 = vector.load %arg3[%c2_24, %c0_25, %c0_26, %c0_27] : memref<12x4x1x8xf32, #tpu.memory_space<vmem>>, vector<1x4x1x8xf32>
    %32 = vector.shape_cast %31 : vector<1x4x1x8xf32> to vector<4x1x8xf32>
    %33 = vector.broadcast %32 : vector<4x1x8xf32> to vector<4x8x8xf32>
    %34 = arith.addf %30, %33 : vector<4x8x8xf32>
    "tpu.trace_start"() <{level = 10 : i32, message = "hlk,hmk->hlm"}> : () -> ()
    %cst_28 = arith.constant dense<0.000000e+00> : vector<4x8x8xf32>
    %35 = tpu.matmul %20, %27, %cst_28 {dimension_numbers = #tpu.dot_dimension_numbers<[2], [2], [1], [1], [0, 0, 0, 1, 1, 1], [0], [0]>} : vector<4x8x8xf32>, vector<4x8x8xf32>, vector<4x8x8xf32> -> vector<4x8x8xf32>
    "tpu.trace_stop"() : () -> ()
    %36 = vector.shape_cast %7 : vector<8x8xf32> to vector<1x8x8xf32>
    %37 = vector.broadcast %36 : vector<1x8x8xf32> to vector<4x8x8xf32>
    %38 = arith.addf %35, %37 : vector<4x8x8xf32>
    %cst_29 = arith.constant dense<0xFF800000> : vector<4x8xf32>
    %39 = vector.multi_reduction <maximumf>, %38, %cst_29 [2] : vector<4x8x8xf32> to vector<4x8xf32>
    %40 = vector.shape_cast %39 : vector<4x8xf32> to vector<4x8x1xf32>
    %41 = vector.broadcast %40 : vector<4x8x1xf32> to vector<4x8x8xf32>
    %42 = arith.subf %38, %41 : vector<4x8x8xf32>
    %43 = math.exp %42 : vector<4x8x8xf32>
    %cst_30 = arith.constant dense<0.000000e+00> : vector<4x8xf32>
    %44 = vector.multi_reduction <add>, %43, %cst_30 [2] : vector<4x8x8xf32> to vector<4x8xf32>
    %45 = vector.shape_cast %44 : vector<4x8xf32> to vector<4x8x1xf32>
    %46 = tpu.reciprocal %45 {approx = true} : vector<4x8x1xf32> -> vector<4x8x1xf32>
    %47 = vector.broadcast %46 : vector<4x8x1xf32> to vector<4x8x8xf32>
    %48 = arith.mulf %43, %47 : vector<4x8x8xf32>
    "tpu.trace_start"() <{level = 10 : i32, message = "hlm,hmk->hlk"}> : () -> ()
    %cst_31 = arith.constant dense<0.000000e+00> : vector<4x8x8xf32>
    %49 = tpu.matmul %48, %34, %cst_31 {dimension_numbers = #tpu.dot_dimension_numbers<[2], [1], [1], [2], [0, 0, 0, 1, 1, 2], [0], [0]>} : vector<4x8x8xf32>, vector<4x8x8xf32>, vector<4x8x8xf32> -> vector<4x8x8xf32>
    "tpu.trace_stop"() : () -> ()
    %c0_32 = arith.constant 0 : index
    %c0_33 = arith.constant 0 : index
    %c0_34 = arith.constant 0 : index
    %c0_35 = arith.constant 0 : index
    %50 = vector.load %arg4[%c0_32, %c0_33, %c0_34, %c0_35] : memref<4x4x8x32xf32, #tpu.memory_space<vmem>>, vector<1x4x8x32xf32>
    %51 = vector.shape_cast %50 : vector<1x4x8x32xf32> to vector<4x8x32xf32>
    "tpu.trace_start"() <{level = 10 : i32, message = "hlk,hkd->hld"}> : () -> ()
    %cst_36 = arith.constant dense<0.000000e+00> : vector<4x8x32xf32>
    %52 = tpu.matmul %49, %51, %cst_36 {dimension_numbers = #tpu.dot_dimension_numbers<[2], [1], [1], [2], [0, 0, 0, 1, 1, 2], [0], [0]>} : vector<4x8x8xf32>, vector<4x8x32xf32>, vector<4x8x32xf32> -> vector<4x8x32xf32>
    "tpu.trace_stop"() : () -> ()
    %cst_37 = arith.constant dense<0.000000e+00> : vector<8x32xf32>
    %53 = vector.multi_reduction <add>, %52, %cst_37 [0] : vector<4x8x32xf32> to vector<8x32xf32>
    %c0_38 = arith.constant 0 : index
    %c0_39 = arith.constant 0 : index
    %c0_40 = arith.constant 0 : index
    %54 = vector.load %arg5[%c0_38, %c0_39, %c0_40] : memref<4x1x32xf32, #tpu.memory_space<vmem>>, vector<1x1x32xf32>
    %55 = vector.shape_cast %54 : vector<1x1x32xf32> to vector<1x32xf32>
    %56 = vector.broadcast %55 : vector<1x32xf32> to vector<8x32xf32>
    %57 = arith.addf %53, %56 : vector<8x32xf32>
    %58 = arith.addf %1, %57 : vector<8x32xf32>
    %cst_41 = arith.constant dense<0.000000e+00> : vector<8xf32>
    %59 = vector.multi_reduction <add>, %58, %cst_41 [1] : vector<8x32xf32> to vector<8xf32>
    %60 = vector.shape_cast %59 : vector<8xf32> to vector<8x1xf32>
    %61 = arith.mulf %58, %58 : vector<8x32xf32>
    %cst_42 = arith.constant dense<0.000000e+00> : vector<8xf32>
    %62 = vector.multi_reduction <add>, %61, %cst_42 [1] : vector<8x32xf32> to vector<8xf32>
    %63 = vector.shape_cast %62 : vector<8xf32> to vector<8x1xf32>
    %cst_43 = arith.constant 3.125000e-02 : f32
    %64 = vector.broadcast %cst_43 : f32 to vector<8x1xf32>
    %65 = arith.mulf %60, %64 : vector<8x1xf32>
    %cst_44 = arith.constant 3.125000e-02 : f32
    %66 = vector.broadcast %cst_44 : f32 to vector<8x1xf32>
    %67 = arith.mulf %63, %66 : vector<8x1xf32>
    %68 = arith.mulf %65, %65 : vector<8x1xf32>
    %69 = arith.subf %67, %68 : vector<8x1xf32>
    %cst_45 = arith.constant 0.000000e+00 : f32
    %70 = vector.broadcast %cst_45 : f32 to vector<8x1xf32>
    %71 = arith.maximumf %69, %70 : vector<8x1xf32>
    %72 = vector.broadcast %65 : vector<8x1xf32> to vector<8x32xf32>
    %73 = arith.subf %58, %72 : vector<8x32xf32>
    %cst_46 = arith.constant 9.99999974E-6 : f32
    %74 = vector.broadcast %cst_46 : f32 to vector<8x1xf32>
    %75 = arith.addf %71, %74 : vector<8x1xf32>
    %76 = math.rsqrt %75 : vector<8x1xf32>
    %77 = vector.broadcast %76 : vector<8x1xf32> to vector<8x32xf32>
    %78 = arith.mulf %73, %77 : vector<8x32xf32>
    %c0_47 = arith.constant 0 : index
    %c0_48 = arith.constant 0 : index
    %c0_49 = arith.constant 0 : index
    %79 = vector.load %arg8[%c0_47, %c0_48, %c0_49] : memref<6x1x32xf32, #tpu.memory_space<vmem>>, vector<1x1x32xf32>
    %80 = vector.shape_cast %79 : vector<1x1x32xf32> to vector<1x32xf32>
    %81 = vector.broadcast %80 : vector<1x32xf32> to vector<8x32xf32>
    %82 = arith.mulf %78, %81 : vector<8x32xf32>
    %c0_50 = arith.constant 0 : index
    %c0_51 = arith.constant 0 : index
    %c0_52 = arith.constant 0 : index
    %83 = vector.load %arg9[%c0_50, %c0_51, %c0_52] : memref<6x1x32xf32, #tpu.memory_space<vmem>>, vector<1x1x32xf32>
    %84 = vector.shape_cast %83 : vector<1x1x32xf32> to vector<1x32xf32>
    %85 = vector.broadcast %84 : vector<1x32xf32> to vector<8x32xf32>
    %86 = arith.addf %82, %85 : vector<8x32xf32>
    %87 = vector.shape_cast %1 : vector<8x32xf32> to vector<1x8x32xf32>
    %88 = vector.shape_cast %87 : vector<1x8x32xf32> to vector<1x8x32xf32>
    %89 = vector.broadcast %88 : vector<1x8x32xf32> to vector<4x8x32xf32>
    %90 = vector.shape_cast %86 : vector<8x32xf32> to vector<1x8x32xf32>
    %91 = vector.shape_cast %90 : vector<1x8x32xf32> to vector<1x8x32xf32>
    %92 = vector.broadcast %91 : vector<1x8x32xf32> to vector<4x8x32xf32>
    %c3 = arith.constant 3 : index
    %c0_53 = arith.constant 0 : index
    %c0_54 = arith.constant 0 : index
    %c0_55 = arith.constant 0 : index
    %93 = vector.load %arg2[%c3, %c0_53, %c0_54, %c0_55] : memref<12x4x32x8xf32, #tpu.memory_space<vmem>>, vector<1x4x32x8xf32>
    %94 = vector.shape_cast %93 : vector<1x4x32x8xf32> to vector<4x32x8xf32>
    "tpu.trace_start"() <{level = 10 : i32, message = "hld,hdk->hlk"}> : () -> ()
    %cst_56 = arith.constant dense<0.000000e+00> : vector<4x8x8xf32>
    %95 = tpu.matmul %89, %94, %cst_56 {dimension_numbers = #tpu.dot_dimension_numbers<[2], [1], [1], [2], [0, 0, 0, 1, 1, 2], [0], [0]>} : vector<4x8x32xf32>, vector<4x32x8xf32>, vector<4x8x8xf32> -> vector<4x8x8xf32>
    "tpu.trace_stop"() : () -> ()
    %c3_57 = arith.constant 3 : index
    %c0_58 = arith.constant 0 : index
    %c0_59 = arith.constant 0 : index
    %c0_60 = arith.constant 0 : index
    %96 = vector.load %arg3[%c3_57, %c0_58, %c0_59, %c0_60] : memref<12x4x1x8xf32, #tpu.memory_space<vmem>>, vector<1x4x1x8xf32>
    %97 = vector.shape_cast %96 : vector<1x4x1x8xf32> to vector<4x1x8xf32>
    %98 = vector.broadcast %97 : vector<4x1x8xf32> to vector<4x8x8xf32>
    %99 = arith.addf %95, %98 : vector<4x8x8xf32>
    %c4 = arith.constant 4 : index
    %c0_61 = arith.constant 0 : index
    %c0_62 = arith.constant 0 : index
    %c0_63 = arith.constant 0 : index
    %100 = vector.load %arg2[%c4, %c0_61, %c0_62, %c0_63] : memref<12x4x32x8xf32, #tpu.memory_space<vmem>>, vector<1x4x32x8xf32>
    %101 = vector.shape_cast %100 : vector<1x4x32x8xf32> to vector<4x32x8xf32>
    "tpu.trace_start"() <{level = 10 : i32, message = "hld,hdk->hlk"}> : () -> ()
    %cst_64 = arith.constant dense<0.000000e+00> : vector<4x8x8xf32>
    %102 = tpu.matmul %92, %101, %cst_64 {dimension_numbers = #tpu.dot_dimension_numbers<[2], [1], [1], [2], [0, 0, 0, 1, 1, 2], [0], [0]>} : vector<4x8x32xf32>, vector<4x32x8xf32>, vector<4x8x8xf32> -> vector<4x8x8xf32>
    "tpu.trace_stop"() : () -> ()
    %c4_65 = arith.constant 4 : index
    %c0_66 = arith.constant 0 : index
    %c0_67 = arith.constant 0 : index
    %c0_68 = arith.constant 0 : index
    %103 = vector.load %arg3[%c4_65, %c0_66, %c0_67, %c0_68] : memref<12x4x1x8xf32, #tpu.memory_space<vmem>>, vector<1x4x1x8xf32>
    %104 = vector.shape_cast %103 : vector<1x4x1x8xf32> to vector<4x1x8xf32>
    %105 = vector.broadcast %104 : vector<4x1x8xf32> to vector<4x8x8xf32>
    %106 = arith.addf %102, %105 : vector<4x8x8xf32>
    %c5 = arith.constant 5 : index
    %c0_69 = arith.constant 0 : index
    %c0_70 = arith.constant 0 : index
    %c0_71 = arith.constant 0 : index
    %107 = vector.load %arg2[%c5, %c0_69, %c0_70, %c0_71] : memref<12x4x32x8xf32, #tpu.memory_space<vmem>>, vector<1x4x32x8xf32>
    %108 = vector.shape_cast %107 : vector<1x4x32x8xf32> to vector<4x32x8xf32>
    "tpu.trace_start"() <{level = 10 : i32, message = "hld,hdk->hlk"}> : () -> ()
    %cst_72 = arith.constant dense<0.000000e+00> : vector<4x8x8xf32>
    %109 = tpu.matmul %92, %108, %cst_72 {dimension_numbers = #tpu.dot_dimension_numbers<[2], [1], [1], [2], [0, 0, 0, 1, 1, 2], [0], [0]>} : vector<4x8x32xf32>, vector<4x32x8xf32>, vector<4x8x8xf32> -> vector<4x8x8xf32>
    "tpu.trace_stop"() : () -> ()
    %c5_73 = arith.constant 5 : index
    %c0_74 = arith.constant 0 : index
    %c0_75 = arith.constant 0 : index
    %c0_76 = arith.constant 0 : index
    %110 = vector.load %arg3[%c5_73, %c0_74, %c0_75, %c0_76] : memref<12x4x1x8xf32, #tpu.memory_space<vmem>>, vector<1x4x1x8xf32>
    %111 = vector.shape_cast %110 : vector<1x4x1x8xf32> to vector<4x1x8xf32>
    %112 = vector.broadcast %111 : vector<4x1x8xf32> to vector<4x8x8xf32>
    %113 = arith.addf %109, %112 : vector<4x8x8xf32>
    "tpu.trace_start"() <{level = 10 : i32, message = "hlk,hmk->hlm"}> : () -> ()
    %cst_77 = arith.constant dense<0.000000e+00> : vector<4x8x8xf32>
    %114 = tpu.matmul %99, %106, %cst_77 {dimension_numbers = #tpu.dot_dimension_numbers<[2], [2], [1], [1], [0, 0, 0, 1, 1, 1], [0], [0]>} : vector<4x8x8xf32>, vector<4x8x8xf32>, vector<4x8x8xf32> -> vector<4x8x8xf32>
    "tpu.trace_stop"() : () -> ()
    %115 = vector.shape_cast %7 : vector<8x8xf32> to vector<1x8x8xf32>
    %116 = vector.broadcast %115 : vector<1x8x8xf32> to vector<4x8x8xf32>
    %117 = arith.addf %114, %116 : vector<4x8x8xf32>
    %cst_78 = arith.constant dense<0xFF800000> : vector<4x8xf32>
    %118 = vector.multi_reduction <maximumf>, %117, %cst_78 [2] : vector<4x8x8xf32> to vector<4x8xf32>
    %119 = vector.shape_cast %118 : vector<4x8xf32> to vector<4x8x1xf32>
    %120 = vector.broadcast %119 : vector<4x8x1xf32> to vector<4x8x8xf32>
    %121 = arith.subf %117, %120 : vector<4x8x8xf32>
    %122 = math.exp %121 : vector<4x8x8xf32>
    %cst_79 = arith.constant dense<0.000000e+00> : vector<4x8xf32>
    %123 = vector.multi_reduction <add>, %122, %cst_79 [2] : vector<4x8x8xf32> to vector<4x8xf32>
    %124 = vector.shape_cast %123 : vector<4x8xf32> to vector<4x8x1xf32>
    %125 = tpu.reciprocal %124 {approx = true} : vector<4x8x1xf32> -> vector<4x8x1xf32>
    %126 = vector.broadcast %125 : vector<4x8x1xf32> to vector<4x8x8xf32>
    %127 = arith.mulf %122, %126 : vector<4x8x8xf32>
    "tpu.trace_start"() <{level = 10 : i32, message = "hlm,hmk->hlk"}> : () -> ()
    %cst_80 = arith.constant dense<0.000000e+00> : vector<4x8x8xf32>
    %128 = tpu.matmul %127, %113, %cst_80 {dimension_numbers = #tpu.dot_dimension_numbers<[2], [1], [1], [2], [0, 0, 0, 1, 1, 2], [0], [0]>} : vector<4x8x8xf32>, vector<4x8x8xf32>, vector<4x8x8xf32> -> vector<4x8x8xf32>
    "tpu.trace_stop"() : () -> ()
    %c1_81 = arith.constant 1 : index
    %c0_82 = arith.constant 0 : index
    %c0_83 = arith.constant 0 : index
    %c0_84 = arith.constant 0 : index
    %129 = vector.load %arg4[%c1_81, %c0_82, %c0_83, %c0_84] : memref<4x4x8x32xf32, #tpu.memory_space<vmem>>, vector<1x4x8x32xf32>
    %130 = vector.shape_cast %129 : vector<1x4x8x32xf32> to vector<4x8x32xf32>
    "tpu.trace_start"() <{level = 10 : i32, message = "hlk,hkd->hld"}> : () -> ()
    %cst_85 = arith.constant dense<0.000000e+00> : vector<4x8x32xf32>
    %131 = tpu.matmul %128, %130, %cst_85 {dimension_numbers = #tpu.dot_dimension_numbers<[2], [1], [1], [2], [0, 0, 0, 1, 1, 2], [0], [0]>} : vector<4x8x8xf32>, vector<4x8x32xf32>, vector<4x8x32xf32> -> vector<4x8x32xf32>
    "tpu.trace_stop"() : () -> ()
    %cst_86 = arith.constant dense<0.000000e+00> : vector<8x32xf32>
    %132 = vector.multi_reduction <add>, %131, %cst_86 [0] : vector<4x8x32xf32> to vector<8x32xf32>
    %c1_87 = arith.constant 1 : index
    %c0_88 = arith.constant 0 : index
    %c0_89 = arith.constant 0 : index
    %133 = vector.load %arg5[%c1_87, %c0_88, %c0_89] : memref<4x1x32xf32, #tpu.memory_space<vmem>>, vector<1x1x32xf32>
    %134 = vector.shape_cast %133 : vector<1x1x32xf32> to vector<1x32xf32>
    %135 = vector.broadcast %134 : vector<1x32xf32> to vector<8x32xf32>
    %136 = arith.addf %132, %135 : vector<8x32xf32>
    %137 = arith.addf %86, %136 : vector<8x32xf32>
    %cst_90 = arith.constant dense<0.000000e+00> : vector<8xf32>
    %138 = vector.multi_reduction <add>, %137, %cst_90 [1] : vector<8x32xf32> to vector<8xf32>
    %139 = vector.shape_cast %138 : vector<8xf32> to vector<8x1xf32>
    %140 = arith.mulf %137, %137 : vector<8x32xf32>
    %cst_91 = arith.constant dense<0.000000e+00> : vector<8xf32>
    %141 = vector.multi_reduction <add>, %140, %cst_91 [1] : vector<8x32xf32> to vector<8xf32>
    %142 = vector.shape_cast %141 : vector<8xf32> to vector<8x1xf32>
    %cst_92 = arith.constant 3.125000e-02 : f32
    %143 = vector.broadcast %cst_92 : f32 to vector<8x1xf32>
    %144 = arith.mulf %139, %143 : vector<8x1xf32>
    %cst_93 = arith.constant 3.125000e-02 : f32
    %145 = vector.broadcast %cst_93 : f32 to vector<8x1xf32>
    %146 = arith.mulf %142, %145 : vector<8x1xf32>
    %147 = arith.mulf %144, %144 : vector<8x1xf32>
    %148 = arith.subf %146, %147 : vector<8x1xf32>
    %cst_94 = arith.constant 0.000000e+00 : f32
    %149 = vector.broadcast %cst_94 : f32 to vector<8x1xf32>
    %150 = arith.maximumf %148, %149 : vector<8x1xf32>
    %151 = vector.broadcast %144 : vector<8x1xf32> to vector<8x32xf32>
    %152 = arith.subf %137, %151 : vector<8x32xf32>
    %cst_95 = arith.constant 9.99999974E-6 : f32
    %153 = vector.broadcast %cst_95 : f32 to vector<8x1xf32>
    %154 = arith.addf %150, %153 : vector<8x1xf32>
    %155 = math.rsqrt %154 : vector<8x1xf32>
    %156 = vector.broadcast %155 : vector<8x1xf32> to vector<8x32xf32>
    %157 = arith.mulf %152, %156 : vector<8x32xf32>
    %c1_96 = arith.constant 1 : index
    %c0_97 = arith.constant 0 : index
    %c0_98 = arith.constant 0 : index
    %158 = vector.load %arg8[%c1_96, %c0_97, %c0_98] : memref<6x1x32xf32, #tpu.memory_space<vmem>>, vector<1x1x32xf32>
    %159 = vector.shape_cast %158 : vector<1x1x32xf32> to vector<1x32xf32>
    %160 = vector.broadcast %159 : vector<1x32xf32> to vector<8x32xf32>
    %161 = arith.mulf %157, %160 : vector<8x32xf32>
    %c1_99 = arith.constant 1 : index
    %c0_100 = arith.constant 0 : index
    %c0_101 = arith.constant 0 : index
    %162 = vector.load %arg9[%c1_99, %c0_100, %c0_101] : memref<6x1x32xf32, #tpu.memory_space<vmem>>, vector<1x1x32xf32>
    %163 = vector.shape_cast %162 : vector<1x1x32xf32> to vector<1x32xf32>
    %164 = vector.broadcast %163 : vector<1x32xf32> to vector<8x32xf32>
    %165 = arith.addf %161, %164 : vector<8x32xf32>
    %c0_102 = arith.constant 0 : index
    %c0_103 = arith.constant 0 : index
    %c0_104 = arith.constant 0 : index
    %166 = vector.load %arg6[%c0_102, %c0_103, %c0_104] : memref<4x32x32xf32, #tpu.memory_space<vmem>>, vector<1x32x32xf32>
    %167 = vector.shape_cast %166 : vector<1x32x32xf32> to vector<32x32xf32>
    %cst_105 = arith.constant dense<0.000000e+00> : vector<8x32xf32>
    %168 = tpu.matmul %165, %167, %cst_105 {dimension_numbers = #tpu.dot_dimension_numbers<[1], [0], [0], [1], [0, 0, 1, 1], [], []>} : vector<8x32xf32>, vector<32x32xf32>, vector<8x32xf32> -> vector<8x32xf32>
    %c0_106 = arith.constant 0 : index
    %c0_107 = arith.constant 0 : index
    %c0_108 = arith.constant 0 : index
    %169 = vector.load %arg7[%c0_106, %c0_107, %c0_108] : memref<4x1x32xf32, #tpu.memory_space<vmem>>, vector<1x1x32xf32>
    %170 = vector.shape_cast %169 : vector<1x1x32xf32> to vector<1x32xf32>
    %171 = vector.broadcast %170 : vector<1x32xf32> to vector<8x32xf32>
    %172 = arith.addf %168, %171 : vector<8x32xf32>
    %cst_109 = arith.constant 0.000000e+00 : f32
    %173 = vector.broadcast %cst_109 : f32 to vector<8x32xf32>
    %174 = arith.maximumf %172, %173 : vector<8x32xf32>
    %c1_110 = arith.constant 1 : index
    %c0_111 = arith.constant 0 : index
    %c0_112 = arith.constant 0 : index
    %175 = vector.load %arg6[%c1_110, %c0_111, %c0_112] : memref<4x32x32xf32, #tpu.memory_space<vmem>>, vector<1x32x32xf32>
    %176 = vector.shape_cast %175 : vector<1x32x32xf32> to vector<32x32xf32>
    %cst_113 = arith.constant dense<0.000000e+00> : vector<8x32xf32>
    %177 = tpu.matmul %174, %176, %cst_113 {dimension_numbers = #tpu.dot_dimension_numbers<[1], [0], [0], [1], [0, 0, 1, 1], [], []>} : vector<8x32xf32>, vector<32x32xf32>, vector<8x32xf32> -> vector<8x32xf32>
    %c1_114 = arith.constant 1 : index
    %c0_115 = arith.constant 0 : index
    %c0_116 = arith.constant 0 : index
    %178 = vector.load %arg7[%c1_114, %c0_115, %c0_116] : memref<4x1x32xf32, #tpu.memory_space<vmem>>, vector<1x1x32xf32>
    %179 = vector.shape_cast %178 : vector<1x1x32xf32> to vector<1x32xf32>
    %180 = vector.broadcast %179 : vector<1x32xf32> to vector<8x32xf32>
    %181 = arith.addf %177, %180 : vector<8x32xf32>
    %182 = arith.addf %165, %181 : vector<8x32xf32>
    %cst_117 = arith.constant dense<0.000000e+00> : vector<8xf32>
    %183 = vector.multi_reduction <add>, %182, %cst_117 [1] : vector<8x32xf32> to vector<8xf32>
    %184 = vector.shape_cast %183 : vector<8xf32> to vector<8x1xf32>
    %185 = arith.mulf %182, %182 : vector<8x32xf32>
    %cst_118 = arith.constant dense<0.000000e+00> : vector<8xf32>
    %186 = vector.multi_reduction <add>, %185, %cst_118 [1] : vector<8x32xf32> to vector<8xf32>
    %187 = vector.shape_cast %186 : vector<8xf32> to vector<8x1xf32>
    %cst_119 = arith.constant 3.125000e-02 : f32
    %188 = vector.broadcast %cst_119 : f32 to vector<8x1xf32>
    %189 = arith.mulf %184, %188 : vector<8x1xf32>
    %cst_120 = arith.constant 3.125000e-02 : f32
    %190 = vector.broadcast %cst_120 : f32 to vector<8x1xf32>
    %191 = arith.mulf %187, %190 : vector<8x1xf32>
    %192 = arith.mulf %189, %189 : vector<8x1xf32>
    %193 = arith.subf %191, %192 : vector<8x1xf32>
    %cst_121 = arith.constant 0.000000e+00 : f32
    %194 = vector.broadcast %cst_121 : f32 to vector<8x1xf32>
    %195 = arith.maximumf %193, %194 : vector<8x1xf32>
    %196 = vector.broadcast %189 : vector<8x1xf32> to vector<8x32xf32>
    %197 = arith.subf %182, %196 : vector<8x32xf32>
    %cst_122 = arith.constant 9.99999974E-6 : f32
    %198 = vector.broadcast %cst_122 : f32 to vector<8x1xf32>
    %199 = arith.addf %195, %198 : vector<8x1xf32>
    %200 = math.rsqrt %199 : vector<8x1xf32>
    %201 = vector.broadcast %200 : vector<8x1xf32> to vector<8x32xf32>
    %202 = arith.mulf %197, %201 : vector<8x32xf32>
    %c2_123 = arith.constant 2 : index
    %c0_124 = arith.constant 0 : index
    %c0_125 = arith.constant 0 : index
    %203 = vector.load %arg8[%c2_123, %c0_124, %c0_125] : memref<6x1x32xf32, #tpu.memory_space<vmem>>, vector<1x1x32xf32>
    %204 = vector.shape_cast %203 : vector<1x1x32xf32> to vector<1x32xf32>
    %205 = vector.broadcast %204 : vector<1x32xf32> to vector<8x32xf32>
    %206 = arith.mulf %202, %205 : vector<8x32xf32>
    %c2_126 = arith.constant 2 : index
    %c0_127 = arith.constant 0 : index
    %c0_128 = arith.constant 0 : index
    %207 = vector.load %arg9[%c2_126, %c0_127, %c0_128] : memref<6x1x32xf32, #tpu.memory_space<vmem>>, vector<1x1x32xf32>
    %208 = vector.shape_cast %207 : vector<1x1x32xf32> to vector<1x32xf32>
    %209 = vector.broadcast %208 : vector<1x32xf32> to vector<8x32xf32>
    %210 = arith.addf %206, %209 : vector<8x32xf32>
    %211 = vector.shape_cast %210 : vector<8x32xf32> to vector<1x8x32xf32>
    %212 = vector.shape_cast %211 : vector<1x8x32xf32> to vector<1x8x32xf32>
    %213 = vector.broadcast %212 : vector<1x8x32xf32> to vector<4x8x32xf32>
    %214 = vector.shape_cast %210 : vector<8x32xf32> to vector<1x8x32xf32>
    %215 = vector.shape_cast %214 : vector<1x8x32xf32> to vector<1x8x32xf32>
    %216 = vector.broadcast %215 : vector<1x8x32xf32> to vector<4x8x32xf32>
    %c6 = arith.constant 6 : index
    %c0_129 = arith.constant 0 : index
    %c0_130 = arith.constant 0 : index
    %c0_131 = arith.constant 0 : index
    %217 = vector.load %arg2[%c6, %c0_129, %c0_130, %c0_131] : memref<12x4x32x8xf32, #tpu.memory_space<vmem>>, vector<1x4x32x8xf32>
    %218 = vector.shape_cast %217 : vector<1x4x32x8xf32> to vector<4x32x8xf32>
    "tpu.trace_start"() <{level = 10 : i32, message = "hld,hdk->hlk"}> : () -> ()
    %cst_132 = arith.constant dense<0.000000e+00> : vector<4x8x8xf32>
    %219 = tpu.matmul %213, %218, %cst_132 {dimension_numbers = #tpu.dot_dimension_numbers<[2], [1], [1], [2], [0, 0, 0, 1, 1, 2], [0], [0]>} : vector<4x8x32xf32>, vector<4x32x8xf32>, vector<4x8x8xf32> -> vector<4x8x8xf32>
    "tpu.trace_stop"() : () -> ()
    %c6_133 = arith.constant 6 : index
    %c0_134 = arith.constant 0 : index
    %c0_135 = arith.constant 0 : index
    %c0_136 = arith.constant 0 : index
    %220 = vector.load %arg3[%c6_133, %c0_134, %c0_135, %c0_136] : memref<12x4x1x8xf32, #tpu.memory_space<vmem>>, vector<1x4x1x8xf32>
    %221 = vector.shape_cast %220 : vector<1x4x1x8xf32> to vector<4x1x8xf32>
    %222 = vector.broadcast %221 : vector<4x1x8xf32> to vector<4x8x8xf32>
    %223 = arith.addf %219, %222 : vector<4x8x8xf32>
    %c7 = arith.constant 7 : index
    %c0_137 = arith.constant 0 : index
    %c0_138 = arith.constant 0 : index
    %c0_139 = arith.constant 0 : index
    %224 = vector.load %arg2[%c7, %c0_137, %c0_138, %c0_139] : memref<12x4x32x8xf32, #tpu.memory_space<vmem>>, vector<1x4x32x8xf32>
    %225 = vector.shape_cast %224 : vector<1x4x32x8xf32> to vector<4x32x8xf32>
    "tpu.trace_start"() <{level = 10 : i32, message = "hld,hdk->hlk"}> : () -> ()
    %cst_140 = arith.constant dense<0.000000e+00> : vector<4x8x8xf32>
    %226 = tpu.matmul %216, %225, %cst_140 {dimension_numbers = #tpu.dot_dimension_numbers<[2], [1], [1], [2], [0, 0, 0, 1, 1, 2], [0], [0]>} : vector<4x8x32xf32>, vector<4x32x8xf32>, vector<4x8x8xf32> -> vector<4x8x8xf32>
    "tpu.trace_stop"() : () -> ()
    %c7_141 = arith.constant 7 : index
    %c0_142 = arith.constant 0 : index
    %c0_143 = arith.constant 0 : index
    %c0_144 = arith.constant 0 : index
    %227 = vector.load %arg3[%c7_141, %c0_142, %c0_143, %c0_144] : memref<12x4x1x8xf32, #tpu.memory_space<vmem>>, vector<1x4x1x8xf32>
    %228 = vector.shape_cast %227 : vector<1x4x1x8xf32> to vector<4x1x8xf32>
    %229 = vector.broadcast %228 : vector<4x1x8xf32> to vector<4x8x8xf32>
    %230 = arith.addf %226, %229 : vector<4x8x8xf32>
    %c8 = arith.constant 8 : index
    %c0_145 = arith.constant 0 : index
    %c0_146 = arith.constant 0 : index
    %c0_147 = arith.constant 0 : index
    %231 = vector.load %arg2[%c8, %c0_145, %c0_146, %c0_147] : memref<12x4x32x8xf32, #tpu.memory_space<vmem>>, vector<1x4x32x8xf32>
    %232 = vector.shape_cast %231 : vector<1x4x32x8xf32> to vector<4x32x8xf32>
    "tpu.trace_start"() <{level = 10 : i32, message = "hld,hdk->hlk"}> : () -> ()
    %cst_148 = arith.constant dense<0.000000e+00> : vector<4x8x8xf32>
    %233 = tpu.matmul %216, %232, %cst_148 {dimension_numbers = #tpu.dot_dimension_numbers<[2], [1], [1], [2], [0, 0, 0, 1, 1, 2], [0], [0]>} : vector<4x8x32xf32>, vector<4x32x8xf32>, vector<4x8x8xf32> -> vector<4x8x8xf32>
    "tpu.trace_stop"() : () -> ()
    %c8_149 = arith.constant 8 : index
    %c0_150 = arith.constant 0 : index
    %c0_151 = arith.constant 0 : index
    %c0_152 = arith.constant 0 : index
    %234 = vector.load %arg3[%c8_149, %c0_150, %c0_151, %c0_152] : memref<12x4x1x8xf32, #tpu.memory_space<vmem>>, vector<1x4x1x8xf32>
    %235 = vector.shape_cast %234 : vector<1x4x1x8xf32> to vector<4x1x8xf32>
    %236 = vector.broadcast %235 : vector<4x1x8xf32> to vector<4x8x8xf32>
    %237 = arith.addf %233, %236 : vector<4x8x8xf32>
    "tpu.trace_start"() <{level = 10 : i32, message = "hlk,hmk->hlm"}> : () -> ()
    %cst_153 = arith.constant dense<0.000000e+00> : vector<4x8x8xf32>
    %238 = tpu.matmul %223, %230, %cst_153 {dimension_numbers = #tpu.dot_dimension_numbers<[2], [2], [1], [1], [0, 0, 0, 1, 1, 1], [0], [0]>} : vector<4x8x8xf32>, vector<4x8x8xf32>, vector<4x8x8xf32> -> vector<4x8x8xf32>
    "tpu.trace_stop"() : () -> ()
    %239 = vector.shape_cast %7 : vector<8x8xf32> to vector<1x8x8xf32>
    %240 = vector.broadcast %239 : vector<1x8x8xf32> to vector<4x8x8xf32>
    %241 = arith.addf %238, %240 : vector<4x8x8xf32>
    %cst_154 = arith.constant dense<0xFF800000> : vector<4x8xf32>
    %242 = vector.multi_reduction <maximumf>, %241, %cst_154 [2] : vector<4x8x8xf32> to vector<4x8xf32>
    %243 = vector.shape_cast %242 : vector<4x8xf32> to vector<4x8x1xf32>
    %244 = vector.broadcast %243 : vector<4x8x1xf32> to vector<4x8x8xf32>
    %245 = arith.subf %241, %244 : vector<4x8x8xf32>
    %246 = math.exp %245 : vector<4x8x8xf32>
    %cst_155 = arith.constant dense<0.000000e+00> : vector<4x8xf32>
    %247 = vector.multi_reduction <add>, %246, %cst_155 [2] : vector<4x8x8xf32> to vector<4x8xf32>
    %248 = vector.shape_cast %247 : vector<4x8xf32> to vector<4x8x1xf32>
    %249 = tpu.reciprocal %248 {approx = true} : vector<4x8x1xf32> -> vector<4x8x1xf32>
    %250 = vector.broadcast %249 : vector<4x8x1xf32> to vector<4x8x8xf32>
    %251 = arith.mulf %246, %250 : vector<4x8x8xf32>
    "tpu.trace_start"() <{level = 10 : i32, message = "hlm,hmk->hlk"}> : () -> ()
    %cst_156 = arith.constant dense<0.000000e+00> : vector<4x8x8xf32>
    %252 = tpu.matmul %251, %237, %cst_156 {dimension_numbers = #tpu.dot_dimension_numbers<[2], [1], [1], [2], [0, 0, 0, 1, 1, 2], [0], [0]>} : vector<4x8x8xf32>, vector<4x8x8xf32>, vector<4x8x8xf32> -> vector<4x8x8xf32>
    "tpu.trace_stop"() : () -> ()
    %c2_157 = arith.constant 2 : index
    %c0_158 = arith.constant 0 : index
    %c0_159 = arith.constant 0 : index
    %c0_160 = arith.constant 0 : index
    %253 = vector.load %arg4[%c2_157, %c0_158, %c0_159, %c0_160] : memref<4x4x8x32xf32, #tpu.memory_space<vmem>>, vector<1x4x8x32xf32>
    %254 = vector.shape_cast %253 : vector<1x4x8x32xf32> to vector<4x8x32xf32>
    "tpu.trace_start"() <{level = 10 : i32, message = "hlk,hkd->hld"}> : () -> ()
    %cst_161 = arith.constant dense<0.000000e+00> : vector<4x8x32xf32>
    %255 = tpu.matmul %252, %254, %cst_161 {dimension_numbers = #tpu.dot_dimension_numbers<[2], [1], [1], [2], [0, 0, 0, 1, 1, 2], [0], [0]>} : vector<4x8x8xf32>, vector<4x8x32xf32>, vector<4x8x32xf32> -> vector<4x8x32xf32>
    "tpu.trace_stop"() : () -> ()
    %cst_162 = arith.constant dense<0.000000e+00> : vector<8x32xf32>
    %256 = vector.multi_reduction <add>, %255, %cst_162 [0] : vector<4x8x32xf32> to vector<8x32xf32>
    %c2_163 = arith.constant 2 : index
    %c0_164 = arith.constant 0 : index
    %c0_165 = arith.constant 0 : index
    %257 = vector.load %arg5[%c2_163, %c0_164, %c0_165] : memref<4x1x32xf32, #tpu.memory_space<vmem>>, vector<1x1x32xf32>
    %258 = vector.shape_cast %257 : vector<1x1x32xf32> to vector<1x32xf32>
    %259 = vector.broadcast %258 : vector<1x32xf32> to vector<8x32xf32>
    %260 = arith.addf %256, %259 : vector<8x32xf32>
    %261 = arith.addf %210, %260 : vector<8x32xf32>
    %cst_166 = arith.constant dense<0.000000e+00> : vector<8xf32>
    %262 = vector.multi_reduction <add>, %261, %cst_166 [1] : vector<8x32xf32> to vector<8xf32>
    %263 = vector.shape_cast %262 : vector<8xf32> to vector<8x1xf32>
    %264 = arith.mulf %261, %261 : vector<8x32xf32>
    %cst_167 = arith.constant dense<0.000000e+00> : vector<8xf32>
    %265 = vector.multi_reduction <add>, %264, %cst_167 [1] : vector<8x32xf32> to vector<8xf32>
    %266 = vector.shape_cast %265 : vector<8xf32> to vector<8x1xf32>
    %cst_168 = arith.constant 3.125000e-02 : f32
    %267 = vector.broadcast %cst_168 : f32 to vector<8x1xf32>
    %268 = arith.mulf %263, %267 : vector<8x1xf32>
    %cst_169 = arith.constant 3.125000e-02 : f32
    %269 = vector.broadcast %cst_169 : f32 to vector<8x1xf32>
    %270 = arith.mulf %266, %269 : vector<8x1xf32>
    %271 = arith.mulf %268, %268 : vector<8x1xf32>
    %272 = arith.subf %270, %271 : vector<8x1xf32>
    %cst_170 = arith.constant 0.000000e+00 : f32
    %273 = vector.broadcast %cst_170 : f32 to vector<8x1xf32>
    %274 = arith.maximumf %272, %273 : vector<8x1xf32>
    %275 = vector.broadcast %268 : vector<8x1xf32> to vector<8x32xf32>
    %276 = arith.subf %261, %275 : vector<8x32xf32>
    %cst_171 = arith.constant 9.99999974E-6 : f32
    %277 = vector.broadcast %cst_171 : f32 to vector<8x1xf32>
    %278 = arith.addf %274, %277 : vector<8x1xf32>
    %279 = math.rsqrt %278 : vector<8x1xf32>
    %280 = vector.broadcast %279 : vector<8x1xf32> to vector<8x32xf32>
    %281 = arith.mulf %276, %280 : vector<8x32xf32>
    %c3_172 = arith.constant 3 : index
    %c0_173 = arith.constant 0 : index
    %c0_174 = arith.constant 0 : index
    %282 = vector.load %arg8[%c3_172, %c0_173, %c0_174] : memref<6x1x32xf32, #tpu.memory_space<vmem>>, vector<1x1x32xf32>
    %283 = vector.shape_cast %282 : vector<1x1x32xf32> to vector<1x32xf32>
    %284 = vector.broadcast %283 : vector<1x32xf32> to vector<8x32xf32>
    %285 = arith.mulf %281, %284 : vector<8x32xf32>
    %c3_175 = arith.constant 3 : index
    %c0_176 = arith.constant 0 : index
    %c0_177 = arith.constant 0 : index
    %286 = vector.load %arg9[%c3_175, %c0_176, %c0_177] : memref<6x1x32xf32, #tpu.memory_space<vmem>>, vector<1x1x32xf32>
    %287 = vector.shape_cast %286 : vector<1x1x32xf32> to vector<1x32xf32>
    %288 = vector.broadcast %287 : vector<1x32xf32> to vector<8x32xf32>
    %289 = arith.addf %285, %288 : vector<8x32xf32>
    %290 = vector.shape_cast %210 : vector<8x32xf32> to vector<1x8x32xf32>
    %291 = vector.shape_cast %290 : vector<1x8x32xf32> to vector<1x8x32xf32>
    %292 = vector.broadcast %291 : vector<1x8x32xf32> to vector<4x8x32xf32>
    %293 = vector.shape_cast %289 : vector<8x32xf32> to vector<1x8x32xf32>
    %294 = vector.shape_cast %293 : vector<1x8x32xf32> to vector<1x8x32xf32>
    %295 = vector.broadcast %294 : vector<1x8x32xf32> to vector<4x8x32xf32>
    %c9 = arith.constant 9 : index
    %c0_178 = arith.constant 0 : index
    %c0_179 = arith.constant 0 : index
    %c0_180 = arith.constant 0 : index
    %296 = vector.load %arg2[%c9, %c0_178, %c0_179, %c0_180] : memref<12x4x32x8xf32, #tpu.memory_space<vmem>>, vector<1x4x32x8xf32>
    %297 = vector.shape_cast %296 : vector<1x4x32x8xf32> to vector<4x32x8xf32>
    "tpu.trace_start"() <{level = 10 : i32, message = "hld,hdk->hlk"}> : () -> ()
    %cst_181 = arith.constant dense<0.000000e+00> : vector<4x8x8xf32>
    %298 = tpu.matmul %292, %297, %cst_181 {dimension_numbers = #tpu.dot_dimension_numbers<[2], [1], [1], [2], [0, 0, 0, 1, 1, 2], [0], [0]>} : vector<4x8x32xf32>, vector<4x32x8xf32>, vector<4x8x8xf32> -> vector<4x8x8xf32>
    "tpu.trace_stop"() : () -> ()
    %c9_182 = arith.constant 9 : index
    %c0_183 = arith.constant 0 : index
    %c0_184 = arith.constant 0 : index
    %c0_185 = arith.constant 0 : index
    %299 = vector.load %arg3[%c9_182, %c0_183, %c0_184, %c0_185] : memref<12x4x1x8xf32, #tpu.memory_space<vmem>>, vector<1x4x1x8xf32>
    %300 = vector.shape_cast %299 : vector<1x4x1x8xf32> to vector<4x1x8xf32>
    %301 = vector.broadcast %300 : vector<4x1x8xf32> to vector<4x8x8xf32>
    %302 = arith.addf %298, %301 : vector<4x8x8xf32>
    %c10 = arith.constant 10 : index
    %c0_186 = arith.constant 0 : index
    %c0_187 = arith.constant 0 : index
    %c0_188 = arith.constant 0 : index
    %303 = vector.load %arg2[%c10, %c0_186, %c0_187, %c0_188] : memref<12x4x32x8xf32, #tpu.memory_space<vmem>>, vector<1x4x32x8xf32>
    %304 = vector.shape_cast %303 : vector<1x4x32x8xf32> to vector<4x32x8xf32>
    "tpu.trace_start"() <{level = 10 : i32, message = "hld,hdk->hlk"}> : () -> ()
    %cst_189 = arith.constant dense<0.000000e+00> : vector<4x8x8xf32>
    %305 = tpu.matmul %295, %304, %cst_189 {dimension_numbers = #tpu.dot_dimension_numbers<[2], [1], [1], [2], [0, 0, 0, 1, 1, 2], [0], [0]>} : vector<4x8x32xf32>, vector<4x32x8xf32>, vector<4x8x8xf32> -> vector<4x8x8xf32>
    "tpu.trace_stop"() : () -> ()
    %c10_190 = arith.constant 10 : index
    %c0_191 = arith.constant 0 : index
    %c0_192 = arith.constant 0 : index
    %c0_193 = arith.constant 0 : index
    %306 = vector.load %arg3[%c10_190, %c0_191, %c0_192, %c0_193] : memref<12x4x1x8xf32, #tpu.memory_space<vmem>>, vector<1x4x1x8xf32>
    %307 = vector.shape_cast %306 : vector<1x4x1x8xf32> to vector<4x1x8xf32>
    %308 = vector.broadcast %307 : vector<4x1x8xf32> to vector<4x8x8xf32>
    %309 = arith.addf %305, %308 : vector<4x8x8xf32>
    %c11 = arith.constant 11 : index
    %c0_194 = arith.constant 0 : index
    %c0_195 = arith.constant 0 : index
    %c0_196 = arith.constant 0 : index
    %310 = vector.load %arg2[%c11, %c0_194, %c0_195, %c0_196] : memref<12x4x32x8xf32, #tpu.memory_space<vmem>>, vector<1x4x32x8xf32>
    %311 = vector.shape_cast %310 : vector<1x4x32x8xf32> to vector<4x32x8xf32>
    "tpu.trace_start"() <{level = 10 : i32, message = "hld,hdk->hlk"}> : () -> ()
    %cst_197 = arith.constant dense<0.000000e+00> : vector<4x8x8xf32>
    %312 = tpu.matmul %295, %311, %cst_197 {dimension_numbers = #tpu.dot_dimension_numbers<[2], [1], [1], [2], [0, 0, 0, 1, 1, 2], [0], [0]>} : vector<4x8x32xf32>, vector<4x32x8xf32>, vector<4x8x8xf32> -> vector<4x8x8xf32>
    "tpu.trace_stop"() : () -> ()
    %c11_198 = arith.constant 11 : index
    %c0_199 = arith.constant 0 : index
    %c0_200 = arith.constant 0 : index
    %c0_201 = arith.constant 0 : index
    %313 = vector.load %arg3[%c11_198, %c0_199, %c0_200, %c0_201] : memref<12x4x1x8xf32, #tpu.memory_space<vmem>>, vector<1x4x1x8xf32>
    %314 = vector.shape_cast %313 : vector<1x4x1x8xf32> to vector<4x1x8xf32>
    %315 = vector.broadcast %314 : vector<4x1x8xf32> to vector<4x8x8xf32>
    %316 = arith.addf %312, %315 : vector<4x8x8xf32>
    "tpu.trace_start"() <{level = 10 : i32, message = "hlk,hmk->hlm"}> : () -> ()
    %cst_202 = arith.constant dense<0.000000e+00> : vector<4x8x8xf32>
    %317 = tpu.matmul %302, %309, %cst_202 {dimension_numbers = #tpu.dot_dimension_numbers<[2], [2], [1], [1], [0, 0, 0, 1, 1, 1], [0], [0]>} : vector<4x8x8xf32>, vector<4x8x8xf32>, vector<4x8x8xf32> -> vector<4x8x8xf32>
    "tpu.trace_stop"() : () -> ()
    %318 = vector.shape_cast %7 : vector<8x8xf32> to vector<1x8x8xf32>
    %319 = vector.broadcast %318 : vector<1x8x8xf32> to vector<4x8x8xf32>
    %320 = arith.addf %317, %319 : vector<4x8x8xf32>
    %cst_203 = arith.constant dense<0xFF800000> : vector<4x8xf32>
    %321 = vector.multi_reduction <maximumf>, %320, %cst_203 [2] : vector<4x8x8xf32> to vector<4x8xf32>
    %322 = vector.shape_cast %321 : vector<4x8xf32> to vector<4x8x1xf32>
    %323 = vector.broadcast %322 : vector<4x8x1xf32> to vector<4x8x8xf32>
    %324 = arith.subf %320, %323 : vector<4x8x8xf32>
    %325 = math.exp %324 : vector<4x8x8xf32>
    %cst_204 = arith.constant dense<0.000000e+00> : vector<4x8xf32>
    %326 = vector.multi_reduction <add>, %325, %cst_204 [2] : vector<4x8x8xf32> to vector<4x8xf32>
    %327 = vector.shape_cast %326 : vector<4x8xf32> to vector<4x8x1xf32>
    %328 = tpu.reciprocal %327 {approx = true} : vector<4x8x1xf32> -> vector<4x8x1xf32>
    %329 = vector.broadcast %328 : vector<4x8x1xf32> to vector<4x8x8xf32>
    %330 = arith.mulf %325, %329 : vector<4x8x8xf32>
    "tpu.trace_start"() <{level = 10 : i32, message = "hlm,hmk->hlk"}> : () -> ()
    %cst_205 = arith.constant dense<0.000000e+00> : vector<4x8x8xf32>
    %331 = tpu.matmul %330, %316, %cst_205 {dimension_numbers = #tpu.dot_dimension_numbers<[2], [1], [1], [2], [0, 0, 0, 1, 1, 2], [0], [0]>} : vector<4x8x8xf32>, vector<4x8x8xf32>, vector<4x8x8xf32> -> vector<4x8x8xf32>
    "tpu.trace_stop"() : () -> ()
    %c3_206 = arith.constant 3 : index
    %c0_207 = arith.constant 0 : index
    %c0_208 = arith.constant 0 : index
    %c0_209 = arith.constant 0 : index
    %332 = vector.load %arg4[%c3_206, %c0_207, %c0_208, %c0_209] : memref<4x4x8x32xf32, #tpu.memory_space<vmem>>, vector<1x4x8x32xf32>
    %333 = vector.shape_cast %332 : vector<1x4x8x32xf32> to vector<4x8x32xf32>
    "tpu.trace_start"() <{level = 10 : i32, message = "hlk,hkd->hld"}> : () -> ()
    %cst_210 = arith.constant dense<0.000000e+00> : vector<4x8x32xf32>
    %334 = tpu.matmul %331, %333, %cst_210 {dimension_numbers = #tpu.dot_dimension_numbers<[2], [1], [1], [2], [0, 0, 0, 1, 1, 2], [0], [0]>} : vector<4x8x8xf32>, vector<4x8x32xf32>, vector<4x8x32xf32> -> vector<4x8x32xf32>
    "tpu.trace_stop"() : () -> ()
    %cst_211 = arith.constant dense<0.000000e+00> : vector<8x32xf32>
    %335 = vector.multi_reduction <add>, %334, %cst_211 [0] : vector<4x8x32xf32> to vector<8x32xf32>
    %c3_212 = arith.constant 3 : index
    %c0_213 = arith.constant 0 : index
    %c0_214 = arith.constant 0 : index
    %336 = vector.load %arg5[%c3_212, %c0_213, %c0_214] : memref<4x1x32xf32, #tpu.memory_space<vmem>>, vector<1x1x32xf32>
    %337 = vector.shape_cast %336 : vector<1x1x32xf32> to vector<1x32xf32>
    %338 = vector.broadcast %337 : vector<1x32xf32> to vector<8x32xf32>
    %339 = arith.addf %335, %338 : vector<8x32xf32>
    %340 = arith.addf %289, %339 : vector<8x32xf32>
    %cst_215 = arith.constant dense<0.000000e+00> : vector<8xf32>
    %341 = vector.multi_reduction <add>, %340, %cst_215 [1] : vector<8x32xf32> to vector<8xf32>
    %342 = vector.shape_cast %341 : vector<8xf32> to vector<8x1xf32>
    %343 = arith.mulf %340, %340 : vector<8x32xf32>
    %cst_216 = arith.constant dense<0.000000e+00> : vector<8xf32>
    %344 = vector.multi_reduction <add>, %343, %cst_216 [1] : vector<8x32xf32> to vector<8xf32>
    %345 = vector.shape_cast %344 : vector<8xf32> to vector<8x1xf32>
    %cst_217 = arith.constant 3.125000e-02 : f32
    %346 = vector.broadcast %cst_217 : f32 to vector<8x1xf32>
    %347 = arith.mulf %342, %346 : vector<8x1xf32>
    %cst_218 = arith.constant 3.125000e-02 : f32
    %348 = vector.broadcast %cst_218 : f32 to vector<8x1xf32>
    %349 = arith.mulf %345, %348 : vector<8x1xf32>
    %350 = arith.mulf %347, %347 : vector<8x1xf32>
    %351 = arith.subf %349, %350 : vector<8x1xf32>
    %cst_219 = arith.constant 0.000000e+00 : f32
    %352 = vector.broadcast %cst_219 : f32 to vector<8x1xf32>
    %353 = arith.maximumf %351, %352 : vector<8x1xf32>
    %354 = vector.broadcast %347 : vector<8x1xf32> to vector<8x32xf32>
    %355 = arith.subf %340, %354 : vector<8x32xf32>
    %cst_220 = arith.constant 9.99999974E-6 : f32
    %356 = vector.broadcast %cst_220 : f32 to vector<8x1xf32>
    %357 = arith.addf %353, %356 : vector<8x1xf32>
    %358 = math.rsqrt %357 : vector<8x1xf32>
    %359 = vector.broadcast %358 : vector<8x1xf32> to vector<8x32xf32>
    %360 = arith.mulf %355, %359 : vector<8x32xf32>
    %c4_221 = arith.constant 4 : index
    %c0_222 = arith.constant 0 : index
    %c0_223 = arith.constant 0 : index
    %361 = vector.load %arg8[%c4_221, %c0_222, %c0_223] : memref<6x1x32xf32, #tpu.memory_space<vmem>>, vector<1x1x32xf32>
    %362 = vector.shape_cast %361 : vector<1x1x32xf32> to vector<1x32xf32>
    %363 = vector.broadcast %362 : vector<1x32xf32> to vector<8x32xf32>
    %364 = arith.mulf %360, %363 : vector<8x32xf32>
    %c4_224 = arith.constant 4 : index
    %c0_225 = arith.constant 0 : index
    %c0_226 = arith.constant 0 : index
    %365 = vector.load %arg9[%c4_224, %c0_225, %c0_226] : memref<6x1x32xf32, #tpu.memory_space<vmem>>, vector<1x1x32xf32>
    %366 = vector.shape_cast %365 : vector<1x1x32xf32> to vector<1x32xf32>
    %367 = vector.broadcast %366 : vector<1x32xf32> to vector<8x32xf32>
    %368 = arith.addf %364, %367 : vector<8x32xf32>
    %c2_227 = arith.constant 2 : index
    %c0_228 = arith.constant 0 : index
    %c0_229 = arith.constant 0 : index
    %369 = vector.load %arg6[%c2_227, %c0_228, %c0_229] : memref<4x32x32xf32, #tpu.memory_space<vmem>>, vector<1x32x32xf32>
    %370 = vector.shape_cast %369 : vector<1x32x32xf32> to vector<32x32xf32>
    %cst_230 = arith.constant dense<0.000000e+00> : vector<8x32xf32>
    %371 = tpu.matmul %368, %370, %cst_230 {dimension_numbers = #tpu.dot_dimension_numbers<[1], [0], [0], [1], [0, 0, 1, 1], [], []>} : vector<8x32xf32>, vector<32x32xf32>, vector<8x32xf32> -> vector<8x32xf32>
    %c2_231 = arith.constant 2 : index
    %c0_232 = arith.constant 0 : index
    %c0_233 = arith.constant 0 : index
    %372 = vector.load %arg7[%c2_231, %c0_232, %c0_233] : memref<4x1x32xf32, #tpu.memory_space<vmem>>, vector<1x1x32xf32>
    %373 = vector.shape_cast %372 : vector<1x1x32xf32> to vector<1x32xf32>
    %374 = vector.broadcast %373 : vector<1x32xf32> to vector<8x32xf32>
    %375 = arith.addf %371, %374 : vector<8x32xf32>
    %cst_234 = arith.constant 0.000000e+00 : f32
    %376 = vector.broadcast %cst_234 : f32 to vector<8x32xf32>
    %377 = arith.maximumf %375, %376 : vector<8x32xf32>
    %c3_235 = arith.constant 3 : index
    %c0_236 = arith.constant 0 : index
    %c0_237 = arith.constant 0 : index
    %378 = vector.load %arg6[%c3_235, %c0_236, %c0_237] : memref<4x32x32xf32, #tpu.memory_space<vmem>>, vector<1x32x32xf32>
    %379 = vector.shape_cast %378 : vector<1x32x32xf32> to vector<32x32xf32>
    %cst_238 = arith.constant dense<0.000000e+00> : vector<8x32xf32>
    %380 = tpu.matmul %377, %379, %cst_238 {dimension_numbers = #tpu.dot_dimension_numbers<[1], [0], [0], [1], [0, 0, 1, 1], [], []>} : vector<8x32xf32>, vector<32x32xf32>, vector<8x32xf32> -> vector<8x32xf32>
    %c3_239 = arith.constant 3 : index
    %c0_240 = arith.constant 0 : index
    %c0_241 = arith.constant 0 : index
    %381 = vector.load %arg7[%c3_239, %c0_240, %c0_241] : memref<4x1x32xf32, #tpu.memory_space<vmem>>, vector<1x1x32xf32>
    %382 = vector.shape_cast %381 : vector<1x1x32xf32> to vector<1x32xf32>
    %383 = vector.broadcast %382 : vector<1x32xf32> to vector<8x32xf32>
    %384 = arith.addf %380, %383 : vector<8x32xf32>
    %385 = arith.addf %368, %384 : vector<8x32xf32>
    %cst_242 = arith.constant dense<0.000000e+00> : vector<8xf32>
    %386 = vector.multi_reduction <add>, %385, %cst_242 [1] : vector<8x32xf32> to vector<8xf32>
    %387 = vector.shape_cast %386 : vector<8xf32> to vector<8x1xf32>
    %388 = arith.mulf %385, %385 : vector<8x32xf32>
    %cst_243 = arith.constant dense<0.000000e+00> : vector<8xf32>
    %389 = vector.multi_reduction <add>, %388, %cst_243 [1] : vector<8x32xf32> to vector<8xf32>
    %390 = vector.shape_cast %389 : vector<8xf32> to vector<8x1xf32>
    %cst_244 = arith.constant 3.125000e-02 : f32
    %391 = vector.broadcast %cst_244 : f32 to vector<8x1xf32>
    %392 = arith.mulf %387, %391 : vector<8x1xf32>
    %cst_245 = arith.constant 3.125000e-02 : f32
    %393 = vector.broadcast %cst_245 : f32 to vector<8x1xf32>
    %394 = arith.mulf %390, %393 : vector<8x1xf32>
    %395 = arith.mulf %392, %392 : vector<8x1xf32>
    %396 = arith.subf %394, %395 : vector<8x1xf32>
    %cst_246 = arith.constant 0.000000e+00 : f32
    %397 = vector.broadcast %cst_246 : f32 to vector<8x1xf32>
    %398 = arith.maximumf %396, %397 : vector<8x1xf32>
    %399 = vector.broadcast %392 : vector<8x1xf32> to vector<8x32xf32>
    %400 = arith.subf %385, %399 : vector<8x32xf32>
    %cst_247 = arith.constant 9.99999974E-6 : f32
    %401 = vector.broadcast %cst_247 : f32 to vector<8x1xf32>
    %402 = arith.addf %398, %401 : vector<8x1xf32>
    %403 = math.rsqrt %402 : vector<8x1xf32>
    %404 = vector.broadcast %403 : vector<8x1xf32> to vector<8x32xf32>
    %405 = arith.mulf %400, %404 : vector<8x32xf32>
    %c5_248 = arith.constant 5 : index
    %c0_249 = arith.constant 0 : index
    %c0_250 = arith.constant 0 : index
    %406 = vector.load %arg8[%c5_248, %c0_249, %c0_250] : memref<6x1x32xf32, #tpu.memory_space<vmem>>, vector<1x1x32xf32>
    %407 = vector.shape_cast %406 : vector<1x1x32xf32> to vector<1x32xf32>
    %408 = vector.broadcast %407 : vector<1x32xf32> to vector<8x32xf32>
    %409 = arith.mulf %405, %408 : vector<8x32xf32>
    %c5_251 = arith.constant 5 : index
    %c0_252 = arith.constant 0 : index
    %c0_253 = arith.constant 0 : index
    %410 = vector.load %arg9[%c5_251, %c0_252, %c0_253] : memref<6x1x32xf32, #tpu.memory_space<vmem>>, vector<1x1x32xf32>
    %411 = vector.shape_cast %410 : vector<1x1x32xf32> to vector<1x32xf32>
    %412 = vector.broadcast %411 : vector<1x32xf32> to vector<8x32xf32>
    %413 = arith.addf %409, %412 : vector<8x32xf32>
    %c0_254 = arith.constant 0 : index
    %c0_255 = arith.constant 0 : index
    %c0_256 = arith.constant 0 : index
    %414 = vector.load %arg10[%c0_254, %c0_255, %c0_256] : memref<1x8x32xf32, #tpu.memory_space<vmem>>, vector<1x8x32xf32>
    %415 = vector.shape_cast %414 : vector<1x8x32xf32> to vector<8x32xf32>
    %416 = vector.shape_cast %413 : vector<8x32xf32> to vector<1x8x32xf32>
    tpu.vector_store %arg10[%c0_254, %c0_255, %c0_256], %416 {strides = array<i32>} : memref<1x8x32xf32, #tpu.memory_space<vmem>>, vector<1x8x32xf32>,
    return
  }
  func.func @transform_0(%arg0: i32) -> (i32, i32, i32) {
    %c0_i32 = arith.constant 0 : i32
    %c0_i32_0 = arith.constant 0 : i32
    %c0_i32_1 = arith.constant 0 : i32
    return %arg0, %c0_i32, %c0_i32_0 : i32, i32, i32
  }
  func.func @transform_1(%arg0: i32) -> (i32, i32, i32, i32) {
    %c0_i32 = arith.constant 0 : i32
    %c0_i32_0 = arith.constant 0 : i32
    %c0_i32_1 = arith.constant 0 : i32
    %c0_i32_2 = arith.constant 0 : i32
    %c0_i32_3 = arith.constant 0 : i32
    return %c0_i32, %c0_i32_0, %c0_i32_1, %c0_i32_2 : i32, i32, i32, i32
  }
  func.func @transform_2(%arg0: i32) -> (i32, i32, i32, i32) {
    %c0_i32 = arith.constant 0 : i32
    %c0_i32_0 = arith.constant 0 : i32
    %c0_i32_1 = arith.constant 0 : i32
    %c0_i32_2 = arith.constant 0 : i32
    %c0_i32_3 = arith.constant 0 : i32
    return %c0_i32, %c0_i32_0, %c0_i32_1, %c0_i32_2 : i32, i32, i32, i32
  }
  func.func @transform_3(%arg0: i32) -> (i32, i32, i32, i32) {
    %c0_i32 = arith.constant 0 : i32
    %c0_i32_0 = arith.constant 0 : i32
    %c0_i32_1 = arith.constant 0 : i32
    %c0_i32_2 = arith.constant 0 : i32
    %c0_i32_3 = arith.constant 0 : i32
    return %c0_i32, %c0_i32_0, %c0_i32_1, %c0_i32_2 : i32, i32, i32, i32
  }
  func.func @transform_4(%arg0: i32) -> (i32, i32, i32) {
    %c0_i32 = arith.constant 0 : i32
    %c0_i32_0 = arith.constant 0 : i32
    %c0_i32_1 = arith.constant 0 : i32
    %c0_i32_2 = arith.constant 0 : i32
    return %c0_i32, %c0_i32_0, %c0_i32_1 : i32, i32, i32
  }
  func.func @transform_5(%arg0: i32) -> (i32, i32, i32) {
    %c0_i32 = arith.constant 0 : i32
    %c0_i32_0 = arith.constant 0 : i32
    %c0_i32_1 = arith.constant 0 : i32
    %c0_i32_2 = arith.constant 0 : i32
    return %c0_i32, %c0_i32_0, %c0_i32_1 : i32, i32, i32
  }
  func.func @transform_6(%arg0: i32) -> (i32, i32, i32) {
    %c0_i32 = arith.constant 0 : i32
    %c0_i32_0 = arith.constant 0 : i32
    %c0_i32_1 = arith.constant 0 : i32
    %c0_i32_2 = arith.constant 0 : i32
    return %c0_i32, %c0_i32_0, %c0_i32_1 : i32, i32, i32
  }
  func.func @transform_7(%arg0: i32) -> (i32, i32, i32) {
    %c0_i32 = arith.constant 0 : i32
    %c0_i32_0 = arith.constant 0 : i32
    %c0_i32_1 = arith.constant 0 : i32
    %c0_i32_2 = arith.constant 0 : i32
    return %c0_i32, %c0_i32_0, %c0_i32_1 : i32, i32, i32
  }
  func.func @transform_8(%arg0: i32) -> (i32, i32, i32) {
    %c0_i32 = arith.constant 0 : i32
    %c0_i32_0 = arith.constant 0 : i32
    %c0_i32_1 = arith.constant 0 : i32
    %c0_i32_2 = arith.constant 0 : i32
    return %c0_i32, %c0_i32_0, %c0_i32_1 : i32, i32, i32
  }
  func.func @transform_9(%arg0: i32) -> (i32, i32, i32) {
    %c0_i32 = arith.constant 0 : i32
    %c0_i32_0 = arith.constant 0 : i32
    %c0_i32_1 = arith.constant 0 : i32
    return %arg0, %c0_i32, %c0_i32_0 : i32, i32, i32
  }
}

</mosaic_0001>

<bundles_post_ra>
// kernel: bert_kt_shuffle_forward.1
= control target key start
LH: loop header
LB: loop body
LE: loop exit
PB: predicated region body
PF: predicated region fallthrough
CT: control target
= control target key end

     0   :  { %14 = vsyncpa [#allocation3], 0  ;;  %s12491_s0 = inlined_call_operand.vmem [shape: f32[2,8,32], index: 0, kind: input, shape index: {}]   ;;  %s12492_s1 = inlined_call_operand.vmem [shape: f32[12,4,32,8], index: 1, kind: input, shape index: {}]   ;;  %s12493_s2 = inlined_call_operand.vmem [shape: f32[12,4,1,8], index: 2, kind: input, shape index: {}]   ;;  %s12494_s3 = inlined_call_operand.vmem [shape: f32[4,4,8,32], index: 3, kind: input, shape index: {}]   ;;  %s12495_s4 = inlined_call_operand.vmem [shape: f32[4,1,32], index: 4, kind: input, shape index: {}]   ;;  %s12496_s5 = inlined_call_operand.vmem [shape: f32[4,32,32], index: 5, kind: input, shape index: {}]   ;;  %s12497_s6 = inlined_call_operand.vmem [shape: f32[4,1,32], index: 6, kind: input, shape index: {}]   ;;  %s12498_s7 = inlined_call_operand.vmem [shape: f32[6,1,32], index: 7, kind: input, shape index: {}]   ;;  %s12499_s8 = inlined_call_operand.vmem [shape: f32[6,1,32], index: 8, kind: input, shape index: {}]   ;;  %s12500_s9 = inlined_call_operand.hbm [shape: f32[2,8,32], index: 9, kind: output, shape index: {}]  }
   0x1   :  { %16 = vsyncpa [#allocation3 + $0x1], 0  ;;  %s10865_s30 = smov 0   ;;  %s10867_s10 = smov 0  }
   0x2   :  { %s10869_s11 = smov 0   ;;  %s10871_s12 = smov 0  }
   0x3 LB: > { %s10886_s13 = sadd.s32 4294967295, %s10809_s12   ;;  %s8695_s14 = sadd.s32 4294967294, %s10809_s12   ;;  %s10809_s12 = sphi %s10871_s12, %s12506_s12   ;;  %s10805_s11 = sphi %s10869_s11, %s12505_s11   ;;  %s10801_s10 = sphi %s10867_s10, %s12504_s10   ;;  %s10797_s30 = sphi %s10865_s30, %s12503_s30  }
   0x4   : > { %s10890_s15 = sadd.s32 1, %s10809_s12   ;;  %s223_s16 = sadd.s32 1, %s10805_s11 }
   0x5   : > { %s220_s17 = ssub.s32 %s10809_s12, %s10890_s15  ;;  %p233_p0 = scmp.ne.s32.totalorder %s10805_s11, %s10801_s10 }
   0x6   : > { %p221_p1 = scmp.eq.s32.totalorder %s220_s17, 0  ;;  %p234_p2 = scmp.eq.s32.totalorder %s10886_s13, 1 }
   0x7   : > { %p239_p3 = scmp.ne.s32.totalorder %s10801_s10, %s10797_s30  ;;  %p240_p4 = scmp.eq.s32.totalorder %s8695_s14, 1 }
   0x8   : > { %s10901_s18 = scalar_select %p221_p1, %s10805_s11, %s223_s16  }
   0x9   : > { %p10903_p5 = por %p234_p2, %p233_p0  ;;  %p10907_p6 = por %p240_p4, %p239_p3 }
   0xa   : > { %p8698_p7 = scmp.ge.s32.totalorder %s10809_s12, 1  ;;  %p289_p8 = scmp.lt.s32.totalorder %s10809_s12, 3 }
   0xc   : > { %p290_p9 = pnand %p8698_p7, %p289_p8 }
   0xd   : > { %v335_v0 = vld [vmem:[%s12492_s1] sm:$0xff] (!%p290_p9)  ;;  %v336_v1 = vld [vmem:[%s12492_s1 + $0x8] sm:$0xff] (!%p290_p9)  ;;  %v10811_v3 = vmov (!%p290_p9), 0.0|0.0   ;;  %v337_v6 = vld [vmem:[%s12492_s1 + $0x10] sm:$0xff] (!%p290_p9)  ;;  %p324_p10 = scmp.lt.s32.totalorder (!%p290_p9), %s10886_s13, 1  ;;  %vm10812_vm0 = vmmov (!%p290_p9), 0  }
   0xe   : > { %293 = sbr.rel (%p290_p9) target bundleno = 6705 (0x1a31), region = 56  ;;  %v339_v2 = vld [vmem:[%s12492_s1 + $0x20] sm:$0xff] (!%p290_p9)  ;;  %10317 = vmatprep.subr.bf16.mxu0 (!%p290_p9), %v10811_v3  ;;  %10323 = vmatprep.subr.bf16.mxu1 (!%p290_p9), %v10811_v3  ;;  %v10318_v4 = vpack.c.bf16 (!%p290_p9), %v336_v1, %v335_v0  ;;  %v340_v5 = vld [vmem:[%s12492_s1 + $0x28] sm:$0xff] (!%p290_p9)  ;;  %v338_v7 = vld [vmem:[%s12492_s1 + $0x18] sm:$0xff] (!%p290_p9)  ;;  %v10813_v11 = vmov (!%p290_p9), 0.0   ;;  %vm379_vm1 = vcmask (!%p290_p9), 261120  }
   0xf   : > { %v10324_v8 = vpack.c.bf16 (!%p290_p9), %v340_v5, %v339_v2  ;;  %v341_v9 = vld [vmem:[%s12492_s1 + $0x30] sm:$0xff] (!%p290_p9)  ;;  %v342_v10 = vld [vmem:[%s12492_s1 + $0x38] sm:$0xff] (!%p290_p9)  ;;  %9513 = vmatprep.mubr.msk.f32.mxu0 (!%p290_p9), %vm10812_vm0, %v10813_v11  ;;  %9524 = vmatprep.mubr.msk.f32.mxu1 (!%p290_p9), %vm10812_vm0, %v10813_v11  ;;  %v10321_v12 = vpack.c.bf16 (!%p290_p9), %v338_v7, %v337_v6  ;;  %v343_v14 = vld [vmem:[%s12492_s1 + $0x40] sm:$0xff] (!%p290_p9)  ;;  %vm1315_vm2 = vcmask (!%p290_p9), 64512   ;;  %s9146_s24 = sshll.u32 (!%p290_p9), %s10886_s13, 7 }
  0x10   : > { %10319 = vmatpush3.bf16.msra.mxu0 (!%p290_p9), %v10318_v4  ;;  %v10327_v13 = vpack.c.bf16 (!%p290_p9), %v342_v10, %v341_v9  ;;  %v344_v15 = vld [vmem:[%s12492_s1 + $0x48] sm:$0xff] (!%p290_p9)  ;;  %v347_v16 = vld [vmem:[%s12492_s1 + $0x60] sm:$0xff] (!%p290_p9)  ;;  %v345_v21 = vld [vmem:[%s12492_s1 + $0x50] sm:$0xff] (!%p290_p9)  ;;  %s12448_s29 = scalar_lea.hbm (!%p290_p9), %s12500_s9, %s9146_s24 }
  0x11   : > { %10325 = vmatpush3.bf16.msra.mxu1 (!%p290_p9), %v10324_v8  ;;  %10320 = vmatprep.subr.bf16.mxu0 (!%p290_p9), %v10811_v3  ;;  %v348_v17 = vld [vmem:[%s12492_s1 + $0x68] sm:$0xff] (!%p290_p9)  ;;  %v10330_v19 = vpack.c.bf16 (!%p290_p9), %v344_v15, %v343_v14  ;;  %v346_v22 = vld [vmem:[%s12492_s1 + $0x58] sm:$0xff] (!%p290_p9)  ;;  %v349_v23 = vld [vmem:[%s12492_s1 + $0x70] sm:$0xff] (!%p290_p9) }
  0x12   : > { %10326 = vmatprep.subr.bf16.mxu1 (!%p290_p9), %v10811_v3  ;;  %v10336_v20 = vpack.c.bf16 (!%p290_p9), %v348_v17, %v347_v16  ;;  %v350_v24 = vld [vmem:[%s12492_s1 + $0x78] sm:$0xff] (!%p290_p9)  ;;  %v10333_v25 = vpack.c.bf16 (!%p290_p9), %v346_v22, %v345_v21  ;;  %v8709_v27 = vld [vmem:[%s12492_s1 + $0x80] sm:$0xff] (!%p290_p9)  ;;  %v8710_v28 = vld [vmem:[%s12492_s1 + $0x88] sm:$0xff] (!%p290_p9) }
  0x13   : > { %v10339_v26 = vpack.c.bf16 (!%p290_p9), %v350_v24, %v349_v23  ;;  %v8713_v29 = vld [vmem:[%s12492_s1 + $0xa0] sm:$0xff] (!%p290_p9)  ;;  %v8714_v30 = vld [vmem:[%s12492_s1 + $0xa8] sm:$0xff] (!%p290_p9)  ;;  %v10342_v31 = vpack.c.bf16 (!%p290_p9), %v8710_v28, %v8709_v27  ;;  %v8711_v33 = vld [vmem:[%s12492_s1 + $0x90] sm:$0xff] (!%p290_p9) }
  0x14   : > { %10322 = vmatpush3.bf16.msra.mxu0 (!%p290_p9), %v10321_v12  ;;  %v10348_v32 = vpack.c.bf16 (!%p290_p9), %v8714_v30, %v8713_v29  ;;  %v8712_v34 = vld [vmem:[%s12492_s1 + $0x98] sm:$0xff] (!%p290_p9)  ;;  %v8715_v35 = vld [vmem:[%s12492_s1 + $0xb0] sm:$0xff] (!%p290_p9)  ;;  %v8717_v39 = vld [vmem:[%s12492_s1 + $0xc0] sm:$0xff] (!%p290_p9) }
  0x15   : > { %s325_s25 = scalar_select %p324_p10, %s10886_s13, 1  ;;  %10328 = vmatpush3.bf16.msra.mxu1 %v10327_v13  ;;  %10329 = vmatprep.subr.bf16.mxu0 %v10811_v3  ;;  %v8716_v36 = vld [vmem:[%s12492_s1 + $0xb8] sm:$0xff]  ;;  %v10345_v37 = vpack.c.bf16 %v8712_v34, %v8711_v33  ;;  %v8718_v40 = vld [vmem:[%s12492_s1 + $0xc8] sm:$0xff]  ;;  %v8721_v41 = vld [vmem:[%s12492_s1 + $0xe0] sm:$0xff] }
  0x16   : > { %10335 = vmatprep.subr.bf16.mxu1 %v10811_v3  ;;  %v10351_v38 = vpack.c.bf16 %v8716_v36, %v8715_v35  ;;  %v8722_v42 = vld [vmem:[%s12492_s1 + $0xe8] sm:$0xff]  ;;  %v10354_v43 = vpack.c.bf16 %v8718_v40, %v8717_v39  ;;  %v8719_v45 = vld [vmem:[%s12492_s1 + $0xd0] sm:$0xff]  ;;  %v8720_v46 = vld [vmem:[%s12492_s1 + $0xd8] sm:$0xff]  ;;  %s10814_s13 = smov [#allocation2]  }
  0x17   : > { %s8700_s14 = sshll.u32 %s325_s25, 3  ;;  %v10360_v44 = vpack.c.bf16 %v8722_v42, %v8721_v41  ;;  %v8723_v47 = vld [vmem:[%s12492_s1 + $0xf0] sm:$0xff]  ;;  %v8724_v48 = vld [vmem:[%s12492_s1 + $0xf8] sm:$0xff]  ;;  %v10357_v49 = vpack.c.bf16 %v8720_v46, %v8719_v45  ;;  %v8737_v51 = vld [vmem:[%s12492_s1 + $0x100] sm:$0xff] }
  0x18   : > { %s327_s26 = scalar_lea.vmem %s12491_s0, %s8700_s14  ;;  %v10363_v50 = vpack.c.bf16 %v8724_v48, %v8723_v47  ;;  %v8738_v52 = vld [vmem:[%s12492_s1 + $0x108] sm:$0xff]  ;;  %v8741_v53 = vld [vmem:[%s12492_s1 + $0x120] sm:$0xff]  ;;  %v8739_v57 = vld [vmem:[%s12492_s1 + $0x110] sm:$0xff]  ;;  %s321_s14 = sand.u32 1, %s10801_s10  }
  0x19   : > { %v10962_v18 = vld [vmem:[%s327_s26] sm:$0xff]  ;;  %v8742_v54 = vld [vmem:[%s12492_s1 + $0x128] sm:$0xff]  ;;  %v10366_v55 = vpack.c.bf16 %v8738_v52, %v8737_v51  ;;  %v8740_v58 = vld [vmem:[%s12492_s1 + $0x118] sm:$0xff]  ;;  %s8699_s16 = sshll.u32 %s321_s14, 3  ;;  %s8623_s17 = scalar_lea.sflag [#allocation3], %s321_s14 }
  0x1a   : > { %9514 = vmatmul.mubr.msk.f32.vlgmr.msra.gmra.mrb[0].mxu0 %vm379_vm1, %v10962_v18  ;;  %9525 = vmatmul.mubr.msk.f32.vlgmr.msra.gmra.mrb[0].mxu1 %vm379_vm1, %v10962_v18  ;;  %v10372_v56 = vpack.c.bf16 %v8742_v54, %v8741_v53  ;;  %v8743_v59 = vld [vmem:[%s12492_s1 + $0x130] sm:$0xff]  ;;  %v10369_v60 = vpack.c.bf16 %v8740_v58, %v8739_v57  ;;  %v8744_v61 = vld [vmem:[%s12492_s1 + $0x138] sm:$0xff]  ;;  %v8745_v63 = vld [vmem:[%s12492_s1 + $0x140] sm:$0xff]  ;;  %v329_v58 = vlaneseq  ;;  %s323_s26 = scalar_lea.vmem [#allocation2], %s8699_s16  ;;  %s10751_s16 = sshll.u32 %s10814_s13, 4  ;;  %s10752_s16 = int_to_ptr.vmem [resolvable:$false] %s10751_s16 }
  0x1b   : > { %10331 = vmatpush3.bf16.msra.mxu0 %v10330_v19  ;;  %10337 = vmatpush3.bf16.msra.mxu1 %v10336_v20  ;;  %v10375_v62 = vpack.c.bf16 %v8744_v61, %v8743_v59  ;;  %v8746_v0 = vld [vmem:[%s12492_s1 + $0x148] sm:$0xff]  ;;  %v8749_v1 = vld [vmem:[%s12492_s1 + $0x160] sm:$0xff]  ;;  %v8747_v6 = vld [vmem:[%s12492_s1 + $0x150] sm:$0xff]  ;;  %s8636_s25 = sshll.u32 %s323_s26, 4  ;;  %s10753_s22 = scalar_lea.vmem %s10752_s16, 256  ;;  %s12450_s25 = int_to_ptr.vmem [resolvable:$true] %s8636_s25 }
  0x1c   : > { %10332 = vmatprep.subr.bf16.mxu0 %v10811_v3  ;;  %10338 = vmatprep.subr.bf16.mxu1 %v10811_v3  ;;  %v10378_v2 = vpack.c.bf16 %v8746_v0, %v8745_v63  ;;  %v8750_v4 = vld [vmem:[%s12492_s1 + $0x168] sm:$0xff]  ;;  %v8748_v7 = vld [vmem:[%s12492_s1 + $0x158] sm:$0xff]  ;;  %v8751_v8 = vld [vmem:[%s12492_s1 + $0x170] sm:$0xff]  ;;  %v330_v59 = vshrl.u32 %v329_v58, 7  ;;  %s10747_s21 = scalar_lea.vmem %s12450_s25, 128  ;;  %p10754_p0 = scmp.lt.s32.totalorder %s12450_s25, %s10752_s16 }
  0x1d   : > { %9535 = vmatprep.mubr.msk.f32.mxu0 %vm10812_vm0, %v10813_v11  ;;  %9546 = vmatprep.mubr.msk.f32.mxu1 %vm10812_vm0, %v10813_v11  ;;  %v10384_v5 = vpack.c.bf16 %v8750_v4, %v8749_v1  ;;  %v10381_v9 = vpack.c.bf16 %v8748_v7, %v8747_v6  ;;  %v8752_v10 = vld [vmem:[%s12492_s1 + $0x178] sm:$0xff]  ;;  %v8729_v22 = vld [vmem:[%s12493_s2 + $0x4] ss:$0 sm:$0xff]  ;;  %v8730_v23 = vld [vmem:[%s12493_s2 + $0x5] ss:$0 sm:$0xff]  ;;  %p10748_p11 = scmp.ne.s32.totalorder %s12450_s25, %s10747_s21  ;;  %p10755_p1 = scmp.lt.s32.totalorder %s10753_s22, %s10747_s21 }
  0x1e   : > { %v10387_v12 = vpack.c.bf16 %v8752_v10, %v8751_v8  ;;  %v8702_v29 = vld [vmem:[%s12493_s2 + $0x1] ss:$0 sm:$0xff]  ;;  %v8731_v34 = vld [vmem:[%s12493_s2 + $0x6] ss:$0 sm:$0xff]  ;;  %v8732_v35 = vld [vmem:[%s12493_s2 + $0x7] ss:$0 sm:$0xff] }
  0x1f   : > { %10334 = vmatpush3.bf16.msra.mxu0 %v10333_v25  ;;  %10340 = vmatpush3.bf16.msra.mxu1 %v10339_v26  ;;  %v8701_v25 = vld [vmem:[%s12493_s2] ss:$0 sm:$0xff]  ;;  %v8704_v41 = vld [vmem:[%s12493_s2 + $0x3] ss:$0 sm:$0xff]  ;;  %v8757_v46 = vld [vmem:[%s12493_s2 + $0x8] ss:$0 sm:$0xff]  ;;  %p10749_p12 = pnand %p10748_p11, %p10903_p5  ;;  %p10756_p2 = por %p10755_p1, %p10754_p0 }
  0x20   : > { %10341 = vmatprep.subr.bf16.mxu0 %v10811_v3  ;;  %10347 = vmatprep.subr.bf16.mxu1 %v10811_v3  ;;  %v8758_v47 = vld [vmem:[%s12493_s2 + $0x9] ss:$0 sm:$0xff] }
  0x21   : > { %p10750_p13 = pneg %p10749_p12 }
  0x22   : > { %9536 = vmatmul.mubr.msk.f32.vlgmr.msra.gmra.mrb[2].mxu0 %vm379_vm1, %v10962_v18  ;;  %9547 = vmatmul.mubr.msk.f32.vlgmr.msra.gmra.mrb[2].mxu1 %vm379_vm1, %v10962_v18 }
  0x23   : > { %10343 = vmatpush3.bf16.msra.mxu0 %v10342_v31  ;;  %10349 = vmatpush3.bf16.msra.mxu1 %v10348_v32  ;;  %p10757_p3 = pnand %p10756_p2, %p10750_p13 }
  0x24   : > { %10344 = vmatprep.subr.bf16.mxu0 %v10811_v3  ;;  %10350 = vmatprep.subr.bf16.mxu1 %v10811_v3 }
  0x25   : > { %9557 = vmatprep.mubr.msk.f32.mxu0 %vm10812_vm0, %v10813_v11  ;;  %9568 = vmatprep.mubr.msk.f32.mxu1 %vm10812_vm0, %v10813_v11 }
  0x27   : > { %10346 = vmatpush3.bf16.msra.mxu0 %v10345_v37  ;;  %10352 = vmatpush3.bf16.msra.mxu1 %v10351_v38  ;;  %v8703_v37 = vld [vmem:[%s12493_s2 + $0x2] ss:$0 sm:$0xff] }
  0x28   : > { %10353 = vmatprep.subr.bf16.mxu0 %v10811_v3  ;;  %10359 = vmatprep.subr.bf16.mxu1 %v10811_v3 }
  0x2a   : > { %9558 = vmatmul.mubr.msk.f32.vlgmr.msra.gmra.mrb[4].mxu0 %vm379_vm1, %v10962_v18  ;;  %9569 = vmatmul.mubr.msk.f32.vlgmr.msra.gmra.mrb[4].mxu1 %vm379_vm1, %v10962_v18 }
  0x2b   : > { %10355 = vmatpush3.bf16.msra.mxu0 %v10354_v43  ;;  %10361 = vmatpush3.bf16.msra.mxu1 %v10360_v44 }
  0x2c   : > { %10356 = vmatprep.subr.bf16.mxu0 %v10811_v3  ;;  %10362 = vmatprep.subr.bf16.mxu1 %v10811_v3 }
  0x2d   : > { %9579 = vmatprep.mubr.msk.f32.mxu0 %vm10812_vm0, %v10813_v11  ;;  %9590 = vmatprep.mubr.msk.f32.mxu1 %vm10812_vm0, %v10813_v11 }
  0x2f   : > { %10358 = vmatpush3.bf16.msra.mxu0 %v10357_v49  ;;  %10364 = vmatpush3.bf16.msra.mxu1 %v10363_v50 }
  0x30   : > { %10365 = vmatprep.subr.bf16.mxu0 %v10811_v3  ;;  %10371 = vmatprep.subr.bf16.mxu1 %v10811_v3 }
  0x32   : > { %9580 = vmatmul.mubr.msk.f32.vlgmr.msra.gmra.mrb[6].mxu0 %vm379_vm1, %v10962_v18  ;;  %9591 = vmatmul.mubr.msk.f32.vlgmr.msra.gmra.mrb[6].mxu1 %vm379_vm1, %v10962_v18 }
  0x33   : > { %10367 = vmatpush3.bf16.msra.mxu0 %v10366_v55  ;;  %10373 = vmatpush3.bf16.msra.mxu1 %v10372_v56 }
  0x34   : > { %10368 = vmatprep.subr.bf16.mxu0 %v10811_v3  ;;  %10374 = vmatprep.subr.bf16.mxu1 %v10811_v3 }
  0x35   : > { %9601 = vmatprep.mubr.msk.f32.mxu0 %vm10812_vm0, %v10813_v11  ;;  %9612 = vmatprep.mubr.msk.f32.mxu1 %vm10812_vm0, %v10813_v11 }
  0x37   : > { %10370 = vmatpush3.bf16.msra.mxu0 %v10369_v60  ;;  %10376 = vmatpush3.bf16.msra.mxu1 %v10375_v62  ;;  %v332_v60 = vand.u32 127, %v329_v58  ;;  %v1959_v58 = vld [vmem:[%s12494_s3 + $0x18] sm:$0xff] }
  0x38   : > { %10377 = vmatprep.subr.bf16.mxu0 %v10811_v3  ;;  %10383 = vmatprep.subr.bf16.mxu1 %v10811_v3 }
  0x39   : > { %vm333_vm3 = vcmp.gt.s32.totalorder %v332_v60, %v330_v59 }
  0x3a   : > { %9602 = vmatmul.mubr.msk.f32.vlgmr.msra.gmra.mrb[8].mxu0 %vm379_vm1, %v10962_v18  ;;  %9613 = vmatmul.mubr.msk.f32.vlgmr.msra.gmra.mrb[8].mxu1 %vm379_vm1, %v10962_v18  ;;  %v11199_v61 = vsel %vm333_vm3, -1e+09, %v10813_v11 }
  0x3b   : > { %10379 = vmatpush3.bf16.msra.mxu0 %v10378_v2  ;;  %10385 = vmatpush3.bf16.msra.mxu1 %v10384_v5 }
  0x3c   : > { %10380 = vmatprep.subr.bf16.mxu0 %v10811_v3  ;;  %10386 = vmatprep.subr.bf16.mxu1 %v10811_v3 }
  0x3d   : > { %9623 = vmatprep.mubr.msk.f32.mxu0 %vm10812_vm0, %v10813_v11  ;;  %9634 = vmatprep.mubr.msk.f32.mxu1 %vm10812_vm0, %v10813_v11 }
  0x3f   : > { %10382 = vmatpush3.bf16.msra.mxu0 %v10381_v9  ;;  %10388 = vmatpush3.bf16.msra.mxu1 %v10387_v12 }
  0x40   : > { %9637 = vmatprep.subr.mxu0 %v10813_v11  ;;  %9642 = vmatprep.subr.mxu1 %v10813_v11 }
  0x42   : > { %9624 = vmatmul.mubr.msk.f32.vlgmr.msra.gmra.mrb[10].mxu0 %vm379_vm1, %v10962_v18  ;;  %9635 = vmatmul.mubr.msk.f32.vlgmr.msra.gmra.mrb[10].mxu1 %vm379_vm1, %v10962_v18 }
  0x43   : > { %9639 = vmatprep.mubr.msk.f32.mxu0 %vm10812_vm0, %v10813_v11  ;;  %9644 = vmatprep.mubr.msk.f32.mxu1 %vm10812_vm0, %v10813_v11 }
  0xed   : > { %v449_v13 = vpop.f32.mrb[0].mxu0  ;;  %v519_v15 = vpop.f32.mrb[0].mxu1 }
  0xee   : > { %v9515_v14 = vpop.f32.mrb[1].mxu0  ;;  %v9526_v16 = vpop.f32.mrb[1].mxu1  ;;  %v450_v32 = vadd.f32 %v8701_v25, %v449_v13  ;;  %v520_v33 = vadd.f32 %v8702_v29, %v519_v15 }
  0xf5   : > { %v589_v17 = vpop.f32.mrb[2].mxu0  ;;  %v659_v20 = vpop.f32.mrb[2].mxu1 }
  0xf6   : > { %v9537_v19 = vpop.f32.mrb[3].mxu0  ;;  %v9548_v21 = vpop.f32.mrb[3].mxu1  ;;  %v590_v44 = vadd.f32 %v8703_v37, %v589_v17  ;;  %v660_v45 = vadd.f32 %v8704_v41, %v659_v20 }
  0xfd   : > { %v775_v24 = vpop.f32.mrb[4].mxu0  ;;  %v845_v27 = vpop.f32.mrb[4].mxu1 }
  0xfe   : > { %v776_v26 = vadd.f32 %v8729_v22, %v775_v24  ;;  %v9559_v28 = vpop.f32.mrb[5].mxu0  ;;  %v846_v30 = vadd.f32 %v8730_v23, %v845_v27  ;;  %v9570_v31 = vpop.f32.mrb[5].mxu1 }
 0x100   : > { %9638 = vmatpush3.xpose.msk.msra.mxu0 %vm1315_vm2, %v776_v26  ;;  %9643 = vmatpush3.xpose.msk.msra.mxu1 %vm1315_vm2, %v846_v30 }
 0x101   : > { %9647 = vmatprep.subr.mxu0 %v10813_v11  ;;  %9652 = vmatprep.subr.mxu1 %v10813_v11 }
 0x103   : > { %9640 = vmatmul.mubr.msk.f32.vlgmr.msra.gmra.mrb[12].mxu0 %vm1315_vm2, %v450_v32  ;;  %9645 = vmatmul.mubr.msk.f32.vlgmr.msra.gmra.mrb[12].mxu1 %vm1315_vm2, %v520_v33 }
 0x104   : > { %9649 = vmatprep.mubr.msk.f32.mxu0 %vm10812_vm0, %v10813_v11  ;;  %9654 = vmatprep.mubr.msk.f32.mxu1 %vm10812_vm0, %v10813_v11 }
 0x105   : > { %v915_v36 = vpop.f32.mrb[6].mxu0  ;;  %v985_v39 = vpop.f32.mrb[6].mxu1 }
 0x106   : > { %v916_v38 = vadd.f32 %v8731_v34, %v915_v36  ;;  %v9581_v40 = vpop.f32.mrb[7].mxu0  ;;  %v986_v42 = vadd.f32 %v8732_v35, %v985_v39  ;;  %v9592_v43 = vpop.f32.mrb[7].mxu1 }
 0x107   : > { %v8759_v40 = vld [vmem:[%s12493_s2 + $0xa] ss:$0 sm:$0xff] }
 0x108   : > { %9648 = vmatpush3.xpose.msk.msra.mxu0 %vm1315_vm2, %v916_v38  ;;  %9653 = vmatpush3.xpose.msk.msra.mxu1 %vm1315_vm2, %v986_v42 }
 0x109   : > { %9657 = vmatprep.subr.mxu0 %v10813_v11  ;;  %9662 = vmatprep.subr.mxu1 %v10813_v11 }
 0x10b   : > { %9650 = vmatmul.mubr.msk.f32.vlgmr.msra.gmra.mrb[14].mxu0 %vm1315_vm2, %v590_v44  ;;  %9655 = vmatmul.mubr.msk.f32.vlgmr.msra.gmra.mrb[14].mxu1 %vm1315_vm2, %v660_v45  ;;  %v8760_v45 = vld [vmem:[%s12493_s2 + $0xb] ss:$0 sm:$0xff] }
 0x10c   : > { %9659 = vmatprep.mubr.msk.f32.mxu0 %vm10812_vm0, %v10813_v11  ;;  %9664 = vmatprep.mubr.msk.f32.mxu1 %vm10812_vm0, %v10813_v11 }
 0x10d   : > { %v1101_v48 = vpop.f32.mrb[8].mxu0  ;;  %v1171_v51 = vpop.f32.mrb[8].mxu1 }
 0x10e   : > { %v1102_v49 = vadd.f32 %v8757_v46, %v1101_v48  ;;  %v9603_v50 = vpop.f32.mrb[9].mxu0  ;;  %v1172_v52 = vadd.f32 %v8758_v47, %v1171_v51  ;;  %v9614_v53 = vpop.f32.mrb[9].mxu1 }
 0x10f   : > { %v1956_v53 = vld [vmem:[%s12494_s3] sm:$0xff] }
 0x110   : > { %9658 = vmatpush3.msra.mxu0 %v1102_v49  ;;  %9663 = vmatpush3.msra.mxu1 %v1172_v52 }
 0x111   : > { %9667 = vmatprep.subr.mxu0 %v10813_v11  ;;  %9672 = vmatprep.subr.mxu1 %v10813_v11 }
 0x115   : > { %v11194_v54 = vpop.f32.mrb[10].mxu0  ;;  %v11196_v55 = vpop.f32.mrb[10].mxu1 }
 0x116   : > { %v9625_v56 = vpop.f32.mrb[11].mxu0  ;;  %v9636_v57 = vpop.f32.mrb[11].mxu1  ;;  %v1242_v44 = vadd.f32 %v8759_v40, %v11194_v54  ;;  %v1312_v48 = vadd.f32 %v8760_v45, %v11196_v55  ;;  %v1957_v54 = vld [vmem:[%s12494_s3 + $0x8] sm:$0xff]  ;;  %v1958_v55 = vld [vmem:[%s12494_s3 + $0x10] sm:$0xff]  ;;  %v8796_v40 = vld [vmem:[%s12492_s1 + $0x1e0] sm:$0xff] }
 0x117   : > { %v8795_v45 = vld [vmem:[%s12492_s1 + $0x1d8] sm:$0xff] }
 0x1d6   : > { %v1388_v62 = vpop.f32.mrb[12].mxu0  ;;  %v1464_v0 = vpop.f32.mrb[12].mxu1 }
 0x1d7   : > { %v1389_v63 = vadd.f32 %v1388_v62, %v11199_v61  ;;  %v9641_v1 = vpop.f32.mrb[13].mxu0  ;;  %v9646_v2 = vpop.f32.mrb[13].mxu1  ;;  %v1465_v4 = vadd.f32 %v1464_v0, %v11199_v61 }
 0x1d9   : > { %v1620_v5 = vsel %vm1315_vm2, %v1389_v63, -inf  ;;  %v1623_v6 = vsel %vm1315_vm2, %v1465_v4, -inf }
 0x1da   : > { %1621 = vmax.xlane.f32.xlu0 %v1620_v5 }
 0x1de   : > { %1624 = vmax.xlane.f32.xlu0 %v1623_v6  ;;  %v1540_v7 = vpop.f32.mrb[14].mxu0  ;;  %v1616_v8 = vpop.f32.mrb[14].mxu1 }
 0x1df   : > { %v1541_v9 = vadd.f32 %v1540_v7, %v11199_v61  ;;  %v9651_v10 = vpop.f32.mrb[15].mxu0  ;;  %v9656_v12 = vpop.f32.mrb[15].mxu1  ;;  %v1617_v13 = vadd.f32 %v1616_v8, %v11199_v61 }
 0x1e1   : > { %v1626_v14 = vsel %vm1315_vm2, %v1541_v9, -inf  ;;  %v1629_v15 = vsel %vm1315_vm2, %v1617_v13, -inf }
 0x1e2   : > { %1627 = vmax.xlane.f32.xlu1 %v1626_v14 }
 0x1e6   : > { %1630 = vmax.xlane.f32.xlu1 %v1629_v15 }
 0x267   : > { %v1622_v16 = vpop.xlane.xlu0 %1621 }
 0x268   : > { %v1632_v17 = vsub.f32 %v1389_v63, %v1622_v16 }
 0x26a   : > { %v1636_v19 = vmul.f32 1.442695, %v1632_v17  ;;  %v8781_v17 = vld [vmem:[%s12495_s4] ss:$0 sm:$0xff] }
 0x26b   : > { %v1625_v20 = vpop.xlane.xlu0 %1624 }
 0x26c   : > { %10671 = vpow2.f32 %v1636_v19  ;;  %v1633_v21 = vsub.f32 %v1465_v4, %v1625_v20 }
 0x26e   : > { %v1638_v22 = vmul.f32 1.442695, %v1633_v21 }
 0x26f   : > { %v1628_v23 = vpop.xlane.xlu1 %1627 }
 0x270   : > { %10673 = vpow2.f32 %v1638_v22  ;;  %v1634_v24 = vsub.f32 %v1541_v9, %v1628_v23 }
 0x272   : > { %v1640_v25 = vmul.f32 1.442695, %v1634_v24 }
 0x273   : > { %v1631_v26 = vpop.xlane.xlu1 %1630 }
 0x274   : > { %10675 = vpow2.f32 %v1640_v25  ;;  %v1635_v27 = vsub.f32 %v1617_v13, %v1631_v26  ;;  %v8784_v26 = vld [vmem:[%s12492_s1 + $0x180] sm:$0xff] }
 0x276   : > { %v10672_v28 = vpop.eup %10671  ;;  %v1642_v29 = vmul.f32 1.442695, %v1635_v27  ;;  %v8785_v27 = vld [vmem:[%s12492_s1 + $0x188] sm:$0xff] }
 0x277   : > { %v1644_v30 = vsel %vm1315_vm2, %v10672_v28, 0.0 }
 0x278   : > { %10677 = vpow2.f32 %v1642_v29  ;;  %1645 = vadd.xlane.f32.xlu0 %v1644_v30  ;;  %v10390_v29 = vpack.c.bf16 %v8785_v27, %v8784_v26  ;;  %v8789_v30 = vld [vmem:[%s12492_s1 + $0x1a8] sm:$0xff] }
 0x27a   : > { %v10674_v31 = vpop.eup %10673 }
 0x27b   : > { %v1647_v32 = vsel %vm1315_vm2, %v10674_v31, 0.0 }
 0x27c   : > { %1648 = vadd.xlane.f32.xlu1 %v1647_v32  ;;  %v8786_v32 = vld [vmem:[%s12492_s1 + $0x190] sm:$0xff] }
 0x27e   : > { %v10676_v33 = vpop.eup %10675 }
 0x27f   : > { %v1650_v34 = vsel %vm1315_vm2, %v10676_v33, 0.0 }
 0x280   : > { %1651 = vadd.xlane.f32.xlu0 %v1650_v34  ;;  %v8790_v34 = vld [vmem:[%s12492_s1 + $0x1b0] sm:$0xff] }
 0x282   : > { %v10678_v35 = vpop.eup %10677 }
 0x283   : > { %v1653_v36 = vsel %vm1315_vm2, %v10678_v35, 0.0 }
 0x284   : > { %1654 = vadd.xlane.f32.xlu1 %v1653_v36  ;;  %v8791_v36 = vld [vmem:[%s12492_s1 + $0x1b8] sm:$0xff] }
 0x305   : > { %v1646_v37 = vpop.xlane.xlu0 %1645 }
 0x306   : > { %10679 = vrcp.f32 %v1646_v37  ;;  %v10399_v37 = vpack.c.bf16 %v8791_v36, %v8790_v34  ;;  %v8842_v34 = vld [vmem:[%s12492_s1 + $0x290] sm:$0xff] }
 0x307   : > { %v8846_v36 = vld [vmem:[%s12492_s1 + $0x2b0] sm:$0xff] }
 0x309   : > { %v1649_v38 = vpop.xlane.xlu1 %1648 }
 0x30a   : > { %10681 = vrcp.f32 %v1649_v38  ;;  %v8792_v38 = vld [vmem:[%s12492_s1 + $0x1c0] sm:$0xff] }
 0x30d   : > { %v1652_v39 = vpop.xlane.xlu0 %1651 }
 0x30e   : > { %10683 = vrcp.f32 %v1652_v39  ;;  %v8793_v39 = vld [vmem:[%s12492_s1 + $0x1c8] sm:$0xff] }
 0x310   : > { %v10680_v41 = vpop.eup %10679 }
 0x311   : > { %v1660_v42 = vmul.f32 %v10680_v41, %v10672_v28  ;;  %v1655_v43 = vpop.xlane.xlu1 %1654  ;;  %v8788_v28 = vld [vmem:[%s12492_s1 + $0x1a0] sm:$0xff]  ;;  %v10402_v41 = vpack.c.bf16 %v8793_v39, %v8792_v38 }
 0x312   : > { %10685 = vrcp.f32 %v1655_v43 }
 0x313   : > { %9660 = vmatmul.mubr.msk.f32.vlgmr.msra.gmra.mrb[16].mxu0 %vm1315_vm2, %v1660_v42  ;;  %v8797_v42 = vld [vmem:[%s12492_s1 + $0x1e8] sm:$0xff] }
 0x314   : > { %v10682_v46 = vpop.eup %10681  ;;  %9668 = vmatpush3.msra.mxu0 %v1242_v44  ;;  %9669 = vmatprep.mubr.msk.f32.mxu0 %vm10812_vm0, %v10813_v11  ;;  %v10408_v43 = vpack.c.bf16 %v8797_v42, %v8796_v40  ;;  %v8794_v44 = vld [vmem:[%s12492_s1 + $0x1d0] sm:$0xff]  ;;  %v8848_v40 = vld [vmem:[%s12492_s1 + $0x2c0] sm:$0xff] }
 0x315   : > { %v1661_v47 = vmul.f32 %v10682_v46, %v10674_v31  ;;  %9677 = vmatprep.subr.mxu0 %v10813_v11  ;;  %v10396_v31 = vpack.c.bf16 %v8789_v30, %v8788_v28  ;;  %v8798_v46 = vld [vmem:[%s12492_s1 + $0x1f0] sm:$0xff]  ;;  %v8840_v28 = vld [vmem:[%s12492_s1 + $0x280] sm:$0xff] }
 0x316   : > { %v8844_v30 = vld [vmem:[%s12492_s1 + $0x2a0] sm:$0xff] }
 0x317   : > { %9665 = vmatmul.mubr.msk.f32.vlgmr.msra.gmra.mrb[16].mxu1 %vm1315_vm2, %v1661_v47  ;;  %v10405_v47 = vpack.c.bf16 %v8795_v45, %v8794_v44  ;;  %v8852_v42 = vld [vmem:[%s12492_s1 + $0x2e0] sm:$0xff] }
 0x318   : > { %v10684_v49 = vpop.eup %10683  ;;  %9673 = vmatpush3.msra.mxu1 %v1312_v48  ;;  %9674 = vmatprep.mubr.msk.f32.mxu1 %vm10812_vm0, %v10813_v11  ;;  %v8799_v48 = vld [vmem:[%s12492_s1 + $0x1f8] sm:$0xff] }
 0x319   : > { %v1662_v50 = vmul.f32 %v10684_v49, %v10676_v33  ;;  %9682 = vmatprep.subr.mxu1 %v10813_v11  ;;  %v8787_v33 = vld [vmem:[%s12492_s1 + $0x198] sm:$0xff]  ;;  %v10411_v49 = vpack.c.bf16 %v8799_v48, %v8798_v46  ;;  %v8850_v46 = vld [vmem:[%s12492_s1 + $0x2d0] sm:$0xff] }
 0x31a   : > { %v8854_v48 = vld [vmem:[%s12492_s1 + $0x2f0] sm:$0xff] }
 0x31b   : > { %9670 = vmatmul.mubr.msk.f32.vlgmr.msra.gmra.mrb[18].mxu0 %vm1315_vm2, %v1662_v50  ;;  %v8812_v50 = vld [vmem:[%s12492_s1 + $0x200] sm:$0xff] }
 0x31c   : > { %v10686_v51 = vpop.eup %10685  ;;  %9679 = vmatprep.mubr.msk.f32.mxu0 %vm10812_vm0, %v10813_v11  ;;  %9678 = vmatpush3.msra.mxu0 %v1956_v53 }
 0x31d   : > { %v1663_v52 = vmul.f32 %v10686_v51, %v10678_v35  ;;  %9687 = vmatprep.subr.mxu0 %v10813_v11  ;;  %v10393_v35 = vpack.c.bf16 %v8787_v33, %v8786_v32  ;;  %v8813_v51 = vld [vmem:[%s12492_s1 + $0x208] sm:$0xff] }
 0x31e   : > { %v10414_v53 = vpack.c.bf16 %v8813_v51, %v8812_v50 }
 0x31f   : > { %9675 = vmatmul.mubr.msk.f32.vlgmr.msra.gmra.mrb[18].mxu1 %vm1315_vm2, %v1663_v52  ;;  %v8816_v52 = vld [vmem:[%s12492_s1 + $0x220] sm:$0xff] }
 0x320   : > { %9684 = vmatprep.mubr.msk.f32.mxu1 %vm10812_vm0, %v10813_v11  ;;  %9683 = vmatpush3.msra.mxu1 %v1957_v54  ;;  %v8817_v54 = vld [vmem:[%s12492_s1 + $0x228] sm:$0xff] }
 0x321   : > { %9692 = vmatprep.subr.mxu1 %v10813_v11 }
 0x3e6   : > { %v1733_v56 = vpop.f32.mrb[16].mxu0 }
 0x3e7   : > { %v9661_v57 = vpop.f32.mrb[17].mxu0  ;;  %9680 = vmatmul.mubr.msk.f32.vlgmr.msra.gmra.mrb[20].mxu0 %vm1315_vm2, %v1733_v56  ;;  %v8814_v56 = vld [vmem:[%s12492_s1 + $0x210] sm:$0xff] }
 0x3e8   : > { %9688 = vmatpush3.msra.mxu0 %v1958_v55  ;;  %9689 = vmatprep.mubr.msk.f32.mxu0 %vm10812_vm0, %v10813_v11  ;;  %v10420_v55 = vpack.c.bf16 %v8817_v54, %v8816_v52  ;;  %v8815_v57 = vld [vmem:[%s12492_s1 + $0x218] sm:$0xff] }
 0x3e9   : > { %10389 = vmatprep.subr.bf16.mxu0 %v10811_v3 }
 0x3ea   : > { %v1806_v59 = vpop.f32.mrb[16].mxu1 }
 0x3eb   : > { %v9666_v60 = vpop.f32.mrb[17].mxu1  ;;  %9685 = vmatmul.mubr.msk.f32.vlgmr.msra.gmra.mrb[20].mxu1 %vm1315_vm2, %v1806_v59  ;;  %v10417_v59 = vpack.c.bf16 %v8815_v57, %v8814_v56 }
 0x3ec   : > { %9693 = vmatpush3.msra.mxu1 %v1959_v58  ;;  %9694 = vmatprep.mubr.msk.f32.mxu1 %vm10812_vm0, %v10813_v11  ;;  %v8818_v58 = vld [vmem:[%s12492_s1 + $0x230] sm:$0xff] }
 0x3ed   : > { %10395 = vmatprep.subr.bf16.mxu1 %v10811_v3 }
 0x3ee   : > { %v1879_v62 = vpop.f32.mrb[18].mxu0 }
 0x3ef   : > { %v9671_v63 = vpop.f32.mrb[19].mxu0  ;;  %9690 = vmatmul.mubr.msk.f32.vlgmr.msra.gmra.mrb[22].mxu0 %vm1315_vm2, %v1879_v62 }
 0x3f0   : > { %9705 = vmatprep.mubr.msk.f32.mxu0 %vm10812_vm0, %v10813_v11  ;;  %10391 = vmatpush3.bf16.msra.mxu0 %v10390_v29  ;;  %v8841_v29 = vld [vmem:[%s12492_s1 + $0x288] sm:$0xff] }
 0x3f1   : > { %10392 = vmatprep.subr.bf16.mxu0 %v10811_v3  ;;  %v10438_v32 = vpack.c.bf16 %v8841_v29, %v8840_v28 }
 0x3f2   : > { %v1952_v0 = vpop.f32.mrb[18].mxu1 }
 0x3f3   : > { %v9676_v1 = vpop.f32.mrb[19].mxu1  ;;  %9695 = vmatmul.mubr.msk.f32.vlgmr.msra.gmra.mrb[22].mxu1 %vm1315_vm2, %v1952_v0 }
 0x3f4   : > { %9716 = vmatprep.mubr.msk.f32.mxu1 %vm10812_vm0, %v10813_v11  ;;  %10397 = vmatpush3.bf16.msra.mxu1 %v10396_v31  ;;  %v8845_v31 = vld [vmem:[%s12492_s1 + $0x2a8] sm:$0xff] }
 0x3f5   : > { %10398 = vmatprep.subr.bf16.mxu1 %v10811_v3  ;;  %10394 = vmatpush3.bf16.msra.mxu0 %v10393_v35  ;;  %v10444_v33 = vpack.c.bf16 %v8845_v31, %v8844_v30  ;;  %v8843_v35 = vld [vmem:[%s12492_s1 + $0x298] sm:$0xff] }
 0x3f6   : > { %10401 = vmatprep.subr.bf16.mxu0 %v10811_v3  ;;  %v10441_v38 = vpack.c.bf16 %v8843_v35, %v8842_v34 }
 0x3f8   : > { %10400 = vmatpush3.bf16.msra.mxu1 %v10399_v37  ;;  %9706 = vmatmul.mubr.msk.f32.vlgmr.msra.gmra.mrb[24].mxu0 %vm379_vm1, %v10962_v18  ;;  %v8847_v37 = vld [vmem:[%s12492_s1 + $0x2b8] sm:$0xff] }
 0x3f9   : > { %10407 = vmatprep.subr.bf16.mxu1 %v10811_v3  ;;  %10403 = vmatpush3.bf16.msra.mxu0 %v10402_v41  ;;  %v10447_v39 = vpack.c.bf16 %v8847_v37, %v8846_v36  ;;  %v8849_v41 = vld [vmem:[%s12492_s1 + $0x2c8] sm:$0xff] }
 0x3fa   : > { %10404 = vmatprep.subr.bf16.mxu0 %v10811_v3  ;;  %9727 = vmatprep.mubr.msk.f32.mxu0 %vm10812_vm0, %v10813_v11  ;;  %v10450_v44 = vpack.c.bf16 %v8849_v41, %v8848_v40 }
 0x3fb   : > { %9717 = vmatmul.mubr.msk.f32.vlgmr.msra.gmra.mrb[24].mxu1 %vm379_vm1, %v10962_v18 }
 0x3fc   : > { %10409 = vmatpush3.bf16.msra.mxu1 %v10408_v43  ;;  %9738 = vmatprep.mubr.msk.f32.mxu1 %vm10812_vm0, %v10813_v11  ;;  %v8853_v43 = vld [vmem:[%s12492_s1 + $0x2e8] sm:$0xff] }
 0x3fd   : > { %10410 = vmatprep.subr.bf16.mxu1 %v10811_v3  ;;  %10406 = vmatpush3.bf16.msra.mxu0 %v10405_v47  ;;  %v10456_v45 = vpack.c.bf16 %v8853_v43, %v8852_v42  ;;  %v8851_v47 = vld [vmem:[%s12492_s1 + $0x2d8] sm:$0xff] }
 0x3fe   : > { %10413 = vmatprep.subr.bf16.mxu0 %v10811_v3  ;;  %v10453_v50 = vpack.c.bf16 %v8851_v47, %v8850_v46 }
 0x400   : > { %10412 = vmatpush3.bf16.msra.mxu1 %v10411_v49  ;;  %9728 = vmatmul.mubr.msk.f32.vlgmr.msra.gmra.mrb[26].mxu0 %vm379_vm1, %v10962_v18  ;;  %v8855_v49 = vld [vmem:[%s12492_s1 + $0x2f8] sm:$0xff] }
 0x401   : > { %10419 = vmatprep.subr.bf16.mxu1 %v10811_v3  ;;  %10415 = vmatpush3.bf16.msra.mxu0 %v10414_v53  ;;  %v10459_v51 = vpack.c.bf16 %v8855_v49, %v8854_v48 }
 0x402   : > { %10416 = vmatprep.subr.bf16.mxu0 %v10811_v3  ;;  %9749 = vmatprep.mubr.msk.f32.mxu0 %vm10812_vm0, %v10813_v11 }
 0x403   : > { %9739 = vmatmul.mubr.msk.f32.vlgmr.msra.gmra.mrb[26].mxu1 %vm379_vm1, %v10962_v18 }
 0x404   : > { %10421 = vmatpush3.bf16.msra.mxu1 %v10420_v55  ;;  %9760 = vmatprep.mubr.msk.f32.mxu1 %vm10812_vm0, %v10813_v11 }
 0x405   : > { %10422 = vmatprep.subr.bf16.mxu1 %v10811_v3  ;;  %10418 = vmatpush3.bf16.msra.mxu0 %v10417_v59 }
 0x406   : > { %10425 = vmatprep.subr.bf16.mxu0 %v10811_v3 }
 0x4ba   : > { %v2029_v2 = vpop.f32.mrb[20].mxu0 }
 0x4bb   : > { %v9681_v4 = vpop.f32.mrb[21].mxu0  ;;  %v2252_v6 = vsel %vm379_vm1, %v2029_v2, 0.0 }
 0x4be   : > { %v2102_v5 = vpop.f32.mrb[20].mxu1 }
 0x4bf   : > { %v2253_v7 = vsel %vm379_vm1, %v2102_v5, 0.0  ;;  %v9686_v8 = vpop.f32.mrb[21].mxu1 }
 0x4c0   : > { %v2254_v9 = vadd.f32 %v2253_v7, %v2252_v6 }
 0x4c2   : > { %v2175_v10 = vpop.f32.mrb[22].mxu0 }
 0x4c3   : > { %v2255_v12 = vsel %vm379_vm1, %v2175_v10, 0.0  ;;  %v9691_v13 = vpop.f32.mrb[23].mxu0  ;;  %v8820_v10 = vld [vmem:[%s12492_s1 + $0x240] sm:$0xff] }
 0x4c4   : > { %v2256_v14 = vadd.f32 %v2255_v12, %v2254_v9  ;;  %v8782_v9 = vld [vmem:[%s12498_s7] ss:$0 sm:$0xff]  ;;  %v8821_v13 = vld [vmem:[%s12492_s1 + $0x248] sm:$0xff] }
 0x4c6   : > { %v2248_v15 = vpop.f32.mrb[22].mxu1 }
 0x4c7   : > { %v2257_v16 = vsel %vm379_vm1, %v2248_v15, 0.0  ;;  %v9696_v19 = vpop.f32.mrb[23].mxu1  ;;  %v8825_v15 = vld [vmem:[%s12492_s1 + $0x268] sm:$0xff] }
 0x4c8   : > { %v2258_v20 = vadd.f32 %v2257_v16, %v2256_v14  ;;  %v8824_v14 = vld [vmem:[%s12492_s1 + $0x260] sm:$0xff]  ;;  %v10426_v19 = vpack.c.bf16 %v8821_v13, %v8820_v10  ;;  %v8835_v10 = vld [vmem:[%s12493_s2 + $0x13] ss:$0 sm:$0xff] }
 0x4c9   : > { %v8783_v16 = vld [vmem:[%s12499_s8] ss:$0 sm:$0xff] }
 0x4ca   : > { %v2266_v21 = vadd.f32 %v8781_v17, %v2258_v20  ;;  %v10432_v20 = vpack.c.bf16 %v8825_v15, %v8824_v14  ;;  %v8806_v14 = vld [vmem:[%s12493_s2 + $0xe] ss:$0 sm:$0xff]  ;;  %v8807_v15 = vld [vmem:[%s12493_s2 + $0xf] ss:$0 sm:$0xff] }
 0x4cb   : > { %v2412_v52 = vpop.f32.mrb[24].mxu0 }
 0x4cc   : > { %v11271_v22 = vadd.f32 %v2266_v21, %v10962_v18  ;;  %v8819_v18 = vld [vmem:[%s12492_s1 + $0x238] sm:$0xff]  ;;  %v8822_v21 = vld [vmem:[%s12492_s1 + $0x250] sm:$0xff]  ;;  %v9707_v53 = vpop.f32.mrb[25].mxu0 }
 0x4cd   : > { %v10423_v60 = vpack.c.bf16 %v8819_v18, %v8818_v58  ;;  %v8832_v18 = vld [vmem:[%s12493_s2 + $0x10] ss:$0 sm:$0xff] }
 0x4ce   : > { %v2268_v23 = vsel %vm379_vm1, %v11271_v22, 0.0  ;;  %v2271_v24 = vmul.f32 %v11271_v22, %v11271_v22  ;;  %v2482_v54 = vpop.f32.mrb[24].mxu1 }
 0x4cf   : > { %2269 = vadd.xlane.f32.xlu0 %v2268_v23  ;;  %10424 = vmatpush3.bf16.msra.mxu1 %v10423_v60  ;;  %v8823_v23 = vld [vmem:[%s12492_s1 + $0x258] sm:$0xff]  ;;  %v9718_v55 = vpop.f32.mrb[25].mxu1  ;;  %v8833_v60 = vld [vmem:[%s12493_s2 + $0x11] ss:$0 sm:$0xff] }
 0x4d0   : > { %v2272_v25 = vsel %vm379_vm1, %v2271_v24, 0.0  ;;  %10431 = vmatprep.subr.bf16.mxu1 %v10811_v3  ;;  %v8826_v24 = vld [vmem:[%s12492_s1 + $0x270] sm:$0xff]  ;;  %v10429_v26 = vpack.c.bf16 %v8823_v23, %v8822_v21 }
 0x4d1   : > { %2273 = vadd.xlane.f32.xlu1 %v2272_v25  ;;  %v8827_v25 = vld [vmem:[%s12492_s1 + $0x278] sm:$0xff] }
 0x4d2   : > { %v10435_v27 = vpack.c.bf16 %v8827_v25, %v8826_v24  ;;  %v8860_v24 = vld [vmem:[%s12493_s2 + $0x14] ss:$0 sm:$0xff]  ;;  %v8861_v25 = vld [vmem:[%s12493_s2 + $0x15] ss:$0 sm:$0xff] }
 0x4d3   : > { %v2552_v56 = vpop.f32.mrb[26].mxu0 }
 0x4d4   : > { %v9729_v57 = vpop.f32.mrb[27].mxu0  ;;  %v2553_v21 = vadd.f32 %v8806_v14, %v2552_v56  ;;  %v8863_v14 = vld [vmem:[%s12493_s2 + $0x17] ss:$0 sm:$0xff] }
 0x4d6   : > { %v2622_v58 = vpop.f32.mrb[26].mxu1 }
 0x4d7   : > { %v9740_v59 = vpop.f32.mrb[27].mxu1  ;;  %v2623_v23 = vadd.f32 %v8807_v15, %v2622_v58 }
 0x55c   : > { %v2270_v62 = vpop.xlane.xlu0 %2269 }
 0x55d   : > { %v2275_v63 = vmul.f32 0.03125, %v2270_v62 }
 0x55e   : > { %v2274_v0 = vpop.xlane.xlu1 %2273 }
 0x55f   : > { %v2277_v1 = vmul.f32 %v2275_v63, %v2275_v63  ;;  %v2276_v2 = vmul.f32 0.03125, %v2274_v0  ;;  %v2280_v7 = vsub.f32 %v11271_v22, %v2275_v63  ;;  %v8804_v0 = vld [vmem:[%s12493_s2 + $0xc] ss:$0 sm:$0xff] }
 0x561   : > { %v2278_v4 = vsub.f32 %v2276_v2, %v2277_v1  ;;  %v8805_v1 = vld [vmem:[%s12493_s2 + $0xd] ss:$0 sm:$0xff] }
 0x563   : > { %v2279_v5 = vmax.f32 %v2278_v4, 0.0 }
 0x565   : > { %v2281_v6 = vadd.f32 1e-05, %v2279_v5 }
 0x567   : > { %10687 = vrsqrt.f32 %v2281_v6 }
 0x571   : > { %v10688_v8 = vpop.eup %10687 }
 0x572   : > { %v2283_v12 = vmul.f32 %v10688_v8, %v2280_v7  ;;  %v2413_v7 = vadd.f32 %v8804_v0, %v2412_v52  ;;  %v2483_v8 = vadd.f32 %v8805_v1, %v2482_v54 }
 0x574   : > { %v2291_v17 = vmul.f32 %v8782_v9, %v2283_v12  ;;  %v8834_v9 = vld [vmem:[%s12493_s2 + $0x12] ss:$0 sm:$0xff] }
 0x576   : > { %v11400_v22 = vadd.f32 %v8783_v16, %v2291_v17 }
 0x578   : > { %9750 = vmatmul.mubr.msk.f32.vlgmr.msra.gmra.mrb[28].mxu0 %vm379_vm1, %v11400_v22  ;;  %9761 = vmatmul.mubr.msk.f32.vlgmr.msra.gmra.mrb[28].mxu1 %vm379_vm1, %v11400_v22 }
 0x579   : > { %10427 = vmatpush3.bf16.msra.mxu0 %v10426_v19  ;;  %10433 = vmatpush3.bf16.msra.mxu1 %v10432_v20 }
 0x57a   : > { %10428 = vmatprep.subr.bf16.mxu0 %v10811_v3  ;;  %10434 = vmatprep.subr.bf16.mxu1 %v10811_v3 }
 0x57b   : > { %9771 = vmatprep.mubr.msk.f32.mxu0 %vm10812_vm0, %v10813_v11  ;;  %9782 = vmatprep.mubr.msk.f32.mxu1 %vm10812_vm0, %v10813_v11 }
 0x57d   : > { %10430 = vmatpush3.bf16.msra.mxu0 %v10429_v26  ;;  %10436 = vmatpush3.bf16.msra.mxu1 %v10435_v27 }
 0x57e   : > { %10437 = vmatprep.subr.bf16.mxu0 %v10811_v3  ;;  %10443 = vmatprep.subr.bf16.mxu1 %v10811_v3 }
 0x580   : > { %9772 = vmatmul.mubr.msk.f32.vlgmr.msra.gmra.mrb[30].mxu0 %vm379_vm1, %v11400_v22  ;;  %9783 = vmatmul.mubr.msk.f32.vlgmr.msra.gmra.mrb[30].mxu1 %vm379_vm1, %v11400_v22 }
 0x581   : > { %10439 = vmatpush3.bf16.msra.mxu0 %v10438_v32  ;;  %10445 = vmatpush3.bf16.msra.mxu1 %v10444_v33 }
 0x582   : > { %10440 = vmatprep.subr.bf16.mxu0 %v10811_v3  ;;  %10446 = vmatprep.subr.bf16.mxu1 %v10811_v3 }
 0x583   : > { %9793 = vmatprep.mubr.msk.f32.mxu0 %vm10812_vm0, %v10813_v11  ;;  %9804 = vmatprep.mubr.msk.f32.mxu1 %vm10812_vm0, %v10813_v11 }
 0x585   : > { %10442 = vmatpush3.bf16.msra.mxu0 %v10441_v38  ;;  %10448 = vmatpush3.bf16.msra.mxu1 %v10447_v39 }
 0x586   : > { %10449 = vmatprep.subr.bf16.mxu0 %v10811_v3  ;;  %10455 = vmatprep.subr.bf16.mxu1 %v10811_v3 }
 0x588   : > { %9794 = vmatmul.mubr.msk.f32.vlgmr.msra.gmra.mrb[32].mxu0 %vm379_vm1, %v11400_v22  ;;  %9805 = vmatmul.mubr.msk.f32.vlgmr.msra.gmra.mrb[32].mxu1 %vm379_vm1, %v11400_v22 }
 0x589   : > { %10451 = vmatpush3.bf16.msra.mxu0 %v10450_v44  ;;  %10457 = vmatpush3.bf16.msra.mxu1 %v10456_v45 }
 0x58a   : > { %10452 = vmatprep.subr.bf16.mxu0 %v10811_v3  ;;  %10458 = vmatprep.subr.bf16.mxu1 %v10811_v3 }
 0x58b   : > { %9815 = vmatprep.mubr.msk.f32.mxu0 %vm10812_vm0, %v10813_v11  ;;  %9826 = vmatprep.mubr.msk.f32.mxu1 %vm10812_vm0, %v10813_v11 }
 0x58d   : > { %10454 = vmatpush3.bf16.msra.mxu0 %v10453_v50  ;;  %10460 = vmatpush3.bf16.msra.mxu1 %v10459_v51 }
 0x58e   : > { %9829 = vmatprep.subr.mxu0 %v10813_v11  ;;  %9834 = vmatprep.subr.mxu1 %v10813_v11 }
 0x590   : > { %9816 = vmatmul.mubr.msk.f32.vlgmr.msra.gmra.mrb[34].mxu0 %vm379_vm1, %v11400_v22  ;;  %9827 = vmatmul.mubr.msk.f32.vlgmr.msra.gmra.mrb[34].mxu1 %vm379_vm1, %v11400_v22 }
 0x591   : > { %9831 = vmatprep.mubr.msk.f32.mxu0 %vm10812_vm0, %v10813_v11  ;;  %9836 = vmatprep.mubr.msk.f32.mxu1 %vm10812_vm0, %v10813_v11 }
 0x64b   : > { %v2741_v62 = vpop.f32.mrb[28].mxu0  ;;  %v2811_v63 = vpop.f32.mrb[28].mxu1 }
 0x64c   : > { %v2742_v2 = vadd.f32 %v8832_v18, %v2741_v62  ;;  %v2812_v4 = vadd.f32 %v8833_v60, %v2811_v63  ;;  %v9751_v5 = vpop.f32.mrb[29].mxu0  ;;  %v9762_v6 = vpop.f32.mrb[29].mxu1 }
 0x64e   : > { %9830 = vmatpush3.xpose.msk.msra.mxu0 %vm1315_vm2, %v2742_v2  ;;  %9835 = vmatpush3.xpose.msk.msra.mxu1 %vm1315_vm2, %v2812_v4 }
 0x64f   : > { %9839 = vmatprep.subr.mxu0 %v10813_v11  ;;  %9844 = vmatprep.subr.mxu1 %v10813_v11 }
 0x651   : > { %9832 = vmatmul.mubr.msk.f32.vlgmr.msra.gmra.mrb[36].mxu0 %vm1315_vm2, %v2413_v7  ;;  %9837 = vmatmul.mubr.msk.f32.vlgmr.msra.gmra.mrb[36].mxu1 %vm1315_vm2, %v2483_v8 }
 0x652   : > { %9841 = vmatprep.mubr.msk.f32.mxu0 %vm10812_vm0, %v10813_v11  ;;  %9846 = vmatprep.mubr.msk.f32.mxu1 %vm10812_vm0, %v10813_v11 }
 0x653   : > { %v2881_v12 = vpop.f32.mrb[30].mxu0  ;;  %v2951_v13 = vpop.f32.mrb[30].mxu1 }
 0x654   : > { %v2882_v16 = vadd.f32 %v8834_v9, %v2881_v12  ;;  %v2952_v17 = vadd.f32 %v8835_v10, %v2951_v13  ;;  %v9773_v19 = vpop.f32.mrb[31].mxu0  ;;  %v9784_v20 = vpop.f32.mrb[31].mxu1 }
 0x656   : > { %9840 = vmatpush3.xpose.msk.msra.mxu0 %vm1315_vm2, %v2882_v16  ;;  %9845 = vmatpush3.xpose.msk.msra.mxu1 %vm1315_vm2, %v2952_v17  ;;  %v8862_v16 = vld [vmem:[%s12493_s2 + $0x16] ss:$0 sm:$0xff] }
 0x657   : > { %9849 = vmatprep.subr.mxu0 %v10813_v11  ;;  %9854 = vmatprep.subr.mxu1 %v10813_v11 }
 0x659   : > { %9842 = vmatmul.mubr.msk.f32.vlgmr.msra.gmra.mrb[38].mxu0 %vm1315_vm2, %v2553_v21  ;;  %9847 = vmatmul.mubr.msk.f32.vlgmr.msra.gmra.mrb[38].mxu1 %vm1315_vm2, %v2623_v23 }
 0x65a   : > { %9851 = vmatprep.mubr.msk.f32.mxu0 %vm10812_vm0, %v10813_v11  ;;  %9856 = vmatprep.mubr.msk.f32.mxu1 %vm10812_vm0, %v10813_v11 }
 0x65b   : > { %v3067_v26 = vpop.f32.mrb[32].mxu0  ;;  %v3137_v27 = vpop.f32.mrb[32].mxu1 }
 0x65c   : > { %v3068_v28 = vadd.f32 %v8860_v24, %v3067_v26  ;;  %v3138_v29 = vadd.f32 %v8861_v25, %v3137_v27  ;;  %v9795_v30 = vpop.f32.mrb[33].mxu0  ;;  %v9806_v31 = vpop.f32.mrb[33].mxu1 }
 0x65d   : > { %v8883_v30 = vld [vmem:[%s12494_s3 + $0x38] sm:$0xff] }
 0x65e   : > { %9850 = vmatpush3.msra.mxu0 %v3068_v28  ;;  %9855 = vmatpush3.msra.mxu1 %v3138_v29  ;;  %v8880_v28 = vld [vmem:[%s12494_s3 + $0x20] sm:$0xff]  ;;  %v8881_v29 = vld [vmem:[%s12494_s3 + $0x28] sm:$0xff] }
 0x65f   : > { %9859 = vmatprep.subr.mxu0 %v10813_v11  ;;  %9864 = vmatprep.subr.mxu1 %v10813_v11 }
 0x663   : > { %v11555_v32 = vpop.f32.mrb[34].mxu0  ;;  %v11557_v33 = vpop.f32.mrb[34].mxu1 }
 0x664   : > { %v9817_v34 = vpop.f32.mrb[35].mxu0  ;;  %v9828_v35 = vpop.f32.mrb[35].mxu1  ;;  %v3278_v20 = vadd.f32 %v8863_v14, %v11557_v33  ;;  %v3208_v23 = vadd.f32 %v8862_v16, %v11555_v32  ;;  %v8882_v32 = vld [vmem:[%s12494_s3 + $0x30] sm:$0xff] }
 0x724   : > { %v3353_v36 = vpop.f32.mrb[36].mxu0  ;;  %v3429_v37 = vpop.f32.mrb[36].mxu1 }
 0x725   : > { %v3354_v38 = vadd.f32 %v3353_v36, %v11199_v61  ;;  %v3430_v39 = vadd.f32 %v3429_v37, %v11199_v61  ;;  %v9833_v40 = vpop.f32.mrb[37].mxu0  ;;  %v9838_v41 = vpop.f32.mrb[37].mxu1 }
 0x727   : > { %v3588_v42 = vsel %vm1315_vm2, %v3430_v39, -inf  ;;  %v3585_v43 = vsel %vm1315_vm2, %v3354_v38, -inf }
 0x728   : > { %3589 = vmax.xlane.f32.xlu1 %v3588_v42  ;;  %3586 = vmax.xlane.f32.xlu0 %v3585_v43 }
 0x72c   : > { %v3505_v44 = vpop.f32.mrb[38].mxu0  ;;  %v3581_v45 = vpop.f32.mrb[38].mxu1 }
 0x72d   : > { %v3506_v46 = vadd.f32 %v3505_v44, %v11199_v61  ;;  %v3582_v47 = vadd.f32 %v3581_v45, %v11199_v61  ;;  %v9843_v48 = vpop.f32.mrb[39].mxu0  ;;  %v9848_v49 = vpop.f32.mrb[39].mxu1 }
 0x72f   : > { %v3594_v50 = vsel %vm1315_vm2, %v3582_v47, -inf  ;;  %v3591_v51 = vsel %vm1315_vm2, %v3506_v46, -inf }
 0x730   : > { %3595 = vmax.xlane.f32.xlu1 %v3594_v50  ;;  %3592 = vmax.xlane.f32.xlu0 %v3591_v51 }
 0x7b5   : > { %v3590_v52 = vpop.xlane.xlu1 %3589  ;;  %v3587_v53 = vpop.xlane.xlu0 %3586 }
 0x7b6   : > { %v3598_v54 = vsub.f32 %v3430_v39, %v3590_v52  ;;  %v3597_v55 = vsub.f32 %v3354_v38, %v3587_v53 }
 0x7b8   : > { %v3603_v56 = vmul.f32 1.442695, %v3598_v54  ;;  %v3601_v57 = vmul.f32 1.442695, %v3597_v55  ;;  %v8889_v54 = vld [vmem:[%s12495_s4 + $0x1] ss:$0 sm:$0xff] }
 0x7ba   : > { %10689 = vpow2.f32 %v3603_v56 }
 0x7bb   : > { %10691 = vpow2.f32 %v3601_v57 }
 0x7bd   : > { %v3596_v58 = vpop.xlane.xlu1 %3595  ;;  %v3593_v59 = vpop.xlane.xlu0 %3592 }
 0x7be   : > { %v3600_v18 = vsub.f32 %v3582_v47, %v3596_v58  ;;  %v3599_v60 = vsub.f32 %v3506_v46, %v3593_v59 }
 0x7c0   : > { %v3607_v62 = vmul.f32 1.442695, %v3600_v18  ;;  %v3605_v63 = vmul.f32 1.442695, %v3599_v60  ;;  %v4269_v60 = vld [vmem:[%s12496_s5] sm:$0xff] }
 0x7c2   : > { %10693 = vpow2.f32 %v3607_v62  ;;  %v4270_v62 = vld [vmem:[%s12496_s5 + $0x8] sm:$0xff] }
 0x7c3   : > { %10695 = vpow2.f32 %v3605_v63  ;;  %v10462_v63 = vpack.c.bf16 %v4270_v62, %v4269_v60  ;;  %v8904_v62 = vld [vmem:[%s12498_s7 + $0x2] ss:$0 sm:$0xff] }
 0x7c4   : > { %v10690_v0 = vpop.eup %10689 }
 0x7c5   : > { %v10692_v1 = vpop.eup %10691  ;;  %v3612_v2 = vsel %vm1315_vm2, %v10690_v0, 0.0 }
 0x7c6   : > { %3613 = vadd.xlane.f32.xlu1 %v3612_v2  ;;  %v3609_v4 = vsel %vm1315_vm2, %v10692_v1, 0.0  ;;  %v8896_v2 = vld [vmem:[%s12496_s5 + $0x20] sm:$0xff] }
 0x7c7   : > { %3610 = vadd.xlane.f32.xlu0 %v3609_v4  ;;  %v8897_v4 = vld [vmem:[%s12496_s5 + $0x28] sm:$0xff] }
 0x7cc   : > { %v10694_v5 = vpop.eup %10693 }
 0x7cd   : > { %v10696_v6 = vpop.eup %10695  ;;  %v3618_v7 = vsel %vm1315_vm2, %v10694_v5, 0.0 }
 0x7ce   : > { %3619 = vadd.xlane.f32.xlu1 %v3618_v7  ;;  %v3615_v8 = vsel %vm1315_vm2, %v10696_v6, 0.0 }
 0x7cf   : > { %3616 = vadd.xlane.f32.xlu0 %v3615_v8 }
 0x853   : > { %v3614_v9 = vpop.xlane.xlu1 %3613 }
 0x854   : > { %10697 = vrcp.f32 %v3614_v9  ;;  %v3611_v10 = vpop.xlane.xlu0 %3610 }
 0x855   : > { %10699 = vrcp.f32 %v3611_v10 }
 0x85b   : > { %v3620_v12 = vpop.xlane.xlu1 %3619 }
 0x85c   : > { %10701 = vrcp.f32 %v3620_v12  ;;  %v3617_v13 = vpop.xlane.xlu0 %3616 }
 0x85d   : > { %10703 = vrcp.f32 %v3617_v13 }
 0x85e   : > { %v10698_v15 = vpop.eup %10697 }
 0x85f   : > { %v10700_v17 = vpop.eup %10699  ;;  %v3626_v19 = vmul.f32 %v10698_v15, %v10690_v0  ;;  %v4272_v0 = vld [vmem:[%s12496_s5 + $0x18] sm:$0xff] }
 0x860   : > { %v3625_v21 = vmul.f32 %v10700_v17, %v10692_v1  ;;  %v8891_v17 = vld [vmem:[%s12498_s7 + $0x1] ss:$0 sm:$0xff] }
 0x861   : > { %9857 = vmatmul.mubr.msk.f32.vlgmr.msra.gmra.mrb[40].mxu1 %vm1315_vm2, %v3626_v19 }
 0x862   : > { %9852 = vmatmul.mubr.msk.f32.vlgmr.msra.gmra.mrb[40].mxu0 %vm1315_vm2, %v3625_v21  ;;  %9865 = vmatpush3.msra.mxu1 %v3278_v20  ;;  %v8893_v20 = vld [vmem:[%s12499_s8 + $0x1] ss:$0 sm:$0xff] }
 0x863   : > { %9860 = vmatpush3.msra.mxu0 %v3208_v23  ;;  %9861 = vmatprep.mubr.msk.f32.mxu0 %vm10812_vm0, %v10813_v11 }
 0x864   : > { %9866 = vmatprep.mubr.msk.f32.mxu1 %vm10812_vm0, %v10813_v11  ;;  %9869 = vmatprep.subr.mxu0 %v10813_v11 }
 0x865   : > { %9874 = vmatprep.subr.mxu1 %v10813_v11 }
 0x866   : > { %v10702_v24 = vpop.eup %10701 }
 0x867   : > { %v10704_v25 = vpop.eup %10703  ;;  %v3628_v26 = vmul.f32 %v10702_v24, %v10694_v5  ;;  %v10468_v5 = vpack.c.bf16 %v8897_v4, %v8896_v2  ;;  %v8898_v24 = vld [vmem:[%s12496_s5 + $0x30] sm:$0xff]  ;;  %v8920_v2 = vld [vmem:[%s12492_s1 + $0x368] sm:$0xff]  ;;  %v8906_v4 = vld [vmem:[%s12499_s8 + $0x2] ss:$0 sm:$0xff] }
 0x868   : > { %v3627_v27 = vmul.f32 %v10704_v25, %v10696_v6  ;;  %v8899_v25 = vld [vmem:[%s12496_s5 + $0x38] sm:$0xff] }
 0x869   : > { %9867 = vmatmul.mubr.msk.f32.vlgmr.msra.gmra.mrb[42].mxu1 %vm1315_vm2, %v3628_v26  ;;  %v10471_v26 = vpack.c.bf16 %v8899_v25, %v8898_v24  ;;  %v8937_v24 = vld [vmem:[%s12492_s1 + $0x390] sm:$0xff]  ;;  %v8938_v25 = vld [vmem:[%s12492_s1 + $0x398] sm:$0xff] }
 0x86a   : > { %9862 = vmatmul.mubr.msk.f32.vlgmr.msra.gmra.mrb[42].mxu0 %vm1315_vm2, %v3627_v27  ;;  %9876 = vmatprep.mubr.msk.f32.mxu1 %vm10812_vm0, %v10813_v11  ;;  %v8894_v27 = vld [vmem:[%s12497_s6] ss:$0 sm:$0xff] }
 0x86b   : > { %9871 = vmatprep.mubr.msk.f32.mxu0 %vm10812_vm0, %v10813_v11  ;;  %9870 = vmatpush3.msra.mxu0 %v8880_v28 }
 0x86c   : > { %9875 = vmatpush3.msra.mxu1 %v8881_v29  ;;  %9879 = vmatprep.subr.mxu0 %v10813_v11 }
 0x86d   : > { %9884 = vmatprep.subr.mxu1 %v10813_v11 }
 0x934   : > { %v3771_v31 = vpop.f32.mrb[40].mxu1 }
 0x935   : > { %v3698_v33 = vpop.f32.mrb[40].mxu0  ;;  %v9858_v34 = vpop.f32.mrb[41].mxu1  ;;  %9877 = vmatmul.mubr.msk.f32.vlgmr.msra.gmra.mrb[44].mxu1 %vm1315_vm2, %v3771_v31 }
 0x936   : > { %v9853_v35 = vpop.f32.mrb[41].mxu0  ;;  %9872 = vmatmul.mubr.msk.f32.vlgmr.msra.gmra.mrb[44].mxu0 %vm1315_vm2, %v3698_v33  ;;  %9885 = vmatpush3.msra.mxu1 %v8883_v30 }
 0x937   : > { %9880 = vmatpush3.msra.mxu0 %v8882_v32  ;;  %9881 = vmatprep.mubr.msk.f32.mxu0 %vm10812_vm0, %v10813_v11  ;;  %v8901_v32 = vld [vmem:[%s12497_s6 + $0x1] ss:$0 sm:$0xff] }
 0x938   : > { %9886 = vmatprep.mubr.msk.f32.mxu1 %vm10812_vm0, %v10813_v11  ;;  %10461 = vmatprep.subr.bf16.mxu0 %v10811_v3 }
 0x939   : > { %10467 = vmatprep.subr.bf16.mxu1 %v10811_v3 }
 0x93c   : > { %v3917_v36 = vpop.f32.mrb[42].mxu1 }
 0x93d   : > { %v3844_v37 = vpop.f32.mrb[42].mxu0  ;;  %v9868_v38 = vpop.f32.mrb[43].mxu1  ;;  %9887 = vmatmul.mubr.msk.f32.vlgmr.msra.gmra.mrb[46].mxu1 %vm1315_vm2, %v3917_v36 }
 0x93e   : > { %v9863_v39 = vpop.f32.mrb[43].mxu0  ;;  %9882 = vmatmul.mubr.msk.f32.vlgmr.msra.gmra.mrb[46].mxu0 %vm1315_vm2, %v3844_v37  ;;  %9908 = vmatprep.mubr.msk.f32.mxu1 %vm10812_vm0, %v10813_v11 }
 0x93f   : > { %9897 = vmatprep.mubr.msk.f32.mxu0 %vm10812_vm0, %v10813_v11  ;;  %10463 = vmatpush3.bf16.msra.mxu0 %v10462_v63  ;;  %v8915_v63 = vld [vmem:[%s12492_s1 + $0x340] sm:$0xff] }
 0x940   : > { %10464 = vmatprep.subr.bf16.mxu0 %v10811_v3  ;;  %10469 = vmatpush3.bf16.msra.mxu1 %v10468_v5 }
 0x941   : > { %10470 = vmatprep.subr.bf16.mxu1 %v10811_v3 }
 0x944   : > { %10472 = vmatpush3.bf16.msra.mxu1 %v10471_v26  ;;  %v8941_v26 = vld [vmem:[%s12492_s1 + $0x3b0] sm:$0xff] }
 0x945   : > { %10479 = vmatprep.subr.bf16.mxu1 %v10811_v3 }
 0xa08   : > { %v4068_v40 = vpop.f32.mrb[44].mxu1 }
 0xa09   : > { %v3995_v41 = vpop.f32.mrb[44].mxu0  ;;  %v4219_v42 = vsel %vm379_vm1, %v4068_v40, 0.0  ;;  %v9878_v43 = vpop.f32.mrb[45].mxu1  ;;  %v8907_v40 = vld [vmem:[%s12492_s1 + $0x300] sm:$0xff] }
 0xa0a   : > { %v4218_v44 = vsel %vm379_vm1, %v3995_v41, 0.0  ;;  %v9873_v45 = vpop.f32.mrb[45].mxu0  ;;  %v8908_v41 = vld [vmem:[%s12492_s1 + $0x308] sm:$0xff] }
 0xa0b   : > { %v4220_v46 = vadd.f32 %v4219_v42, %v4218_v44  ;;  %v8911_v42 = vld [vmem:[%s12492_s1 + $0x320] sm:$0xff]  ;;  %v10474_v43 = vpack.c.bf16 %v8908_v41, %v8907_v40  ;;  %v8912_v44 = vld [vmem:[%s12492_s1 + $0x328] sm:$0xff] }
 0xa0c   : > { %v10480_v45 = vpack.c.bf16 %v8912_v44, %v8911_v42  ;;  %v8963_v42 = vld [vmem:[%s12492_s1 + $0x400] sm:$0xff] }
 0xa0d   : > { %v8967_v44 = vld [vmem:[%s12492_s1 + $0x420] sm:$0xff] }
 0xa10   : > { %v4214_v47 = vpop.f32.mrb[46].mxu1 }
 0xa11   : > { %v4141_v48 = vpop.f32.mrb[46].mxu0  ;;  %v9888_v49 = vpop.f32.mrb[47].mxu1  ;;  %v4223_v53 = vsel %vm379_vm1, %v4214_v47, 0.0  ;;  %v8910_v47 = vld [vmem:[%s12492_s1 + $0x318] sm:$0xff] }
 0xa12   : > { %v4221_v50 = vsel %vm379_vm1, %v4141_v48, 0.0  ;;  %v9883_v51 = vpop.f32.mrb[47].mxu0  ;;  %v8913_v48 = vld [vmem:[%s12492_s1 + $0x330] sm:$0xff] }
 0xa13   : > { %v4222_v52 = vadd.f32 %v4221_v50, %v4220_v46  ;;  %v8909_v46 = vld [vmem:[%s12492_s1 + $0x310] sm:$0xff]  ;;  %v8914_v50 = vld [vmem:[%s12492_s1 + $0x338] sm:$0xff] }
 0xa14   : > { %v10477_v49 = vpack.c.bf16 %v8910_v47, %v8909_v46  ;;  %v10483_v51 = vpack.c.bf16 %v8914_v50, %v8913_v48  ;;  %v8965_v48 = vld [vmem:[%s12492_s1 + $0x410] sm:$0xff] }
 0xa15   : > { %v4224_v55 = vadd.f32 %v4223_v53, %v4222_v52  ;;  %v8969_v50 = vld [vmem:[%s12492_s1 + $0x430] sm:$0xff] }
 0xa17   : > { %v4233_v56 = vadd.f32 %v8889_v54, %v4224_v55 }
 0xa19   : > { %v4234_v57 = vadd.f32 %v4233_v56, %v11400_v22  ;;  %v4271_v22 = vld [vmem:[%s12496_s5 + $0x10] sm:$0xff] }
 0xa1a   : > { %v10465_v1 = vpack.c.bf16 %v4272_v0, %v4271_v22  ;;  %v8916_v0 = vld [vmem:[%s12492_s1 + $0x348] sm:$0xff] }
 0xa1b   : > { %v4235_v58 = vsel %vm379_vm1, %v4234_v57, 0.0  ;;  %v4238_v59 = vmul.f32 %v4234_v57, %v4234_v57 }
 0xa1c   : > { %4236 = vadd.xlane.f32.xlu0 %v4235_v58  ;;  %10466 = vmatpush3.bf16.msra.mxu0 %v10465_v1  ;;  %v8919_v1 = vld [vmem:[%s12492_s1 + $0x360] sm:$0xff] }
 0xa1d   : > { %v4239_v18 = vsel %vm379_vm1, %v4238_v59, 0.0  ;;  %10473 = vmatprep.subr.bf16.mxu0 %v10811_v3 }
 0xa1e   : > { %4240 = vadd.xlane.f32.xlu1 %v4239_v18 }
 0xaa9   : > { %v4237_v6 = vpop.xlane.xlu0 %4236 }
 0xaaa   : > { %v4242_v7 = vmul.f32 0.03125, %v4237_v6  ;;  %v10486_v6 = vpack.c.bf16 %v8916_v0, %v8915_v63  ;;  %v8978_v63 = vld [vmem:[%s12492_s1 + $0x478] sm:$0xff] }
 0xaab   : > { %v4241_v8 = vpop.xlane.xlu1 %4240 }
 0xaac   : > { %v4244_v9 = vmul.f32 %v4242_v7, %v4242_v7  ;;  %v4243_v10 = vmul.f32 0.03125, %v4241_v8  ;;  %v4247_v15 = vsub.f32 %v4234_v57, %v4242_v7  ;;  %v10492_v7 = vpack.c.bf16 %v8920_v2, %v8919_v1  ;;  %v8917_v8 = vld [vmem:[%s12492_s1 + $0x350] sm:$0xff] }
 0xaae   : > { %v4245_v12 = vsub.f32 %v4243_v10, %v4244_v9  ;;  %v8918_v10 = vld [vmem:[%s12492_s1 + $0x358] sm:$0xff] }
 0xab0   : > { %v4246_v13 = vmax.f32 %v4245_v12, 0.0  ;;  %v8921_v12 = vld [vmem:[%s12492_s1 + $0x370] sm:$0xff] }
 0xab2   : > { %v4248_v14 = vadd.f32 1e-05, %v4246_v13  ;;  %v8922_v13 = vld [vmem:[%s12492_s1 + $0x378] sm:$0xff] }
 0xab4   : > { %10705 = vrsqrt.f32 %v4248_v14  ;;  %v10489_v14 = vpack.c.bf16 %v8918_v10, %v8917_v8 }
 0xabe   : > { %v10706_v16 = vpop.eup %10705 }
 0xabf   : > { %v4250_v19 = vmul.f32 %v10706_v16, %v4247_v15  ;;  %v10495_v15 = vpack.c.bf16 %v8922_v13, %v8921_v12  ;;  %v8935_v16 = vld [vmem:[%s12492_s1 + $0x380] sm:$0xff]  ;;  %v8955_v12 = vld [vmem:[%s12493_s2 + $0x1c] ss:$0 sm:$0xff]  ;;  %v8956_v13 = vld [vmem:[%s12493_s2 + $0x1d] ss:$0 sm:$0xff] }
 0xac1   : > { %v4259_v21 = vmul.f32 %v8891_v17, %v4250_v19  ;;  %v8936_v17 = vld [vmem:[%s12492_s1 + $0x388] sm:$0xff]  ;;  %v8939_v19 = vld [vmem:[%s12492_s1 + $0x3a0] sm:$0xff] }
 0xac3   : > { %v4268_v23 = vadd.f32 %v8893_v20, %v4259_v21  ;;  %v8940_v20 = vld [vmem:[%s12492_s1 + $0x3a8] sm:$0xff]  ;;  %v10498_v21 = vpack.c.bf16 %v8936_v17, %v8935_v16  ;;  %v8927_v16 = vld [vmem:[%s12493_s2 + $0x18] ss:$0 sm:$0xff]  ;;  %v8928_v17 = vld [vmem:[%s12493_s2 + $0x19] ss:$0 sm:$0xff] }
 0xac5   : > { %9898 = vmatmul.mubr.msk.f32.vlgmr.msra.gmra.mrb[48].mxu0 %vm379_vm1, %v4268_v23 }
 0xac6   : > { %9919 = vmatprep.mubr.msk.f32.mxu0 %vm10812_vm0, %v10813_v11  ;;  %10475 = vmatpush3.bf16.msra.mxu0 %v10474_v43  ;;  %v8964_v43 = vld [vmem:[%s12492_s1 + $0x408] sm:$0xff] }
 0xac7   : > { %10476 = vmatprep.subr.bf16.mxu0 %v10811_v3  ;;  %v10522_v46 = vpack.c.bf16 %v8964_v43, %v8963_v42 }
 0xaca   : > { %10478 = vmatpush3.bf16.msra.mxu0 %v10477_v49  ;;  %v8966_v49 = vld [vmem:[%s12492_s1 + $0x418] sm:$0xff] }
 0xacb   : > { %10485 = vmatprep.subr.bf16.mxu0 %v10811_v3 }
 0xb98   : > { %v4349_v28 = vpop.f32.mrb[48].mxu0 }
 0xb99   : > { %v4350_v29 = vadd.f32 %v8894_v27, %v4349_v28  ;;  %v9899_v30 = vpop.f32.mrb[49].mxu0  ;;  %v8942_v27 = vld [vmem:[%s12492_s1 + $0x3b8] sm:$0xff]  ;;  %v10501_v28 = vpack.c.bf16 %v8938_v25, %v8937_v24 }
 0xb9a   : > { %v8943_v30 = vld [vmem:[%s12492_s1 + $0x3c0] sm:$0xff] }
 0xb9b   : > { %v4353_v31 = vmax.f32 %v4350_v29, 0.0  ;;  %v10507_v29 = vpack.c.bf16 %v8942_v27, %v8941_v26  ;;  %v8957_v26 = vld [vmem:[%s12493_s2 + $0x1e] ss:$0 sm:$0xff]  ;;  %v8958_v27 = vld [vmem:[%s12493_s2 + $0x1f] ss:$0 sm:$0xff] }
 0xb9d   : > { %9909 = vmatmul.mubr.msk.f32.vlgmr.msra.gmra.mrb[48].mxu1 %vm379_vm1, %v4353_v31  ;;  %v8944_v31 = vld [vmem:[%s12492_s1 + $0x3c8] sm:$0xff] }
 0xb9e   : > { %9930 = vmatprep.mubr.msk.f32.mxu1 %vm10812_vm0, %v10813_v11  ;;  %10481 = vmatpush3.bf16.msra.mxu1 %v10480_v45  ;;  %v8968_v45 = vld [vmem:[%s12492_s1 + $0x428] sm:$0xff] }
 0xb9f   : > { %10482 = vmatprep.subr.bf16.mxu1 %v10811_v3  ;;  %v10528_v47 = vpack.c.bf16 %v8968_v45, %v8967_v44 }
 0xba2   : > { %10484 = vmatpush3.bf16.msra.mxu1 %v10483_v51  ;;  %v8970_v51 = vld [vmem:[%s12492_s1 + $0x438] sm:$0xff] }
 0xba3   : > { %10491 = vmatprep.subr.bf16.mxu1 %v10811_v3 }
 0xc70   : > { %v4436_v33 = vpop.f32.mrb[48].mxu1 }
 0xc71   : > { %v4437_v34 = vadd.f32 %v8901_v32, %v4436_v33  ;;  %v9910_v35 = vpop.f32.mrb[49].mxu1  ;;  %v8947_v32 = vld [vmem:[%s12492_s1 + $0x3e0] sm:$0xff]  ;;  %v8948_v33 = vld [vmem:[%s12492_s1 + $0x3e8] sm:$0xff] }
 0xc72   : > { %v10516_v35 = vpack.c.bf16 %v8948_v33, %v8947_v32 }
 0xc73   : > { %v4440_v36 = vadd.f32 %v4437_v34, %v4268_v23  ;;  %v10504_v23 = vpack.c.bf16 %v8940_v20, %v8939_v19  ;;  %v10510_v34 = vpack.c.bf16 %v8944_v31, %v8943_v30  ;;  %v8929_v30 = vld [vmem:[%s12493_s2 + $0x1a] ss:$0 sm:$0xff]  ;;  %v8930_v31 = vld [vmem:[%s12493_s2 + $0x1b] ss:$0 sm:$0xff] }
 0xc75   : > { %v4441_v37 = vsel %vm379_vm1, %v4440_v36, 0.0  ;;  %v4444_v38 = vmul.f32 %v4440_v36, %v4440_v36 }
 0xc76   : > { %4442 = vadd.xlane.f32.xlu0 %v4441_v37  ;;  %v8946_v37 = vld [vmem:[%s12492_s1 + $0x3d8] sm:$0xff] }
 0xc77   : > { %v4445_v39 = vsel %vm379_vm1, %v4444_v38, 0.0  ;;  %v8949_v38 = vld [vmem:[%s12492_s1 + $0x3f0] sm:$0xff] }
 0xc78   : > { %4446 = vadd.xlane.f32.xlu1 %v4445_v39  ;;  %v8950_v39 = vld [vmem:[%s12492_s1 + $0x3f8] sm:$0xff] }
 0xc79   : > { %v10519_v41 = vpack.c.bf16 %v8950_v39, %v8949_v38  ;;  %v8983_v38 = vld [vmem:[%s12493_s2 + $0x20] ss:$0 sm:$0xff]  ;;  %v8984_v39 = vld [vmem:[%s12493_s2 + $0x21] ss:$0 sm:$0xff] }
 0xd03   : > { %v4443_v52 = vpop.xlane.xlu0 %4442 }
 0xd04   : > { %v4448_v53 = vmul.f32 0.03125, %v4443_v52  ;;  %v10525_v52 = vpack.c.bf16 %v8966_v49, %v8965_v48 }
 0xd05   : > { %v4447_v54 = vpop.xlane.xlu1 %4446 }
 0xd06   : > { %v4450_v55 = vmul.f32 %v4448_v53, %v4448_v53  ;;  %v4449_v56 = vmul.f32 0.03125, %v4447_v54  ;;  %v4453_v18 = vsub.f32 %v4440_v36, %v4448_v53  ;;  %v8945_v36 = vld [vmem:[%s12492_s1 + $0x3d0] sm:$0xff]  ;;  %v10531_v53 = vpack.c.bf16 %v8970_v51, %v8969_v50  ;;  %v8971_v54 = vld [vmem:[%s12492_s1 + $0x440] sm:$0xff] }
 0xd07   : > { %v10513_v40 = vpack.c.bf16 %v8946_v37, %v8945_v36 }
 0xd08   : > { %v4451_v57 = vsub.f32 %v4449_v56, %v4450_v55  ;;  %v8972_v55 = vld [vmem:[%s12492_s1 + $0x448] sm:$0xff]  ;;  %v8975_v56 = vld [vmem:[%s12492_s1 + $0x460] sm:$0xff] }
 0xd0a   : > { %v4452_v58 = vmax.f32 %v4451_v57, 0.0  ;;  %v8976_v57 = vld [vmem:[%s12492_s1 + $0x468] sm:$0xff] }
 0xd0c   : > { %v4454_v59 = vadd.f32 1e-05, %v4452_v58  ;;  %v10534_v58 = vpack.c.bf16 %v8972_v55, %v8971_v54 }
 0xd0e   : > { %10707 = vrsqrt.f32 %v4454_v59  ;;  %v10540_v59 = vpack.c.bf16 %v8976_v57, %v8975_v56 }
 0xd18   : > { %v10708_v60 = vpop.eup %10707 }
 0xd19   : > { %v4456_v22 = vmul.f32 %v10708_v60, %v4453_v18  ;;  %v8973_v18 = vld [vmem:[%s12492_s1 + $0x450] sm:$0xff]  ;;  %v8974_v60 = vld [vmem:[%s12492_s1 + $0x458] sm:$0xff] }
 0xd1b   : > { %v4465_v5 = vmul.f32 %v8904_v62, %v4456_v22  ;;  %v8977_v62 = vld [vmem:[%s12492_s1 + $0x470] sm:$0xff]  ;;  %v10537_v22 = vpack.c.bf16 %v8974_v60, %v8973_v18 }
 0xd1c   : > { %v10543_v0 = vpack.c.bf16 %v8978_v63, %v8977_v62 }
 0xd1d   : > { %v11728_v9 = vadd.f32 %v8906_v4, %v4465_v5 }
 0xd1f   : > { %9920 = vmatmul.mubr.msk.f32.vlgmr.msra.gmra.mrb[50].mxu0 %vm379_vm1, %v11728_v9  ;;  %9931 = vmatmul.mubr.msk.f32.vlgmr.msra.gmra.mrb[50].mxu1 %vm379_vm1, %v11728_v9 }
 0xd20   : > { %10487 = vmatpush3.bf16.msra.mxu0 %v10486_v6  ;;  %10493 = vmatpush3.bf16.msra.mxu1 %v10492_v7 }
 0xd21   : > { %10488 = vmatprep.subr.bf16.mxu0 %v10811_v3  ;;  %10494 = vmatprep.subr.bf16.mxu1 %v10811_v3 }
 0xd22   : > { %9941 = vmatprep.mubr.msk.f32.mxu0 %vm10812_vm0, %v10813_v11  ;;  %9952 = vmatprep.mubr.msk.f32.mxu1 %vm10812_vm0, %v10813_v11 }
 0xd24   : > { %10490 = vmatpush3.bf16.msra.mxu0 %v10489_v14  ;;  %10496 = vmatpush3.bf16.msra.mxu1 %v10495_v15 }
 0xd25   : > { %10497 = vmatprep.subr.bf16.mxu0 %v10811_v3  ;;  %10503 = vmatprep.subr.bf16.mxu1 %v10811_v3 }
 0xd27   : > { %9942 = vmatmul.mubr.msk.f32.vlgmr.msra.gmra.mrb[52].mxu0 %vm379_vm1, %v11728_v9  ;;  %9953 = vmatmul.mubr.msk.f32.vlgmr.msra.gmra.mrb[52].mxu1 %vm379_vm1, %v11728_v9 }
 0xd28   : > { %10499 = vmatpush3.bf16.msra.mxu0 %v10498_v21  ;;  %10505 = vmatpush3.bf16.msra.mxu1 %v10504_v23 }
 0xd29   : > { %10500 = vmatprep.subr.bf16.mxu0 %v10811_v3  ;;  %10506 = vmatprep.subr.bf16.mxu1 %v10811_v3 }
 0xd2a   : > { %9963 = vmatprep.mubr.msk.f32.mxu0 %vm10812_vm0, %v10813_v11  ;;  %9974 = vmatprep.mubr.msk.f32.mxu1 %vm10812_vm0, %v10813_v11 }
 0xd2c   : > { %10502 = vmatpush3.bf16.msra.mxu0 %v10501_v28  ;;  %10508 = vmatpush3.bf16.msra.mxu1 %v10507_v29 }
 0xd2d   : > { %10509 = vmatprep.subr.bf16.mxu0 %v10811_v3  ;;  %10515 = vmatprep.subr.bf16.mxu1 %v10811_v3 }
 0xd2f   : > { %9964 = vmatmul.mubr.msk.f32.vlgmr.msra.gmra.mrb[54].mxu0 %vm379_vm1, %v11728_v9  ;;  %9975 = vmatmul.mubr.msk.f32.vlgmr.msra.gmra.mrb[54].mxu1 %vm379_vm1, %v11728_v9 }
 0xd30   : > { %10511 = vmatpush3.bf16.msra.mxu0 %v10510_v34  ;;  %10517 = vmatpush3.bf16.msra.mxu1 %v10516_v35 }
 0xd31   : > { %10512 = vmatprep.subr.bf16.mxu0 %v10811_v3  ;;  %10518 = vmatprep.subr.bf16.mxu1 %v10811_v3 }
 0xd32   : > { %9985 = vmatprep.mubr.msk.f32.mxu0 %vm10812_vm0, %v10813_v11  ;;  %9996 = vmatprep.mubr.msk.f32.mxu1 %vm10812_vm0, %v10813_v11 }
 0xd34   : > { %10514 = vmatpush3.bf16.msra.mxu0 %v10513_v40  ;;  %10520 = vmatpush3.bf16.msra.mxu1 %v10519_v41 }
 0xd35   : > { %10521 = vmatprep.subr.bf16.mxu0 %v10811_v3  ;;  %10527 = vmatprep.subr.bf16.mxu1 %v10811_v3 }
 0xd37   : > { %9986 = vmatmul.mubr.msk.f32.vlgmr.msra.gmra.mrb[56].mxu0 %vm379_vm1, %v11728_v9  ;;  %9997 = vmatmul.mubr.msk.f32.vlgmr.msra.gmra.mrb[56].mxu1 %vm379_vm1, %v11728_v9 }
 0xd38   : > { %10523 = vmatpush3.bf16.msra.mxu0 %v10522_v46  ;;  %10529 = vmatpush3.bf16.msra.mxu1 %v10528_v47 }
 0xd39   : > { %10524 = vmatprep.subr.bf16.mxu0 %v10811_v3  ;;  %10530 = vmatprep.subr.bf16.mxu1 %v10811_v3 }
 0xd3a   : > { %10007 = vmatprep.mubr.msk.f32.mxu0 %vm10812_vm0, %v10813_v11  ;;  %10018 = vmatprep.mubr.msk.f32.mxu1 %vm10812_vm0, %v10813_v11 }
 0xd3c   : > { %10526 = vmatpush3.bf16.msra.mxu0 %v10525_v52  ;;  %10532 = vmatpush3.bf16.msra.mxu1 %v10531_v53 }
 0xd3d   : > { %10533 = vmatprep.subr.bf16.mxu0 %v10811_v3  ;;  %10539 = vmatprep.subr.bf16.mxu1 %v10811_v3 }
 0xd3f   : > { %10008 = vmatmul.mubr.msk.f32.vlgmr.msra.gmra.mrb[58].mxu0 %vm379_vm1, %v11728_v9  ;;  %10019 = vmatmul.mubr.msk.f32.vlgmr.msra.gmra.mrb[58].mxu1 %vm379_vm1, %v11728_v9 }
 0xd40   : > { %10535 = vmatpush3.bf16.msra.mxu0 %v10534_v58  ;;  %10541 = vmatpush3.bf16.msra.mxu1 %v10540_v59 }
 0xd41   : > { %10536 = vmatprep.subr.bf16.mxu0 %v10811_v3  ;;  %10542 = vmatprep.subr.bf16.mxu1 %v10811_v3 }
 0xd42   : > { %10029 = vmatprep.mubr.msk.f32.mxu0 %vm10812_vm0, %v10813_v11  ;;  %10040 = vmatprep.mubr.msk.f32.mxu1 %vm10812_vm0, %v10813_v11 }
 0xd44   : > { %10538 = vmatpush3.bf16.msra.mxu0 %v10537_v22  ;;  %10544 = vmatpush3.bf16.msra.mxu1 %v10543_v0 }
 0xd45   : > { %10043 = vmatprep.subr.mxu0 %v10813_v11  ;;  %10048 = vmatprep.subr.mxu1 %v10813_v11 }
 0xd47   : > { %10030 = vmatmul.mubr.msk.f32.vlgmr.msra.gmra.mrb[60].mxu0 %vm379_vm1, %v11728_v9  ;;  %10041 = vmatmul.mubr.msk.f32.vlgmr.msra.gmra.mrb[60].mxu1 %vm379_vm1, %v11728_v9 }
 0xd48   : > { %10045 = vmatprep.mubr.msk.f32.mxu0 %vm10812_vm0, %v10813_v11  ;;  %10050 = vmatprep.mubr.msk.f32.mxu1 %vm10812_vm0, %v10813_v11 }
 0xdf2   : > { %v4590_v1 = vpop.f32.mrb[50].mxu0  ;;  %v4660_v2 = vpop.f32.mrb[50].mxu1 }
 0xdf3   : > { %v9921_v4 = vpop.f32.mrb[51].mxu0  ;;  %v9932_v5 = vpop.f32.mrb[51].mxu1  ;;  %v4591_v24 = vadd.f32 %v8927_v16, %v4590_v1  ;;  %v4661_v25 = vadd.f32 %v8928_v17, %v4660_v2 }
 0xdfa   : > { %v4730_v6 = vpop.f32.mrb[52].mxu0  ;;  %v4800_v7 = vpop.f32.mrb[52].mxu1 }
 0xdfb   : > { %v9943_v8 = vpop.f32.mrb[53].mxu0  ;;  %v9954_v10 = vpop.f32.mrb[53].mxu1  ;;  %v4731_v36 = vadd.f32 %v8929_v30, %v4730_v6  ;;  %v4801_v37 = vadd.f32 %v8930_v31, %v4800_v7  ;;  %v8986_v30 = vld [vmem:[%s12493_s2 + $0x23] ss:$0 sm:$0xff] }
 0xe02   : > { %v4916_v14 = vpop.f32.mrb[54].mxu0  ;;  %v4986_v15 = vpop.f32.mrb[54].mxu1 }
 0xe03   : > { %v4917_v19 = vadd.f32 %v8955_v12, %v4916_v14  ;;  %v4987_v20 = vadd.f32 %v8956_v13, %v4986_v15  ;;  %v9965_v21 = vpop.f32.mrb[55].mxu0  ;;  %v9976_v23 = vpop.f32.mrb[55].mxu1 }
 0xe05   : > { %10044 = vmatpush3.xpose.msk.msra.mxu0 %vm1315_vm2, %v4917_v19  ;;  %10049 = vmatpush3.xpose.msk.msra.mxu1 %vm1315_vm2, %v4987_v20 }
 0xe06   : > { %10053 = vmatprep.subr.mxu0 %v10813_v11  ;;  %10058 = vmatprep.subr.mxu1 %v10813_v11 }
 0xe08   : > { %10046 = vmatmul.mubr.msk.f32.vlgmr.msra.gmra.mrb[62].mxu0 %vm1315_vm2, %v4591_v24  ;;  %10051 = vmatmul.mubr.msk.f32.vlgmr.msra.gmra.mrb[62].mxu1 %vm1315_vm2, %v4661_v25 }
 0xe09   : > { %10055 = vmatprep.mubr.msk.f32.mxu0 %vm10812_vm0, %v10813_v11  ;;  %10060 = vmatprep.mubr.msk.f32.mxu1 %vm10812_vm0, %v10813_v11 }
 0xe0a   : > { %v5056_v28 = vpop.f32.mrb[56].mxu0  ;;  %v5126_v29 = vpop.f32.mrb[56].mxu1 }
 0xe0b   : > { %v5057_v32 = vadd.f32 %v8957_v26, %v5056_v28  ;;  %v5127_v33 = vadd.f32 %v8958_v27, %v5126_v29  ;;  %v9987_v34 = vpop.f32.mrb[57].mxu0  ;;  %v9998_v35 = vpop.f32.mrb[57].mxu1 }
 0xe0d   : > { %10054 = vmatpush3.xpose.msk.msra.mxu0 %vm1315_vm2, %v5057_v32  ;;  %10059 = vmatpush3.xpose.msk.msra.mxu1 %vm1315_vm2, %v5127_v33  ;;  %v8985_v32 = vld [vmem:[%s12493_s2 + $0x22] ss:$0 sm:$0xff] }
 0xe0e   : > { %10063 = vmatprep.subr.mxu0 %v10813_v11  ;;  %10068 = vmatprep.subr.mxu1 %v10813_v11 }
 0xe10   : > { %10056 = vmatmul.mubr.msk.f32.vlgmr.msra.gmra.mrb[64].mxu0 %vm1315_vm2, %v4731_v36  ;;  %10061 = vmatmul.mubr.msk.f32.vlgmr.msra.gmra.mrb[64].mxu1 %vm1315_vm2, %v4801_v37 }
 0xe11   : > { %10065 = vmatprep.mubr.msk.f32.mxu0 %vm10812_vm0, %v10813_v11  ;;  %10070 = vmatprep.mubr.msk.f32.mxu1 %vm10812_vm0, %v10813_v11 }
 0xe12   : > { %v5242_v40 = vpop.f32.mrb[58].mxu0  ;;  %v5312_v41 = vpop.f32.mrb[58].mxu1 }
 0xe13   : > { %v5243_v42 = vadd.f32 %v8983_v38, %v5242_v40  ;;  %v5313_v43 = vadd.f32 %v8984_v39, %v5312_v41  ;;  %v10009_v44 = vpop.f32.mrb[59].mxu0  ;;  %v10020_v45 = vpop.f32.mrb[59].mxu1 }
 0xe14   : > { %v9006_v44 = vld [vmem:[%s12494_s3 + $0x58] sm:$0xff] }
 0xe15   : > { %10064 = vmatpush3.msra.mxu0 %v5243_v42  ;;  %10069 = vmatpush3.msra.mxu1 %v5313_v43  ;;  %v9003_v42 = vld [vmem:[%s12494_s3 + $0x40] sm:$0xff]  ;;  %v9004_v43 = vld [vmem:[%s12494_s3 + $0x48] sm:$0xff] }
 0xe16   : > { %10073 = vmatprep.subr.mxu0 %v10813_v11  ;;  %10078 = vmatprep.subr.mxu1 %v10813_v11 }
 0xe1a   : > { %v11955_v46 = vpop.f32.mrb[60].mxu0  ;;  %v11957_v47 = vpop.f32.mrb[60].mxu1 }
 0xe1b   : > { %v10031_v48 = vpop.f32.mrb[61].mxu0  ;;  %v10042_v49 = vpop.f32.mrb[61].mxu1  ;;  %v5453_v35 = vadd.f32 %v8986_v30, %v11957_v47  ;;  %v5383_v37 = vadd.f32 %v8985_v32, %v11955_v46  ;;  %v9005_v46 = vld [vmem:[%s12494_s3 + $0x50] sm:$0xff]  ;;  %v9012_v32 = vld [vmem:[%s12495_s4 + $0x2] ss:$0 sm:$0xff] }
 0xedb   : > { %v5528_v50 = vpop.f32.mrb[62].mxu0  ;;  %v5604_v51 = vpop.f32.mrb[62].mxu1 }
 0xedc   : > { %v5529_v52 = vadd.f32 %v5528_v50, %v11199_v61  ;;  %v5605_v53 = vadd.f32 %v5604_v51, %v11199_v61  ;;  %v10047_v54 = vpop.f32.mrb[63].mxu0  ;;  %v10052_v55 = vpop.f32.mrb[63].mxu1  ;;  %v9021_v50 = vld [vmem:[%s12492_s1 + $0x4a0] sm:$0xff]  ;;  %v9022_v51 = vld [vmem:[%s12492_s1 + $0x4a8] sm:$0xff] }
 0xedd   : > { %v10552_v54 = vpack.c.bf16 %v9022_v51, %v9021_v50  ;;  %v9050_v50 = vld [vmem:[%s12492_s1 + $0x528] sm:$0xff] }
 0xede   : > { %v5763_v56 = vsel %vm1315_vm2, %v5605_v53, -inf  ;;  %v5760_v57 = vsel %vm1315_vm2, %v5529_v52, -inf }
 0xedf   : > { %5764 = vmax.xlane.f32.xlu1 %v5763_v56  ;;  %5761 = vmax.xlane.f32.xlu0 %v5760_v57  ;;  %v9023_v56 = vld [vmem:[%s12492_s1 + $0x4b0] sm:$0xff]  ;;  %v9024_v57 = vld [vmem:[%s12492_s1 + $0x4b8] sm:$0xff] }
 0xee3   : > { %v5680_v58 = vpop.f32.mrb[64].mxu0  ;;  %v5756_v59 = vpop.f32.mrb[64].mxu1 }
 0xee4   : > { %v5681_v18 = vadd.f32 %v5680_v58, %v11199_v61  ;;  %v5757_v60 = vadd.f32 %v5756_v59, %v11199_v61  ;;  %v10057_v62 = vpop.f32.mrb[65].mxu0  ;;  %v10062_v63 = vpop.f32.mrb[65].mxu1  ;;  %v9019_v59 = vld [vmem:[%s12492_s1 + $0x490] sm:$0xff] }
 0xee6   : > { %v5769_v22 = vsel %vm1315_vm2, %v5757_v60, -inf  ;;  %v5766_v0 = vsel %vm1315_vm2, %v5681_v18, -inf }
 0xee7   : > { %5770 = vmax.xlane.f32.xlu1 %v5769_v22  ;;  %5767 = vmax.xlane.f32.xlu0 %v5766_v0  ;;  %v10555_v22 = vpack.c.bf16 %v9024_v57, %v9023_v56  ;;  %v9052_v56 = vld [vmem:[%s12492_s1 + $0x538] sm:$0xff] }
 0xf6c   : > { %v5765_v1 = vpop.xlane.xlu1 %5764  ;;  %v5762_v2 = vpop.xlane.xlu0 %5761 }
 0xf6d   : > { %v5773_v4 = vsub.f32 %v5605_v53, %v5765_v1  ;;  %v5772_v5 = vsub.f32 %v5529_v52, %v5762_v2  ;;  %v9017_v52 = vld [vmem:[%s12492_s1 + $0x480] sm:$0xff]  ;;  %v9018_v53 = vld [vmem:[%s12492_s1 + $0x488] sm:$0xff] }
 0xf6e   : > { %v10546_v55 = vpack.c.bf16 %v9018_v53, %v9017_v52  ;;  %v9029_v1 = vld [vmem:[%s12492_s1 + $0x4e0] sm:$0xff]  ;;  %v9030_v2 = vld [vmem:[%s12492_s1 + $0x4e8] sm:$0xff]  ;;  %v9047_v52 = vld [vmem:[%s12492_s1 + $0x510] sm:$0xff] }
 0xf6f   : > { %v5778_v6 = vmul.f32 1.442695, %v5773_v4  ;;  %v5776_v7 = vmul.f32 1.442695, %v5772_v5  ;;  %v9025_v4 = vld [vmem:[%s12492_s1 + $0x4c0] sm:$0xff]  ;;  %v9026_v5 = vld [vmem:[%s12492_s1 + $0x4c8] sm:$0xff] }
 0xf70   : > { %v9048_v53 = vld [vmem:[%s12492_s1 + $0x518] sm:$0xff] }
 0xf71   : > { %10709 = vpow2.f32 %v5778_v6  ;;  %v10564_v6 = vpack.c.bf16 %v9030_v2, %v9029_v1 }
 0xf72   : > { %10711 = vpow2.f32 %v5776_v7  ;;  %v10558_v7 = vpack.c.bf16 %v9026_v5, %v9025_v4  ;;  %v9014_v4 = vld [vmem:[%s12498_s7 + $0x3] ss:$0 sm:$0xff] }
 0xf73   : > { %v9053_v5 = vld [vmem:[%s12492_s1 + $0x540] sm:$0xff] }
 0xf74   : > { %v5771_v8 = vpop.xlane.xlu1 %5770  ;;  %v5768_v10 = vpop.xlane.xlu0 %5767 }
 0xf75   : > { %v5775_v12 = vsub.f32 %v5757_v60, %v5771_v8  ;;  %v5774_v13 = vsub.f32 %v5681_v18, %v5768_v10  ;;  %v9020_v18 = vld [vmem:[%s12492_s1 + $0x498] sm:$0xff]  ;;  %v9031_v8 = vld [vmem:[%s12492_s1 + $0x4f0] sm:$0xff] }
 0xf76   : > { %v10549_v0 = vpack.c.bf16 %v9020_v18, %v9019_v59  ;;  %v9032_v10 = vld [vmem:[%s12492_s1 + $0x4f8] sm:$0xff] }
 0xf77   : > { %v5782_v14 = vmul.f32 1.442695, %v5775_v12  ;;  %v5780_v15 = vmul.f32 1.442695, %v5774_v13  ;;  %v9027_v12 = vld [vmem:[%s12492_s1 + $0x4d0] sm:$0xff]  ;;  %v9028_v13 = vld [vmem:[%s12492_s1 + $0x4d8] sm:$0xff] }
 0xf79   : > { %10713 = vpow2.f32 %v5782_v14  ;;  %v10567_v14 = vpack.c.bf16 %v9032_v10, %v9031_v8  ;;  %v9057_v8 = vld [vmem:[%s12492_s1 + $0x560] sm:$0xff]  ;;  %v9058_v10 = vld [vmem:[%s12492_s1 + $0x568] sm:$0xff] }
 0xf7a   : > { %10715 = vpow2.f32 %v5780_v15  ;;  %v10561_v15 = vpack.c.bf16 %v9028_v13, %v9027_v12  ;;  %v9016_v12 = vld [vmem:[%s12499_s8 + $0x3] ss:$0 sm:$0xff] }
 0xf7b   : > { %v10710_v16 = vpop.eup %10709 }
 0xf7c   : > { %v10712_v17 = vpop.eup %10711  ;;  %v5787_v19 = vsel %vm1315_vm2, %v10710_v16, 0.0 }
 0xf7d   : > { %5788 = vadd.xlane.f32.xlu1 %v5787_v19  ;;  %v5784_v20 = vsel %vm1315_vm2, %v10712_v17, 0.0 }
 0xf7e   : > { %5785 = vadd.xlane.f32.xlu0 %v5784_v20 }
 0xf83   : > { %v10714_v21 = vpop.eup %10713 }
 0xf84   : > { %v10716_v23 = vpop.eup %10715  ;;  %v5793_v24 = vsel %vm1315_vm2, %v10714_v21, 0.0 }
 0xf85   : > { %5794 = vadd.xlane.f32.xlu1 %v5793_v24  ;;  %v5790_v25 = vsel %vm1315_vm2, %v10716_v23, 0.0 }
 0xf86   : > { %5791 = vadd.xlane.f32.xlu0 %v5790_v25 }
0x100a   : > { %v5789_v26 = vpop.xlane.xlu1 %5788 }
0x100b   : > { %10717 = vrcp.f32 %v5789_v26  ;;  %v5786_v27 = vpop.xlane.xlu0 %5785 }
0x100c   : > { %10719 = vrcp.f32 %v5786_v27 }
0x1012   : > { %v5795_v28 = vpop.xlane.xlu1 %5794 }
0x1013   : > { %10721 = vrcp.f32 %v5795_v28  ;;  %v5792_v29 = vpop.xlane.xlu0 %5791 }
0x1014   : > { %10723 = vrcp.f32 %v5792_v29 }
0x1015   : > { %v10718_v31 = vpop.eup %10717 }
0x1016   : > { %v10720_v33 = vpop.eup %10719  ;;  %v5801_v34 = vmul.f32 %v10718_v31, %v10710_v16 }
0x1017   : > { %v5800_v36 = vmul.f32 %v10720_v33, %v10712_v17 }
0x1018   : > { %10071 = vmatmul.mubr.msk.f32.vlgmr.msra.gmra.mrb[66].mxu1 %vm1315_vm2, %v5801_v34 }
0x1019   : > { %10066 = vmatmul.mubr.msk.f32.vlgmr.msra.gmra.mrb[66].mxu0 %vm1315_vm2, %v5800_v36  ;;  %10079 = vmatpush3.msra.mxu1 %v5453_v35 }
0x101a   : > { %10074 = vmatpush3.msra.mxu0 %v5383_v37  ;;  %10075 = vmatprep.mubr.msk.f32.mxu0 %vm10812_vm0, %v10813_v11 }
0x101b   : > { %10080 = vmatprep.mubr.msk.f32.mxu1 %vm10812_vm0, %v10813_v11  ;;  %10083 = vmatprep.subr.mxu0 %v10813_v11 }
0x101c   : > { %10088 = vmatprep.subr.mxu1 %v10813_v11 }
0x101d   : > { %v10722_v38 = vpop.eup %10721 }
0x101e   : > { %v10724_v39 = vpop.eup %10723  ;;  %v5803_v40 = vmul.f32 %v10722_v38, %v10714_v21 }
0x101f   : > { %v5802_v41 = vmul.f32 %v10724_v39, %v10716_v23 }
0x1020   : > { %10081 = vmatmul.mubr.msk.f32.vlgmr.msra.gmra.mrb[68].mxu1 %vm1315_vm2, %v5803_v40 }
0x1021   : > { %10076 = vmatmul.mubr.msk.f32.vlgmr.msra.gmra.mrb[68].mxu0 %vm1315_vm2, %v5802_v41  ;;  %10090 = vmatprep.mubr.msk.f32.mxu1 %vm10812_vm0, %v10813_v11 }
0x1022   : > { %10085 = vmatprep.mubr.msk.f32.mxu0 %vm10812_vm0, %v10813_v11  ;;  %10084 = vmatpush3.msra.mxu0 %v9003_v42 }
0x1023   : > { %10089 = vmatpush3.msra.mxu1 %v9004_v43  ;;  %10093 = vmatprep.subr.mxu0 %v10813_v11 }
0x1024   : > { %10098 = vmatprep.subr.mxu1 %v10813_v11 }
0x10eb   : > { %v5946_v45 = vpop.f32.mrb[66].mxu1 }
0x10ec   : > { %v5873_v47 = vpop.f32.mrb[66].mxu0  ;;  %v10072_v48 = vpop.f32.mrb[67].mxu1  ;;  %10091 = vmatmul.mubr.msk.f32.vlgmr.msra.gmra.mrb[70].mxu1 %vm1315_vm2, %v5946_v45 }
0x10ed   : > { %v10067_v49 = vpop.f32.mrb[67].mxu0  ;;  %10086 = vmatmul.mubr.msk.f32.vlgmr.msra.gmra.mrb[70].mxu0 %vm1315_vm2, %v5873_v47  ;;  %10099 = vmatpush3.msra.mxu1 %v9006_v44  ;;  %v9045_v47 = vld [vmem:[%s12492_s1 + $0x500] sm:$0xff] }
0x10ee   : > { %10094 = vmatpush3.msra.mxu0 %v9005_v46  ;;  %10095 = vmatprep.mubr.msk.f32.mxu0 %vm10812_vm0, %v10813_v11  ;;  %v9049_v48 = vld [vmem:[%s12492_s1 + $0x520] sm:$0xff] }
0x10ef   : > { %10100 = vmatprep.mubr.msk.f32.mxu1 %vm10812_vm0, %v10813_v11  ;;  %10545 = vmatprep.subr.bf16.mxu0 %v10811_v3  ;;  %v10576_v51 = vpack.c.bf16 %v9050_v50, %v9049_v48  ;;  %v9087_v48 = vld [vmem:[%s12492_s1 + $0x5f0] sm:$0xff] }
0x10f0   : > { %10551 = vmatprep.subr.bf16.mxu1 %v10811_v3 }
0x10f3   : > { %v6092_v58 = vpop.f32.mrb[68].mxu1 }
0x10f4   : > { %v6019_v60 = vpop.f32.mrb[68].mxu0  ;;  %v10082_v62 = vpop.f32.mrb[69].mxu1  ;;  %10101 = vmatmul.mubr.msk.f32.vlgmr.msra.gmra.mrb[72].mxu1 %vm1315_vm2, %v6092_v58 }
0x10f5   : > { %v10077_v63 = vpop.f32.mrb[69].mxu0  ;;  %10096 = vmatmul.mubr.msk.f32.vlgmr.msra.gmra.mrb[72].mxu0 %vm1315_vm2, %v6019_v60  ;;  %10553 = vmatpush3.bf16.msra.mxu1 %v10552_v54  ;;  %v9051_v54 = vld [vmem:[%s12492_s1 + $0x530] sm:$0xff] }
0x10f6   : > { %10547 = vmatpush3.bf16.msra.mxu0 %v10546_v55  ;;  %10554 = vmatprep.subr.bf16.mxu1 %v10811_v3  ;;  %v10573_v55 = vpack.c.bf16 %v9048_v53, %v9047_v52  ;;  %v10579_v57 = vpack.c.bf16 %v9052_v56, %v9051_v54  ;;  %v9065_v52 = vld [vmem:[%s12493_s2 + $0x28] ss:$0 sm:$0xff]  ;;  %v9066_v53 = vld [vmem:[%s12493_s2 + $0x29] ss:$0 sm:$0xff]  ;;  %v9037_v56 = vld [vmem:[%s12493_s2 + $0x24] ss:$0 sm:$0xff] }
0x10f7   : > { %10548 = vmatprep.subr.bf16.mxu0 %v10811_v3  ;;  %10111 = vmatprep.mubr.msk.f32.mxu0 %vm10812_vm0, %v10813_v11 }
0x10f8   : > { %10122 = vmatprep.mubr.msk.f32.mxu1 %vm10812_vm0, %v10813_v11 }
0x10f9   : > { %10556 = vmatpush3.bf16.msra.mxu1 %v10555_v22 }
0x10fa   : > { %10550 = vmatpush3.bf16.msra.mxu0 %v10549_v0  ;;  %10563 = vmatprep.subr.bf16.mxu1 %v10811_v3 }
0x10fb   : > { %10557 = vmatprep.subr.bf16.mxu0 %v10811_v3 }
0x10fc   : > { %10123 = vmatmul.mubr.msk.f32.vlgmr.msra.gmra.mrb[74].mxu1 %vm379_vm1, %v11728_v9 }
0x10fd   : > { %10112 = vmatmul.mubr.msk.f32.vlgmr.msra.gmra.mrb[74].mxu0 %vm379_vm1, %v11728_v9  ;;  %10565 = vmatpush3.bf16.msra.mxu1 %v10564_v6 }
0x10fe   : > { %10559 = vmatpush3.bf16.msra.mxu0 %v10558_v7  ;;  %10566 = vmatprep.subr.bf16.mxu1 %v10811_v3  ;;  %v9054_v7 = vld [vmem:[%s12492_s1 + $0x548] sm:$0xff] }
0x10ff   : > { %10560 = vmatprep.subr.bf16.mxu0 %v10811_v3  ;;  %10133 = vmatprep.mubr.msk.f32.mxu0 %vm10812_vm0, %v10813_v11 }
0x1100   : > { %10144 = vmatprep.mubr.msk.f32.mxu1 %vm10812_vm0, %v10813_v11 }
0x1101   : > { %10568 = vmatpush3.bf16.msra.mxu1 %v10567_v14  ;;  %v10582_v14 = vpack.c.bf16 %v9054_v7, %v9053_v5 }
0x1102   : > { %10562 = vmatpush3.bf16.msra.mxu0 %v10561_v15  ;;  %10575 = vmatprep.subr.bf16.mxu1 %v10811_v3  ;;  %v10588_v15 = vpack.c.bf16 %v9058_v10, %v9057_v8 }
0x1103   : > { %10569 = vmatprep.subr.bf16.mxu0 %v10811_v3 }
0x1104   : > { %10145 = vmatmul.mubr.msk.f32.vlgmr.msra.gmra.mrb[76].mxu1 %vm379_vm1, %v11728_v9 }
0x1105   : > { %10134 = vmatmul.mubr.msk.f32.vlgmr.msra.gmra.mrb[76].mxu0 %vm379_vm1, %v11728_v9  ;;  %10166 = vmatprep.mubr.msk.f32.mxu1 %vm10812_vm0, %v10813_v11 }
0x1106   : > { %10155 = vmatprep.mubr.msk.f32.mxu0 %vm10812_vm0, %v10813_v11  ;;  %10577 = vmatpush3.bf16.msra.mxu1 %v10576_v51 }
0x1107   : > { %10578 = vmatprep.subr.bf16.mxu1 %v10811_v3 }
0x110a   : > { %10580 = vmatpush3.bf16.msra.mxu1 %v10579_v57  ;;  %v9038_v57 = vld [vmem:[%s12493_s2 + $0x25] ss:$0 sm:$0xff] }
0x110b   : > { %10587 = vmatprep.subr.bf16.mxu1 %v10811_v3 }
0x11bf   : > { %v6243_v16 = vpop.f32.mrb[70].mxu1 }
0x11c0   : > { %v6170_v17 = vpop.f32.mrb[70].mxu0  ;;  %v6394_v19 = vsel %vm379_vm1, %v6243_v16, 0.0  ;;  %v10092_v20 = vpop.f32.mrb[71].mxu1  ;;  %v9055_v16 = vld [vmem:[%s12492_s1 + $0x550] sm:$0xff] }
0x11c1   : > { %v6393_v21 = vsel %vm379_vm1, %v6170_v17, 0.0  ;;  %v10087_v23 = vpop.f32.mrb[71].mxu0  ;;  %v9059_v20 = vld [vmem:[%s12492_s1 + $0x570] sm:$0xff] }
0x11c2   : > { %v6395_v24 = vadd.f32 %v6394_v19, %v6393_v21  ;;  %v9056_v19 = vld [vmem:[%s12492_s1 + $0x558] sm:$0xff] }
0x11c3   : > { %v9060_v21 = vld [vmem:[%s12492_s1 + $0x578] sm:$0xff]  ;;  %v10585_v23 = vpack.c.bf16 %v9056_v19, %v9055_v16 }
0x11c7   : > { %v6389_v25 = vpop.f32.mrb[72].mxu1 }
0x11c8   : > { %v6316_v26 = vpop.f32.mrb[72].mxu0  ;;  %v10102_v27 = vpop.f32.mrb[73].mxu1  ;;  %v6398_v31 = vsel %vm379_vm1, %v6389_v25, 0.0  ;;  %v9073_v25 = vld [vmem:[%s12492_s1 + $0x580] sm:$0xff] }
0x11c9   : > { %v6396_v28 = vsel %vm379_vm1, %v6316_v26, 0.0  ;;  %v10097_v29 = vpop.f32.mrb[73].mxu0  ;;  %v9074_v26 = vld [vmem:[%s12492_s1 + $0x588] sm:$0xff]  ;;  %v9077_v27 = vld [vmem:[%s12492_s1 + $0x5a0] sm:$0xff] }
0x11ca   : > { %v6397_v30 = vadd.f32 %v6396_v28, %v6395_v24  ;;  %v10591_v24 = vpack.c.bf16 %v9060_v21, %v9059_v20  ;;  %v9078_v28 = vld [vmem:[%s12492_s1 + $0x5a8] sm:$0xff]  ;;  %v10594_v29 = vpack.c.bf16 %v9074_v26, %v9073_v25 }
0x11cc   : > { %v6399_v33 = vadd.f32 %v6398_v31, %v6397_v30  ;;  %v10600_v30 = vpack.c.bf16 %v9078_v28, %v9077_v27  ;;  %v9075_v31 = vld [vmem:[%s12492_s1 + $0x590] sm:$0xff] }
0x11ce   : > { %v6408_v34 = vadd.f32 %v9012_v32, %v6399_v33  ;;  %v9076_v32 = vld [vmem:[%s12492_s1 + $0x598] sm:$0xff]  ;;  %v9079_v33 = vld [vmem:[%s12492_s1 + $0x5b0] sm:$0xff] }
0x11cf   : > { %v12100_v35 = vpop.f32.mrb[74].mxu1 }
0x11d0   : > { %v12102_v36 = vpop.f32.mrb[74].mxu0  ;;  %v10124_v37 = vpop.f32.mrb[75].mxu1  ;;  %v6409_v38 = vadd.f32 %v6408_v34, %v11728_v9  ;;  %v9046_v9 = vld [vmem:[%s12492_s1 + $0x508] sm:$0xff]  ;;  %v9080_v34 = vld [vmem:[%s12492_s1 + $0x5b8] sm:$0xff] }
0x11d1   : > { %v10113_v39 = vpop.f32.mrb[75].mxu0  ;;  %v10570_v49 = vpack.c.bf16 %v9046_v9, %v9045_v47  ;;  %v10597_v37 = vpack.c.bf16 %v9076_v32, %v9075_v31  ;;  %v9083_v47 = vld [vmem:[%s12492_s1 + $0x5d0] sm:$0xff]  ;;  %v9084_v9 = vld [vmem:[%s12492_s1 + $0x5d8] sm:$0xff] }
0x11d2   : > { %v6410_v40 = vsel %vm379_vm1, %v6409_v38, 0.0  ;;  %v6413_v41 = vmul.f32 %v6409_v38, %v6409_v38  ;;  %v9081_v39 = vld [vmem:[%s12492_s1 + $0x5c0] sm:$0xff]  ;;  %v10609_v50 = vpack.c.bf16 %v9084_v9, %v9083_v47 }
0x11d3   : > { %6411 = vadd.xlane.f32.xlu0 %v6410_v40  ;;  %10571 = vmatpush3.bf16.msra.mxu0 %v10570_v49  ;;  %v9082_v40 = vld [vmem:[%s12492_s1 + $0x5c8] sm:$0xff]  ;;  %v9088_v49 = vld [vmem:[%s12492_s1 + $0x5f8] sm:$0xff] }
0x11d4   : > { %v6414_v42 = vsel %vm379_vm1, %v6413_v41, 0.0  ;;  %10572 = vmatprep.subr.bf16.mxu0 %v10811_v3  ;;  %v9085_v41 = vld [vmem:[%s12492_s1 + $0x5e0] sm:$0xff]  ;;  %v10615_v51 = vpack.c.bf16 %v9088_v49, %v9087_v48 }
0x11d5   : > { %6415 = vadd.xlane.f32.xlu1 %v6414_v42  ;;  %v9086_v42 = vld [vmem:[%s12492_s1 + $0x5e8] sm:$0xff] }
0x11d7   : > { %v12107_v43 = vpop.f32.mrb[76].mxu1  ;;  %10574 = vmatpush3.bf16.msra.mxu0 %v10573_v55 }
0x11d8   : > { %v12109_v44 = vpop.f32.mrb[76].mxu0  ;;  %v10146_v45 = vpop.f32.mrb[77].mxu1  ;;  %10581 = vmatprep.subr.bf16.mxu0 %v10811_v3 }
0x11d9   : > { %v10135_v46 = vpop.f32.mrb[77].mxu0  ;;  %v10606_v45 = vpack.c.bf16 %v9082_v40, %v9081_v39 }
0x11da   : > { %v10612_v46 = vpack.c.bf16 %v9086_v42, %v9085_v41 }
0x1260   : > { %v6412_v58 = vpop.xlane.xlu0 %6411 }
0x1261   : > { %v6417_v59 = vmul.f32 0.03125, %v6412_v58 }
0x1262   : > { %v6416_v18 = vpop.xlane.xlu1 %6415 }
0x1263   : > { %v6419_v60 = vmul.f32 %v6417_v59, %v6417_v59  ;;  %v6418_v62 = vmul.f32 0.03125, %v6416_v18  ;;  %v6422_v1 = vsub.f32 %v6409_v38, %v6417_v59  ;;  %v10603_v38 = vpack.c.bf16 %v9080_v34, %v9079_v33 }
0x1265   : > { %v6420_v63 = vsub.f32 %v6418_v62, %v6419_v60  ;;  %v6557_v62 = vadd.f32 %v9037_v56, %v12102_v36 }
0x1267   : > { %v6421_v22 = vmax.f32 %v6420_v63, 0.0  ;;  %v6627_v63 = vadd.f32 %v9038_v57, %v12100_v35 }
0x1269   : > { %v6423_v0 = vadd.f32 1e-05, %v6421_v22  ;;  %v9067_v22 = vld [vmem:[%s12493_s2 + $0x2a] ss:$0 sm:$0xff] }
0x126b   : > { %10725 = vrsqrt.f32 %v6423_v0  ;;  %v9068_v0 = vld [vmem:[%s12493_s2 + $0x2b] ss:$0 sm:$0xff] }
0x1275   : > { %v10726_v2 = vpop.eup %10725 }
0x1276   : > { %v6425_v6 = vmul.f32 %v10726_v2, %v6422_v1  ;;  %v9039_v1 = vld [vmem:[%s12493_s2 + $0x26] ss:$0 sm:$0xff]  ;;  %v9040_v2 = vld [vmem:[%s12493_s2 + $0x27] ss:$0 sm:$0xff] }
0x1277   : > { %v6697_v8 = vadd.f32 %v9039_v1, %v12109_v44  ;;  %v6767_v10 = vadd.f32 %v9040_v2, %v12107_v43  ;;  %v9095_v2 = vld [vmem:[%s12493_s2 + $0x2e] ss:$0 sm:$0xff] }
0x1278   : > { %v6434_v13 = vmul.f32 %v9014_v4, %v6425_v6 }
0x127a   : > { %v12160_v17 = vadd.f32 %v9016_v12, %v6434_v13  ;;  %v9093_v12 = vld [vmem:[%s12493_s2 + $0x2c] ss:$0 sm:$0xff]  ;;  %v9094_v13 = vld [vmem:[%s12493_s2 + $0x2d] ss:$0 sm:$0xff] }
0x127c   : > { %10156 = vmatmul.mubr.msk.f32.vlgmr.msra.gmra.mrb[78].mxu0 %vm379_vm1, %v12160_v17  ;;  %10167 = vmatmul.mubr.msk.f32.vlgmr.msra.gmra.mrb[78].mxu1 %vm379_vm1, %v12160_v17 }
0x127d   : > { %10583 = vmatpush3.bf16.msra.mxu0 %v10582_v14  ;;  %10589 = vmatpush3.bf16.msra.mxu1 %v10588_v15 }
0x127e   : > { %10584 = vmatprep.subr.bf16.mxu0 %v10811_v3  ;;  %10590 = vmatprep.subr.bf16.mxu1 %v10811_v3 }
0x127f   : > { %10177 = vmatprep.mubr.msk.f32.mxu0 %vm10812_vm0, %v10813_v11  ;;  %10188 = vmatprep.mubr.msk.f32.mxu1 %vm10812_vm0, %v10813_v11 }
0x1281   : > { %10586 = vmatpush3.bf16.msra.mxu0 %v10585_v23  ;;  %10592 = vmatpush3.bf16.msra.mxu1 %v10591_v24 }
0x1282   : > { %10593 = vmatprep.subr.bf16.mxu0 %v10811_v3  ;;  %10599 = vmatprep.subr.bf16.mxu1 %v10811_v3 }
0x1284   : > { %10178 = vmatmul.mubr.msk.f32.vlgmr.msra.gmra.mrb[80].mxu0 %vm379_vm1, %v12160_v17  ;;  %10189 = vmatmul.mubr.msk.f32.vlgmr.msra.gmra.mrb[80].mxu1 %vm379_vm1, %v12160_v17 }
0x1285   : > { %10595 = vmatpush3.bf16.msra.mxu0 %v10594_v29  ;;  %10601 = vmatpush3.bf16.msra.mxu1 %v10600_v30 }
0x1286   : > { %10596 = vmatprep.subr.bf16.mxu0 %v10811_v3  ;;  %10602 = vmatprep.subr.bf16.mxu1 %v10811_v3 }
0x1287   : > { %10199 = vmatprep.mubr.msk.f32.mxu0 %vm10812_vm0, %v10813_v11  ;;  %10210 = vmatprep.mubr.msk.f32.mxu1 %vm10812_vm0, %v10813_v11 }
0x1289   : > { %10598 = vmatpush3.bf16.msra.mxu0 %v10597_v37  ;;  %10604 = vmatpush3.bf16.msra.mxu1 %v10603_v38 }
0x128a   : > { %10605 = vmatprep.subr.bf16.mxu0 %v10811_v3  ;;  %10611 = vmatprep.subr.bf16.mxu1 %v10811_v3 }
0x128c   : > { %10200 = vmatmul.mubr.msk.f32.vlgmr.msra.gmra.mrb[82].mxu0 %vm379_vm1, %v12160_v17  ;;  %10211 = vmatmul.mubr.msk.f32.vlgmr.msra.gmra.mrb[82].mxu1 %vm379_vm1, %v12160_v17 }
0x128d   : > { %10607 = vmatpush3.bf16.msra.mxu0 %v10606_v45  ;;  %10613 = vmatpush3.bf16.msra.mxu1 %v10612_v46 }
0x128e   : > { %10608 = vmatprep.subr.bf16.mxu0 %v10811_v3  ;;  %10614 = vmatprep.subr.bf16.mxu1 %v10811_v3 }
0x128f   : > { %10221 = vmatprep.mubr.msk.f32.mxu0 %vm10812_vm0, %v10813_v11  ;;  %10232 = vmatprep.mubr.msk.f32.mxu1 %vm10812_vm0, %v10813_v11 }
0x1291   : > { %10610 = vmatpush3.bf16.msra.mxu0 %v10609_v50  ;;  %10616 = vmatpush3.bf16.msra.mxu1 %v10615_v51 }
0x1292   : > { %10235 = vmatprep.subr.mxu0 %v10813_v11  ;;  %10240 = vmatprep.subr.mxu1 %v10813_v11 }
0x1294   : > { %10222 = vmatmul.mubr.msk.f32.vlgmr.msra.gmra.mrb[84].mxu0 %vm379_vm1, %v12160_v17  ;;  %10233 = vmatmul.mubr.msk.f32.vlgmr.msra.gmra.mrb[84].mxu1 %vm379_vm1, %v12160_v17 }
0x1295   : > { %10237 = vmatprep.mubr.msk.f32.mxu0 %vm10812_vm0, %v10813_v11  ;;  %10242 = vmatprep.mubr.msk.f32.mxu1 %vm10812_vm0, %v10813_v11 }
0x134f   : > { %v6885_v54 = vpop.f32.mrb[78].mxu0  ;;  %v6955_v55 = vpop.f32.mrb[78].mxu1 }
0x1350   : > { %v6886_v58 = vadd.f32 %v9065_v52, %v6885_v54  ;;  %v6956_v59 = vadd.f32 %v9066_v53, %v6955_v55  ;;  %v10157_v18 = vpop.f32.mrb[79].mxu0  ;;  %v10168_v60 = vpop.f32.mrb[79].mxu1 }
0x1352   : > { %10236 = vmatpush3.xpose.msk.msra.mxu0 %vm1315_vm2, %v6886_v58  ;;  %10241 = vmatpush3.xpose.msk.msra.mxu1 %vm1315_vm2, %v6956_v59 }
0x1353   : > { %10245 = vmatprep.subr.mxu0 %v10813_v11  ;;  %10250 = vmatprep.subr.mxu1 %v10813_v11 }
0x1355   : > { %10238 = vmatmul.mubr.msk.f32.vlgmr.msra.gmra.mrb[86].mxu0 %vm1315_vm2, %v6557_v62  ;;  %10243 = vmatmul.mubr.msk.f32.vlgmr.msra.gmra.mrb[86].mxu1 %vm1315_vm2, %v6627_v63 }
0x1356   : > { %10247 = vmatprep.mubr.msk.f32.mxu0 %vm10812_vm0, %v10813_v11  ;;  %10252 = vmatprep.mubr.msk.f32.mxu1 %vm10812_vm0, %v10813_v11 }
0x1357   : > { %v7025_v35 = vpop.f32.mrb[80].mxu0  ;;  %v7095_v36 = vpop.f32.mrb[80].mxu1 }
0x1358   : > { %v7026_v4 = vadd.f32 %v9067_v22, %v7025_v35  ;;  %v7096_v5 = vadd.f32 %v9068_v0, %v7095_v36  ;;  %v10179_v6 = vpop.f32.mrb[81].mxu0  ;;  %v10190_v7 = vpop.f32.mrb[81].mxu1  ;;  %v9096_v36 = vld [vmem:[%s12493_s2 + $0x2f] ss:$0 sm:$0xff] }
0x135a   : > { %10246 = vmatpush3.xpose.msk.msra.mxu0 %vm1315_vm2, %v7026_v4  ;;  %10251 = vmatpush3.xpose.msk.msra.mxu1 %vm1315_vm2, %v7096_v5 }
0x135b   : > { %10255 = vmatprep.subr.mxu0 %v10813_v11  ;;  %10260 = vmatprep.subr.mxu1 %v10813_v11 }
0x135d   : > { %10248 = vmatmul.mubr.msk.f32.vlgmr.msra.gmra.mrb[88].mxu0 %vm1315_vm2, %v6697_v8  ;;  %10253 = vmatmul.mubr.msk.f32.vlgmr.msra.gmra.mrb[88].mxu1 %vm1315_vm2, %v6767_v10 }
0x135e   : > { %10257 = vmatprep.mubr.msk.f32.mxu0 %vm10812_vm0, %v10813_v11  ;;  %10262 = vmatprep.mubr.msk.f32.mxu1 %vm10812_vm0, %v10813_v11 }
0x135f   : > { %v7211_v43 = vpop.f32.mrb[82].mxu0  ;;  %v7281_v44 = vpop.f32.mrb[82].mxu1 }
0x1360   : > { %v7212_v14 = vadd.f32 %v9093_v12, %v7211_v43  ;;  %v7282_v15 = vadd.f32 %v9094_v13, %v7281_v44  ;;  %v10201_v16 = vpop.f32.mrb[83].mxu0  ;;  %v10212_v19 = vpop.f32.mrb[83].mxu1  ;;  %v9113_v44 = vld [vmem:[%s12494_s3 + $0x60] sm:$0xff] }
0x1361   : > { %v9115_v19 = vld [vmem:[%s12494_s3 + $0x70] sm:$0xff] }
0x1362   : > { %10256 = vmatpush3.msra.mxu0 %v7212_v14  ;;  %10261 = vmatpush3.msra.mxu1 %v7282_v15  ;;  %v9114_v14 = vld [vmem:[%s12494_s3 + $0x68] sm:$0xff]  ;;  %v9116_v15 = vld [vmem:[%s12494_s3 + $0x78] sm:$0xff] }
0x1363   : > { %10265 = vmatprep.subr.mxu0 %v10813_v11  ;;  %10270 = vmatprep.subr.mxu1 %v10813_v11 }
0x1367   : > { %v12319_v20 = vpop.f32.mrb[84].mxu0  ;;  %v12321_v21 = vpop.f32.mrb[84].mxu1 }
0x1368   : > { %v10223_v23 = vpop.f32.mrb[85].mxu0  ;;  %v10234_v24 = vpop.f32.mrb[85].mxu1  ;;  %v7422_v6 = vadd.f32 %v9096_v36, %v12321_v21  ;;  %v7352_v8 = vadd.f32 %v9095_v2, %v12319_v20 }
0x1428   : > { %v7497_v25 = vpop.f32.mrb[86].mxu0  ;;  %v7573_v26 = vpop.f32.mrb[86].mxu1 }
0x1429   : > { %v7498_v27 = vadd.f32 %v7497_v25, %v11199_v61  ;;  %v7574_v28 = vadd.f32 %v7573_v26, %v11199_v61  ;;  %v10239_v29 = vpop.f32.mrb[87].mxu0  ;;  %v10244_v30 = vpop.f32.mrb[87].mxu1 }
0x142b   : > { %v7732_v31 = vsel %vm1315_vm2, %v7574_v28, -inf  ;;  %v7729_v32 = vsel %vm1315_vm2, %v7498_v27, -inf }
0x142c   : > { %7733 = vmax.xlane.f32.xlu1 %v7732_v31  ;;  %7730 = vmax.xlane.f32.xlu0 %v7729_v32 }
0x1430   : > { %v7649_v33 = vpop.f32.mrb[88].mxu0  ;;  %v7725_v34 = vpop.f32.mrb[88].mxu1 }
0x1431   : > { %v7650_v37 = vadd.f32 %v7649_v33, %v11199_v61  ;;  %v7726_v38 = vadd.f32 %v7725_v34, %v11199_v61  ;;  %v10249_v39 = vpop.f32.mrb[89].mxu0  ;;  %v10254_v40 = vpop.f32.mrb[89].mxu1 }
0x1433   : > { %v7738_v41 = vsel %vm1315_vm2, %v7726_v38, -inf  ;;  %v7735_v42 = vsel %vm1315_vm2, %v7650_v37, -inf }
0x1434   : > { %7739 = vmax.xlane.f32.xlu1 %v7738_v41  ;;  %7736 = vmax.xlane.f32.xlu0 %v7735_v42 }
0x14b9   : > { %v7734_v45 = vpop.xlane.xlu1 %7733  ;;  %v7731_v46 = vpop.xlane.xlu0 %7730 }
0x14ba   : > { %v7742_v47 = vsub.f32 %v7574_v28, %v7734_v45  ;;  %v7741_v9 = vsub.f32 %v7498_v27, %v7731_v46 }
0x14bc   : > { %v7747_v48 = vmul.f32 1.442695, %v7742_v47  ;;  %v7745_v49 = vmul.f32 1.442695, %v7741_v9 }
0x14be   : > { %10727 = vpow2.f32 %v7747_v48 }
0x14bf   : > { %10729 = vpow2.f32 %v7745_v49 }
0x14c1   : > { %v7740_v50 = vpop.xlane.xlu1 %7739  ;;  %v7737_v51 = vpop.xlane.xlu0 %7736 }
0x14c2   : > { %v7744_v52 = vsub.f32 %v7726_v38, %v7740_v50  ;;  %v7743_v61 = vsub.f32 %v7650_v37, %v7737_v51  ;;  %v9127_v51 = vld [vmem:[%s12496_s5 + $0x40] sm:$0xff] }
0x14c4   : > { %v7751_v53 = vmul.f32 1.442695, %v7744_v52  ;;  %v7749_v54 = vmul.f32 1.442695, %v7743_v61  ;;  %v9128_v52 = vld [vmem:[%s12496_s5 + $0x48] sm:$0xff] }
0x14c5   : > { %v10618_v61 = vpack.c.bf16 %v9128_v52, %v9127_v51 }
0x14c6   : > { %10731 = vpow2.f32 %v7751_v53  ;;  %v9130_v53 = vld [vmem:[%s12496_s5 + $0x58] sm:$0xff] }
0x14c7   : > { %10733 = vpow2.f32 %v7749_v54 }
0x14c8   : > { %v10728_v55 = vpop.eup %10727 }
0x14c9   : > { %v10730_v56 = vpop.eup %10729  ;;  %v7756_v57 = vsel %vm1315_vm2, %v10728_v55, 0.0 }
0x14ca   : > { %7757 = vadd.xlane.f32.xlu1 %v7756_v57  ;;  %v7753_v58 = vsel %vm1315_vm2, %v10730_v56, 0.0 }
0x14cb   : > { %7754 = vadd.xlane.f32.xlu0 %v7753_v58 }
0x14d0   : > { %v10732_v59 = vpop.eup %10731 }
0x14d1   : > { %v10734_v18 = vpop.eup %10733  ;;  %v7762_v60 = vsel %vm1315_vm2, %v10732_v59, 0.0 }
0x14d2   : > { %7763 = vadd.xlane.f32.xlu1 %v7762_v60  ;;  %v7759_v62 = vsel %vm1315_vm2, %v10734_v18, 0.0 }
0x14d3   : > { %7760 = vadd.xlane.f32.xlu0 %v7759_v62 }
0x1557   : > { %v7758_v63 = vpop.xlane.xlu1 %7757 }
0x1558   : > { %10735 = vrcp.f32 %v7758_v63  ;;  %v7755_v22 = vpop.xlane.xlu0 %7754 }
0x1559   : > { %10737 = vrcp.f32 %v7755_v22 }
0x155f   : > { %v7764_v0 = vpop.xlane.xlu1 %7763 }
0x1560   : > { %10739 = vrcp.f32 %v7764_v0  ;;  %v7761_v35 = vpop.xlane.xlu0 %7760 }
0x1561   : > { %10741 = vrcp.f32 %v7761_v35 }
0x1562   : > { %v10736_v1 = vpop.eup %10735 }
0x1563   : > { %v10738_v4 = vpop.eup %10737  ;;  %v7770_v5 = vmul.f32 %v10736_v1, %v10728_v55  ;;  %v9134_v55 = vld [vmem:[%s12496_s5 + $0x60] sm:$0xff] }
0x1564   : > { %v7769_v7 = vmul.f32 %v10738_v4, %v10730_v56  ;;  %v9135_v56 = vld [vmem:[%s12496_s5 + $0x68] sm:$0xff]  ;;  %v9124_v1 = vld [vmem:[%s12498_s7 + $0x4] ss:$0 sm:$0xff] }
0x1565   : > { %10263 = vmatmul.mubr.msk.f32.vlgmr.msra.gmra.mrb[90].mxu1 %vm1315_vm2, %v7770_v5  ;;  %v10624_v57 = vpack.c.bf16 %v9135_v56, %v9134_v55 }
0x1566   : > { %10258 = vmatmul.mubr.msk.f32.vlgmr.msra.gmra.mrb[90].mxu0 %vm1315_vm2, %v7769_v7  ;;  %10271 = vmatpush3.msra.mxu1 %v7422_v6  ;;  %v9136_v6 = vld [vmem:[%s12496_s5 + $0x70] sm:$0xff]  ;;  %v9137_v7 = vld [vmem:[%s12496_s5 + $0x78] sm:$0xff] }
0x1567   : > { %10266 = vmatpush3.msra.mxu0 %v7352_v8  ;;  %10267 = vmatprep.mubr.msk.f32.mxu0 %vm10812_vm0, %v10813_v11  ;;  %v10627_v8 = vpack.c.bf16 %v9137_v7, %v9136_v6 }
0x1568   : > { %10272 = vmatprep.mubr.msk.f32.mxu1 %vm10812_vm0, %v10813_v11  ;;  %10275 = vmatprep.subr.mxu0 %v10813_v11 }
0x1569   : > { %10280 = vmatprep.subr.mxu1 %v10813_v11 }
0x156a   : > { %v10740_v10 = vpop.eup %10739 }
0x156b   : > { %v10742_v12 = vpop.eup %10741  ;;  %v7772_v13 = vmul.f32 %v10740_v10, %v10732_v59  ;;  %v9132_v10 = vld [vmem:[%s12497_s6 + $0x2] ss:$0 sm:$0xff] }
0x156c   : > { %v7771_v43 = vmul.f32 %v10742_v12, %v10734_v18 }
0x156d   : > { %10273 = vmatmul.mubr.msk.f32.vlgmr.msra.gmra.mrb[92].mxu1 %vm1315_vm2, %v7772_v13 }
0x156e   : > { %10268 = vmatmul.mubr.msk.f32.vlgmr.msra.gmra.mrb[92].mxu0 %vm1315_vm2, %v7771_v43  ;;  %10282 = vmatprep.mubr.msk.f32.mxu1 %vm10812_vm0, %v10813_v11 }
0x156f   : > { %10277 = vmatprep.mubr.msk.f32.mxu0 %vm10812_vm0, %v10813_v11  ;;  %10276 = vmatpush3.msra.mxu0 %v9113_v44 }
0x1570   : > { %10281 = vmatpush3.msra.mxu1 %v9114_v14  ;;  %10285 = vmatprep.subr.mxu0 %v10813_v11  ;;  %v9139_v14 = vld [vmem:[%s12497_s6 + $0x3] ss:$0 sm:$0xff] }
0x1571   : > { %10290 = vmatprep.subr.mxu1 %v10813_v11 }
0x1638   : > { %v7915_v16 = vpop.f32.mrb[90].mxu1 }
0x1639   : > { %v7842_v20 = vpop.f32.mrb[90].mxu0  ;;  %v10264_v21 = vpop.f32.mrb[91].mxu1  ;;  %10283 = vmatmul.mubr.msk.f32.vlgmr.msra.gmra.mrb[94].mxu1 %vm1315_vm2, %v7915_v16 }
0x163a   : > { %v10259_v23 = vpop.f32.mrb[91].mxu0  ;;  %10278 = vmatmul.mubr.msk.f32.vlgmr.msra.gmra.mrb[94].mxu0 %vm1315_vm2, %v7842_v20  ;;  %10291 = vmatpush3.msra.mxu1 %v9116_v15 }
0x163b   : > { %10286 = vmatpush3.msra.mxu0 %v9115_v19  ;;  %10287 = vmatprep.mubr.msk.f32.mxu0 %vm10812_vm0, %v10813_v11 }
0x163c   : > { %10292 = vmatprep.mubr.msk.f32.mxu1 %vm10812_vm0, %v10813_v11  ;;  %10617 = vmatprep.subr.bf16.mxu0 %v10811_v3 }
0x163d   : > { %10623 = vmatprep.subr.bf16.mxu1 %v10811_v3 }
0x1640   : > { %v8061_v24 = vpop.f32.mrb[92].mxu1 }
0x1641   : > { %v7988_v25 = vpop.f32.mrb[92].mxu0  ;;  %v10274_v26 = vpop.f32.mrb[93].mxu1  ;;  %10293 = vmatmul.mubr.msk.f32.vlgmr.msra.gmra.mrb[96].mxu1 %vm1315_vm2, %v8061_v24 }
0x1642   : > { %v10269_v27 = vpop.f32.mrb[93].mxu0  ;;  %10288 = vmatmul.mubr.msk.f32.vlgmr.msra.gmra.mrb[96].mxu0 %vm1315_vm2, %v7988_v25  ;;  %10314 = vmatprep.mubr.msk.f32.mxu1 %vm10812_vm0, %v10813_v11 }
0x1643   : > { %10303 = vmatprep.mubr.msk.f32.mxu0 %vm10812_vm0, %v10813_v11  ;;  %v9122_v11 = vld [vmem:[%s12495_s4 + $0x3] ss:$0 sm:$0xff]  ;;  %10619 = vmatpush3.bf16.msra.mxu0 %v10618_v61 }
0x1644   : > { %10620 = vmatprep.subr.bf16.mxu0 %v10811_v3  ;;  %10625 = vmatpush3.bf16.msra.mxu1 %v10624_v57 }
0x1645   : > { %10626 = vmatprep.subr.bf16.mxu1 %v10811_v3  ;;  %v9126_v3 = vld [vmem:[%s12499_s8 + $0x4] ss:$0 sm:$0xff] }
0x1648   : > { %10628 = vmatpush3.bf16.msra.mxu1 %v10627_v8 }
0x170c   : > { %v8212_v28 = vpop.f32.mrb[94].mxu1 }
0x170d   : > { %v8139_v29 = vpop.f32.mrb[94].mxu0  ;;  %v8363_v30 = vsel %vm379_vm1, %v8212_v28, 0.0  ;;  %v10284_v31 = vpop.f32.mrb[95].mxu1 }
0x170e   : > { %v8362_v32 = vsel %vm379_vm1, %v8139_v29, 0.0  ;;  %v10279_v33 = vpop.f32.mrb[95].mxu0 }
0x170f   : > { %v8364_v34 = vadd.f32 %v8363_v30, %v8362_v32 }
0x1714   : > { %v8358_v37 = vpop.f32.mrb[96].mxu1 }
0x1715   : > { %v8285_v38 = vpop.f32.mrb[96].mxu0  ;;  %v10294_v39 = vpop.f32.mrb[97].mxu1  ;;  %v8367_v45 = vsel %vm379_vm1, %v8358_v37, 0.0  ;;  %v9142_v37 = vld [vmem:[%s12498_s7 + $0x5] ss:$0 sm:$0xff] }
0x1716   : > { %v8365_v40 = vsel %vm379_vm1, %v8285_v38, 0.0  ;;  %v10289_v41 = vpop.f32.mrb[97].mxu0  ;;  %v9144_v39 = vld [vmem:[%s12499_s8 + $0x5] ss:$0 sm:$0xff] }
0x1717   : > { %v8366_v42 = vadd.f32 %v8365_v40, %v8364_v34 }
0x1719   : > { %v8368_v46 = vadd.f32 %v8367_v45, %v8366_v42 }
0x171b   : > { %v8377_v47 = vadd.f32 %v9122_v11, %v8368_v46 }
0x171d   : > { %v8378_v9 = vadd.f32 %v8377_v47, %v12160_v17  ;;  %v9129_v17 = vld [vmem:[%s12496_s5 + $0x50] sm:$0xff] }
0x171e   : > { %v10621_v54 = vpack.c.bf16 %v9130_v53, %v9129_v17 }
0x171f   : > { %v8379_v48 = vsel %vm379_vm1, %v8378_v9, 0.0  ;;  %v8382_v49 = vmul.f32 %v8378_v9, %v8378_v9 }
0x1720   : > { %8380 = vadd.xlane.f32.xlu0 %v8379_v48  ;;  %10622 = vmatpush3.bf16.msra.mxu0 %v10621_v54 }
0x1721   : > { %v8383_v50 = vsel %vm379_vm1, %v8382_v49, 0.0 }
0x1722   : > { %8384 = vadd.xlane.f32.xlu1 %v8383_v50 }
0x17ad   : > { %v8381_v58 = vpop.xlane.xlu0 %8380 }
0x17ae   : > { %v8386_v59 = vmul.f32 0.03125, %v8381_v58 }
0x17af   : > { %v8385_v18 = vpop.xlane.xlu1 %8384 }
0x17b0   : > { %v8388_v60 = vmul.f32 %v8386_v59, %v8386_v59  ;;  %v8387_v62 = vmul.f32 0.03125, %v8385_v18  ;;  %v8391_v35 = vsub.f32 %v8378_v9, %v8386_v59 }
0x17b2   : > { %v8389_v63 = vsub.f32 %v8387_v62, %v8388_v60 }
0x17b4   : > { %v8390_v22 = vmax.f32 %v8389_v63, 0.0 }
0x17b6   : > { %v8392_v0 = vadd.f32 1e-05, %v8390_v22 }
0x17b8   : > { %10743 = vrsqrt.f32 %v8392_v0 }
0x17c2   : > { %v10744_v36 = vpop.eup %10743 }
0x17c3   : > { %v8394_v2 = vmul.f32 %v10744_v36, %v8391_v35 }
0x17c5   : > { %v8403_v4 = vmul.f32 %v9124_v1, %v8394_v2 }
0x17c7   : > { %v8412_v5 = vadd.f32 %v9126_v3, %v8403_v4 }
0x17c9   : > { %10304 = vmatmul.mubr.msk.f32.vlgmr.msra.gmra.mrb[98].mxu0 %vm379_vm1, %v8412_v5 }
0x189c   : > { %v8495_v12 = vpop.f32.mrb[98].mxu0 }
0x189d   : > { %v8496_v13 = vadd.f32 %v9132_v10, %v8495_v12  ;;  %v10305_v43 = vpop.f32.mrb[99].mxu0 }
0x189f   : > { %v8499_v44 = vmax.f32 %v8496_v13, 0.0 }
0x18a1   : > { %10315 = vmatmul.mubr.msk.f32.vlgmr.msra.gmra.mrb[98].mxu1 %vm379_vm1, %v8499_v44 }
0x1974   : > { %v8582_v15 = vpop.f32.mrb[98].mxu1 }
0x1975   : > { %v8583_v16 = vadd.f32 %v9139_v14, %v8582_v15  ;;  %v10316_v19 = vpop.f32.mrb[99].mxu1 }
0x1977   : > { %v8586_v20 = vadd.f32 %v8583_v16, %v8412_v5 }
0x1979   : > { %v8587_v21 = vsel %vm379_vm1, %v8586_v20, 0.0  ;;  %v8590_v23 = vmul.f32 %v8586_v20, %v8586_v20 }
0x197a   : > { %8588 = vadd.xlane.f32.xlu0 %v8587_v21 }
0x197b   : > { %v8591_v24 = vsel %vm379_vm1, %v8590_v23, 0.0 }
0x197c   : > { %8592 = vadd.xlane.f32.xlu1 %v8591_v24 }
0x1a07   : > { %v8589_v25 = vpop.xlane.xlu0 %8588 }
0x1a08   : > { %v8594_v26 = vmul.f32 0.03125, %v8589_v25 }
0x1a09   : > { %v8593_v27 = vpop.xlane.xlu1 %8592 }
0x1a0a   : > { %v8596_v28 = vmul.f32 %v8594_v26, %v8594_v26  ;;  %v8595_v29 = vmul.f32 0.03125, %v8593_v27  ;;  %v8599_v33 = vsub.f32 %v8586_v20, %v8594_v26 }
0x1a0c   : > { %v8597_v30 = vsub.f32 %v8595_v29, %v8596_v28 }
0x1a0e   : > { %v8598_v31 = vmax.f32 %v8597_v30, 0.0 }
0x1a10   : > { %v8600_v32 = vadd.f32 1e-05, %v8598_v31 }
0x1a12   : > { %10745 = vrsqrt.f32 %v8600_v32 }
0x1a1c   : > { %v10746_v34 = vpop.eup %10745 }
0x1a1d   : > { %v8602_v38 = vmul.f32 %v10746_v34, %v8599_v33 }
0x1a1f   : > { %v8611_v40 = vmul.f32 %v9142_v37, %v8602_v38 }
0x1a21   : > { %v8620_v41 = vadd.f32 %v9144_v39, %v8611_v40 }
0x1a23   : > { %8621 = vst.msk [vmem:[%s323_s26] sm:$0xff] %vm379_vm1, %v8620_v41 }
0x1a24   : > { %10760 = shalt.err (!%p10757_p3)
}
0x1a25   : > { %s10761_s14 = scalar_lea.hbm %s12448_s29, 128  ;;  %s10765_s26 = scalar_lea.hbm %s12500_s9, 256 }
0x1a26   : > { %p10762_p4 = scmp.ne.s32.totalorder %s12448_s29, %s10761_s14  ;;  %p10766_p9 = scmp.lt.u32.totalorder %s12448_s29, %s12500_s9 }
0x1a27   : > { %p10767_p10 = scmp.lt.u32.totalorder %s10765_s26, %s10761_s14  ;;  %p10769_p12 = scmp.lt.u32.totalorder %s10761_s14, %s12448_s29 }
0x1a28   : > { %p10763_p7 = pnand %p10762_p4, %p10903_p5 }
0x1a29   : > { %p10768_p11 = por %p10767_p10, %p10766_p9 }
0x1a2a   : > { %p10764_p8 = pneg %p10763_p7 }
0x1a2b   : > { %p10770_p13 = por %p10769_p12, %p10768_p11 }
0x1a2d   : > { %p10771_p0 = pnand %p10770_p13, %p10764_p8 }
0x1a2f   : > { %10774 = shalt.err (!%p10771_p0)
}
0x1a30   : > { %10629 = dma.vmem_to_hbm [thread:$0]  (%p10903_p5), %s12450_s25, 128, %s12448_s29, %s8623_s17  }
0x1a31 PF: > { %p10635_p1 = scmp.ge.s32.totalorder %s10809_s12, 2  ;;  %s8648_s21 = sand.u32 1, %s10797_s30  }
0x1a32   : > { %s8649_s13 = scalar_lea.sflag [#allocation3], %s8648_s21 }
0x1a33   : > { %p10632_p2 = pnand %p10635_p1, %p10907_p6 }
0x1a35   : > { %10792 = dma.done.wait (!%p10632_p2), %s8649_s13, 128  }
0x1a36   : > { %10794 = vsyncadd (!%p10632_p2), %s8649_s13, 4294967168  ;;  %p19_p3 = scmp.ge.s32.totalorder %s10890_s15, 4   ;;  %s12503_s30 = smov %s10801_s10 }
0x1a37   : > { %s12504_s10 = smov %s10805_s11  ;;  %s12505_s11 = smov %s10901_s18 }
0x1a38   : > { %s12506_s12 = smov %s10890_s15  ;;  %21 = sbr.rel (!%p19_p3) target bundleno = 3 (0x3), region = 135 }
0x1a3f   :  { %8654 = vsyncpa [#allocation3], 1 }
0x1a40   :  { %8656 = vsyncpa [#allocation3 + $0x1], 1 }

</bundles_post_ra>
